<compile_context>
chip_gen: v5e
topology: v5e:2x2
jax: 0.10.0
libtpu: 0.0.40
codegen_flags: <defaults>
</compile_context>

<pallas_src>
import functools

import jax
import jax.numpy as jnp
from jax.experimental import pallas as pl
from jax.experimental.pallas import tpu as pltpu

_VMEM_LIMIT = 48 * 1024 * 1024   # safe on v7x (64 MiB) and plenty on v5e/v6e
_BLOCK_BUDGET = 8 << 20          # per-call double-buffered block working set


def _pick_tile(n, unit_bytes, *, budget=_BLOCK_BUDGET, multiple=1):
    """Largest divisor of `n` that (a) is a multiple of `multiple` or == n
    (keeps the (8,128) block rule happy) and (b) fits the VMEM budget."""
    legal = [d for d in range(1, n + 1)
             if n % d == 0 and (d == n or d % multiple == 0)]
    fit = [d for d in legal if d * unit_bytes <= budget]
    return max(fit) if fit else min(legal)


# ---------------------------------------------------------------------------
# In-kernel tap accumulation on a (D0, D1, Cin) NHWC block: K static shifted
# slices along `tap_axis` (0 = H, 1 = W) -> K MXU matmuls accumulated in f32.
# ---------------------------------------------------------------------------
def _conv_taps_3d(x, w, *, K, out_len, tap_axis, groups, mxu_dtype):
    # x: (D0, D1, Cin), w: (K, Cin//groups, Cout).
    # Returns (rows, Cout) f32 plus the unflattened output shape.
    D0, D1, Cin = x.shape
    Cout = w.shape[-1]
    cin_pg = Cin // groups
    cout_pg = Cout // groups
    oshape = (out_len, D1, Cout) if tap_axis == 0 else (D0, out_len, Cout)
    rows = oshape[0] * oshape[1]
    if mxu_dtype is not None:
        x = x.astype(mxu_dtype)
        w = w.astype(mxu_dtype)
    outs = []
    for g in range(groups):  # NOTE: groups>1 slices the lane axis (correct, not lane-optimal)
        acc = jnp.zeros((rows, cout_pg), jnp.float32)
        for k in range(K):   # static unrolled tap loop
            if tap_axis == 0:
                xk = x[k:k + out_len, :, g * cin_pg:(g + 1) * cin_pg]
            else:
                xk = x[:, k:k + out_len, g * cin_pg:(g + 1) * cin_pg]
            xk = xk.reshape(rows, cin_pg)
            wk = w[k, :, g * cout_pg:(g + 1) * cout_pg]
            acc = acc + jnp.dot(xk, wk, preferred_element_type=jnp.float32)
        outs.append(acc)
    y = outs[0] if groups == 1 else jnp.concatenate(outs, axis=-1)
    return y, oshape


# ---------------------------------------------------------------------------
# Kernel 1: spatial conv (K taps along H or W) + folded BN(+bias) + ReLU
# ---------------------------------------------------------------------------
def _sepconv_bn_relu_kernel(x_ref, w_ref, sc_ref, sh_ref, o_ref,
                            *, K, tap_axis, groups, mxu_dtype):
    out_len = o_ref.shape[tap_axis]
    y, oshape = _conv_taps_3d(x_ref[...], w_ref[...], K=K, out_len=out_len,
                              tap_axis=tap_axis, groups=groups,
                              mxu_dtype=mxu_dtype)
    y = y * sc_ref[...] + sh_ref[...]          # bias already folded into shift
    y = jnp.maximum(y, 0.0)
    o_ref[...] = y.reshape(oshape).astype(o_ref.dtype)


# ---------------------------------------------------------------------------
# Kernel 2 (fused tail): conv over H + BN + ReLU, then (+ right branch tile)
# -> 1x1 conv -> folded BN (no ReLU) -> final output.
# ---------------------------------------------------------------------------
def _sepconv_add_proj_kernel(x_ref, r_ref, w_ref, sc_ref, sh_ref,
                             wp_ref, scp_ref, shp_ref, o_ref,
                             *, K, groups, mxu_dtype):
    H, TW, Cout2 = o_ref.shape
    Cout = w_ref.shape[-1]
    y, _ = _conv_taps_3d(x_ref[...], w_ref[...], K=K, out_len=H, tap_axis=0,
                         groups=groups, mxu_dtype=mxu_dtype)
    y = y * sc_ref[...] + sh_ref[...]
    y = jnp.maximum(y, 0.0)                                        # left branch
    s = y + r_ref[...].reshape(H * TW, Cout).astype(jnp.float32)   # right+left
    wp = wp_ref[...]
    if mxu_dtype is not None:
        s = s.astype(mxu_dtype)
        wp = wp.astype(mxu_dtype)
    z = jnp.dot(s, wp, preferred_element_type=jnp.float32)         # 1x1 conv
    z = z * scp_ref[...] + shp_ref[...]                            # final BN (no ReLU)
    o_ref[...] = z.reshape(H, TW, Cout2).astype(o_ref.dtype)


# ---------------------------------------------------------------------------
# pallas_call wrappers (NHWC in / NHWC out, no HBM transposes)
# ---------------------------------------------------------------------------
def _folded(cp):
    """Fold conv bias into BN shift: (y+b)*s + t == y*s + (t + b*s)."""
    return cp["scale"], cp["shift"] + cp["b"] * cp["scale"]


def conv_spatial_bn_relu(x, cp, *, K, groups, tap_axis, mxu_dtype=None):
    """x: (N,H,W,Cin) NHWC; conv along H (tap_axis=0) or W (tap_axis=1)."""
    N, H, W, Cin = x.shape
    w = cp["w"]
    Cout = w.shape[-1]
    scale, shift = _folded(cp)
    pad = (K - 1) // 2
    itemsize = jnp.dtype(x.dtype).itemsize

    if tap_axis == 0:   # conv(K,1) over H; tile along W (lane-adjacent dim)
        xp = jnp.pad(x, ((0, 0), (pad, pad), (0, 0), (0, 0)))
        Hp = H + 2 * pad
        unit = 2 * (Hp * Cin + H * Cout) * itemsize   # per-W-column, 2x buffered
        TW = _pick_tile(W, unit, multiple=8)          # sublane axis of the block
        grid = (N, W // TW)
        in_block, out_block = (None, Hp, TW, Cin), (None, H, TW, Cout)
        idx = lambda n, j: (n, 0, j, 0)
    else:               # conv(1,K) over W; tile along H
        xp = jnp.pad(x, ((0, 0), (0, 0), (pad, pad), (0, 0)))
        Wp = W + 2 * pad
        unit = 2 * (Wp * Cin + W * Cout) * itemsize   # per-H-row, 2x buffered
        TH = _pick_tile(H, unit, multiple=1)
        grid = (N, H // TH)
        in_block, out_block = (None, TH, Wp, Cin), (None, TH, W, Cout)
        idx = lambda n, i: (n, i, 0, 0)

    kernel = functools.partial(_sepconv_bn_relu_kernel, K=K, tap_axis=tap_axis,
                               groups=groups, mxu_dtype=mxu_dtype)
    return pl.pallas_call(
        kernel,
        out_shape=jax.ShapeDtypeStruct((N, H, W, Cout), x.dtype),
        grid=grid,
        in_specs=[pl.BlockSpec(in_block, idx),
                  pl.BlockSpec(w.shape, lambda n, j: (0, 0, 0)),
                  pl.BlockSpec((1, Cout), lambda n, j: (0, 0)),
                  pl.BlockSpec((1, Cout), lambda n, j: (0, 0))],
        out_specs=pl.BlockSpec(out_block, idx),
        compiler_params=pltpu.CompilerParams(
            dimension_semantics=("parallel", "parallel"),
            vmem_limit_bytes=_VMEM_LIMIT),
    )(xp, w, scale.reshape(1, Cout), shift.reshape(1, Cout))


def conv_h_add_proj(l, r, cp, cpp, *, K, groups, mxu_dtype=None):
    """Fused: conv(K,1) over H on `l` + BN + ReLU, add `r`, 1x1 conv, final BN."""
    N, H, W, Cin = l.shape
    w, wp = cp["w"], cpp["w"]
    Cout, Cout2 = w.shape[-1], wp.shape[-1]
    sc, sh = _folded(cp)
    scp, shp = _folded(cpp)
    pad = (K - 1) // 2
    lp = jnp.pad(l, ((0, 0), (pad, pad), (0, 0), (0, 0)))
    Hp = H + 2 * pad
    itemsize = jnp.dtype(l.dtype).itemsize
    unit = 2 * (Hp * Cin + H * Cout + H * Cout2) * itemsize
    TW = _pick_tile(W, unit, multiple=8)
    grid = (N, W // TW)
    idx = lambda n, j: (n, 0, j, 0)

    kernel = functools.partial(_sepconv_add_proj_kernel, K=K, groups=groups,
                               mxu_dtype=mxu_dtype)
    return pl.pallas_call(
        kernel,
        out_shape=jax.ShapeDtypeStruct((N, H, W, Cout2), l.dtype),
        grid=grid,
        in_specs=[pl.BlockSpec((None, Hp, TW, Cin), idx),
                  pl.BlockSpec((None, H, TW, Cout), idx),
                  pl.BlockSpec(w.shape, lambda n, j: (0, 0, 0)),
                  pl.BlockSpec((1, Cout), lambda n, j: (0, 0)),
                  pl.BlockSpec((1, Cout), lambda n, j: (0, 0)),
                  pl.BlockSpec(wp.shape, lambda n, j: (0, 0)),
                  pl.BlockSpec((1, Cout2), lambda n, j: (0, 0)),
                  pl.BlockSpec((1, Cout2), lambda n, j: (0, 0))],
        out_specs=pl.BlockSpec((None, H, TW, Cout2), idx),
        compiler_params=pltpu.CompilerParams(
            dimension_semantics=("parallel", "parallel"),
            vmem_limit_bytes=_VMEM_LIMIT),
    )(lp, r, w, sc.reshape(1, Cout), sh.reshape(1, Cout),
      wp, scp.reshape(1, Cout2), shp.reshape(1, Cout2))


# ---------------------------------------------------------------------------
# Forward pass
# ---------------------------------------------------------------------------
def gc_bn_relu_forward_nhwc(x, params, *, kernel, groups, mxu_dtype=None):
    """NHWC-in / NHWC-out forward. 4 pallas_calls, no HBM transposes."""
    assert kernel % 2 == 1, "module padding only matches 'same' conv for odd K"
    # right branch: conv(K,1) over H -> conv(1,K) over W
    r = conv_spatial_bn_relu(x, params["r1"], K=kernel, groups=groups,
                             tap_axis=0, mxu_dtype=mxu_dtype)
    r = conv_spatial_bn_relu(r, params["r2"], K=kernel, groups=groups,
                             tap_axis=1, mxu_dtype=mxu_dtype)
    # left branch: conv(1,K) over W -> fused [conv(K,1) over H + add + 1x1 + BN]
    l = conv_spatial_bn_relu(x, params["l1"], K=kernel, groups=groups,
                             tap_axis=1, mxu_dtype=mxu_dtype)
    return conv_h_add_proj(l, r, params["l2"], params["p"], K=kernel,
                           groups=groups, mxu_dtype=mxu_dtype)


def gc_bn_relu_forward(x_nchw, params, *, kernel, groups, mxu_dtype=None):
    """PyTorch-convention NCHW in / NCHW out wrapper (layout glue only)."""
    x = jnp.transpose(x_nchw, (0, 2, 3, 1))
    y = gc_bn_relu_forward_nhwc(x, params, kernel=kernel, groups=groups,
                                mxu_dtype=mxu_dtype)
    return jnp.transpose(y, (0, 3, 1, 2))


# ---------------------------------------------------------------------------
# Deterministic synthetic parameters (conv weights + BN stats)
# ---------------------------------------------------------------------------
def _make_conv_bn(key, w_shape, cout, eps=1e-5):
    kw, kb, kg, kbt, km, kv = jax.random.split(key, 6)
    w = 0.1 * jax.random.normal(kw, w_shape, jnp.float32)
    b = 0.05 * jax.random.normal(kb, (cout,), jnp.float32)
    gamma = jax.random.uniform(kg, (cout,), jnp.float32, 0.5, 1.5)
    beta = 0.1 * jax.random.normal(kbt, (cout,), jnp.float32)
    mean = 0.1 * jax.random.normal(km, (cout,), jnp.float32)
    var = jax.random.uniform(kv, (cout,), jnp.float32, 0.5, 1.5)
    scale = gamma / jnp.sqrt(var + eps)
    shift = beta - mean * scale
    return dict(w=w, b=b, scale=scale, shift=shift)


def make_params(key, inch, outch, kernel, groups):
    k1, k2, k3, k4, k5 = jax.random.split(key, 5)
    return {
        "r1": _make_conv_bn(k1, (kernel, inch // groups, outch), outch),
        "r2": _make_conv_bn(k2, (kernel, outch // groups, outch), outch),
        "l1": _make_conv_bn(k3, (kernel, inch // groups, outch), outch),
        "l2": _make_conv_bn(k4, (kernel, outch // groups, outch), outch),
        "p": _make_conv_bn(k5, (outch, outch), outch),
    }


# ---------------------------------------------------------------------------
# Independent pure-JAX reference (lax.conv_general_dilated) for validation
# ---------------------------------------------------------------------------
def _ref_forward(x_nhwc, p, kernel, pad, groups):
    hi = jax.lax.Precision.HIGHEST

    def conv(x, cp, axis):
        w = cp["w"]  # (K, Cin//g, Cout)
        if axis == 1:
            kern, padding = w[:, None, :, :], ((pad, pad), (0, 0))
        else:
            kern, padding = w[None, :, :, :], ((0, 0), (pad, pad))
        y = jax.lax.conv_general_dilated(
            x, kern, (1, 1), padding,
            dimension_numbers=("NHWC", "HWIO", "NHWC"),
            feature_group_count=groups, precision=hi)
        return y + cp["b"].reshape(1, 1, 1, -1)

    def bn(y, cp, relu):
        y = y * cp["scale"] + cp["shift"]
        return jnp.maximum(y, 0.0) if relu else y

    r = bn(conv(x_nhwc, p["r1"], 1), p["r1"], True)
    r = bn(conv(r, p["r2"], 2), p["r2"], True)
    l = bn(conv(x_nhwc, p["l1"], 2), p["l1"], True)
    l = bn(conv(l, p["l2"], 1), p["l2"], True)
    s = r + l
    y = jnp.einsum("nhwc,cd->nhwd", s, p["p"]["w"], precision=hi)
    y = (y + p["p"]["b"].reshape(1, 1, 1, -1)) * p["p"]["scale"] + p["p"]["shift"]
    return y


if __name__ == "__main__":
    N, inch, outch, H, W = 2, 4, 8, 16, 16
    kernel, groups = 3, 1

    key = jax.random.PRNGKey(0)
    kx, kp = jax.random.split(key)
    x_nchw = jax.random.normal(kx, (N, inch, H, W), jnp.float32)
    params = make_params(kp, inch, outch, kernel, groups)

    fwd = jax.jit(functools.partial(gc_bn_relu_forward, kernel=kernel,
                                    groups=groups))
    out = jax.block_until_ready(fwd(x_nchw, params))
    assert out.shape == (N, outch, H, W), out.shape

    ref = _ref_forward(jnp.transpose(x_nchw, (0, 2, 3, 1)), params, kernel,
                       (kernel - 1) // 2, groups)
    ref = jnp.transpose(ref, (0, 3, 1, 2))
    max_err = float(jnp.max(jnp.abs(out - ref)))
    assert jnp.allclose(out, ref, atol=1e-3, rtol=1e-3), max_err

    print("KERNEL_OK")
</pallas_src>

<mosaic_0001>
module attributes {stable_mosaic.version = 11 : i64} {
  func.func @_sepconv_bn_relu_kernel(%arg0: i32, %arg1: i32, %arg2: memref<1x18x16x4xf32, #tpu.memory_space<vmem>>, %arg3: memref<3x4x8xf32, #tpu.memory_space<vmem>>, %arg4: memref<1x8xf32, #tpu.memory_space<vmem>>, %arg5: memref<1x8xf32, #tpu.memory_space<vmem>>, %arg6: memref<1x16x16x8xf32, #tpu.memory_space<vmem>>) attributes {dimension_semantics = [#tpu.dimension_semantics<parallel>, #tpu.dimension_semantics<parallel>], iteration_bounds = array<i64: 2, 1>, scalar_prefetch = 0 : i64, scratch_operands = 0 : i64, tpu.core_type = #tpu.core_type<tc>, window_params = [{transform_indices = @transform_0, window_bounds = array<i64: 1, 18, 16, 4>}, {pipeline_mode = #tpu.pipeline_mode<synchronous>, transform_indices = @transform_1, window_bounds = array<i64: 3, 4, 8>}, {pipeline_mode = #tpu.pipeline_mode<synchronous>, transform_indices = @transform_2, window_bounds = array<i64: 1, 8>}, {pipeline_mode = #tpu.pipeline_mode<synchronous>, transform_indices = @transform_3, window_bounds = array<i64: 1, 8>}, {transform_indices = @transform_4, window_bounds = array<i64: 1, 16, 16, 8>}]} {
    %c0 = arith.constant 0 : index
    %c0_0 = arith.constant 0 : index
    %c0_1 = arith.constant 0 : index
    %c0_2 = arith.constant 0 : index
    %0 = vector.load %arg2[%c0, %c0_0, %c0_1, %c0_2] : memref<1x18x16x4xf32, #tpu.memory_space<vmem>>, vector<1x18x16x4xf32>
    %1 = vector.shape_cast %0 : vector<1x18x16x4xf32> to vector<18x16x4xf32>
    %c0_3 = arith.constant 0 : index
    %c0_4 = arith.constant 0 : index
    %c0_5 = arith.constant 0 : index
    %2 = vector.load %arg3[%c0_3, %c0_4, %c0_5] : memref<3x4x8xf32, #tpu.memory_space<vmem>>, vector<3x4x8xf32>
    %cst = arith.constant 0.000000e+00 : f32
    %3 = vector.broadcast %cst : f32 to vector<256x8xf32>
    %4 = vector.extract_strided_slice %1 {offsets = [0, 0, 0], sizes = [16, 16, 4], strides = [1, 1, 1]} : vector<18x16x4xf32> to vector<16x16x4xf32>
    %5 = vector.shape_cast %4 : vector<16x16x4xf32> to vector<256x4xf32>
    %6 = vector.extract_strided_slice %2 {offsets = [0, 0, 0], sizes = [1, 4, 8], strides = [1, 1, 1]} : vector<3x4x8xf32> to vector<1x4x8xf32>
    %7 = vector.shape_cast %6 : vector<1x4x8xf32> to vector<4x8xf32>
    %cst_6 = arith.constant dense<0.000000e+00> : vector<256x8xf32>
    %8 = tpu.matmul %5, %7, %cst_6 {dimension_numbers = #tpu.dot_dimension_numbers<[1], [0], [0], [1], [0, 0, 1, 1], [], []>} : vector<256x4xf32>, vector<4x8xf32>, vector<256x8xf32> -> vector<256x8xf32>
    %9 = arith.addf %3, %8 : vector<256x8xf32>
    %10 = vector.extract_strided_slice %1 {offsets = [1, 0, 0], sizes = [16, 16, 4], strides = [1, 1, 1]} : vector<18x16x4xf32> to vector<16x16x4xf32>
    %11 = vector.shape_cast %10 : vector<16x16x4xf32> to vector<256x4xf32>
    %12 = vector.extract_strided_slice %2 {offsets = [1, 0, 0], sizes = [1, 4, 8], strides = [1, 1, 1]} : vector<3x4x8xf32> to vector<1x4x8xf32>
    %13 = vector.shape_cast %12 : vector<1x4x8xf32> to vector<4x8xf32>
    %cst_7 = arith.constant dense<0.000000e+00> : vector<256x8xf32>
    %14 = tpu.matmul %11, %13, %cst_7 {dimension_numbers = #tpu.dot_dimension_numbers<[1], [0], [0], [1], [0, 0, 1, 1], [], []>} : vector<256x4xf32>, vector<4x8xf32>, vector<256x8xf32> -> vector<256x8xf32>
    %15 = arith.addf %9, %14 : vector<256x8xf32>
    %16 = vector.extract_strided_slice %1 {offsets = [2, 0, 0], sizes = [16, 16, 4], strides = [1, 1, 1]} : vector<18x16x4xf32> to vector<16x16x4xf32>
    %17 = vector.shape_cast %16 : vector<16x16x4xf32> to vector<256x4xf32>
    %18 = vector.extract_strided_slice %2 {offsets = [2, 0, 0], sizes = [1, 4, 8], strides = [1, 1, 1]} : vector<3x4x8xf32> to vector<1x4x8xf32>
    %19 = vector.shape_cast %18 : vector<1x4x8xf32> to vector<4x8xf32>
    %cst_8 = arith.constant dense<0.000000e+00> : vector<256x8xf32>
    %20 = tpu.matmul %17, %19, %cst_8 {dimension_numbers = #tpu.dot_dimension_numbers<[1], [0], [0], [1], [0, 0, 1, 1], [], []>} : vector<256x4xf32>, vector<4x8xf32>, vector<256x8xf32> -> vector<256x8xf32>
    %21 = arith.addf %15, %20 : vector<256x8xf32>
    %c0_9 = arith.constant 0 : index
    %c0_10 = arith.constant 0 : index
    %22 = vector.load %arg4[%c0_9, %c0_10] : memref<1x8xf32, #tpu.memory_space<vmem>>, vector<1x8xf32>
    %23 = vector.broadcast %22 : vector<1x8xf32> to vector<256x8xf32>
    %24 = arith.mulf %21, %23 : vector<256x8xf32>
    %c0_11 = arith.constant 0 : index
    %c0_12 = arith.constant 0 : index
    %25 = vector.load %arg5[%c0_11, %c0_12] : memref<1x8xf32, #tpu.memory_space<vmem>>, vector<1x8xf32>
    %26 = vector.broadcast %25 : vector<1x8xf32> to vector<256x8xf32>
    %27 = arith.addf %24, %26 : vector<256x8xf32>
    %cst_13 = arith.constant 0.000000e+00 : f32
    %28 = vector.broadcast %cst_13 : f32 to vector<256x8xf32>
    %29 = arith.maximumf %27, %28 : vector<256x8xf32>
    %30 = vector.shape_cast %29 : vector<256x8xf32> to vector<16x16x8xf32>
    %c0_14 = arith.constant 0 : index
    %c0_15 = arith.constant 0 : index
    %c0_16 = arith.constant 0 : index
    %c0_17 = arith.constant 0 : index
    %31 = vector.load %arg6[%c0_14, %c0_15, %c0_16, %c0_17] : memref<1x16x16x8xf32, #tpu.memory_space<vmem>>, vector<1x16x16x8xf32>
    %32 = vector.shape_cast %31 : vector<1x16x16x8xf32> to vector<16x16x8xf32>
    %33 = vector.shape_cast %30 : vector<16x16x8xf32> to vector<1x16x16x8xf32>
    tpu.vector_store %arg6[%c0_14, %c0_15, %c0_16, %c0_17], %33 {strides = array<i32>} : memref<1x16x16x8xf32, #tpu.memory_space<vmem>>, vector<1x16x16x8xf32>,
    return
  }
  func.func @transform_0(%arg0: i32, %arg1: i32) -> (i32, i32, i32, i32) {
    %c0_i32 = arith.constant 0 : i32
    %c0_i32_0 = arith.constant 0 : i32
    %c0_i32_1 = arith.constant 0 : i32
    return %arg0, %c0_i32, %arg1, %c0_i32_0 : i32, i32, i32, i32
  }
  func.func @transform_1(%arg0: i32, %arg1: i32) -> (i32, i32, i32) {
    %c0_i32 = arith.constant 0 : i32
    %c0_i32_0 = arith.constant 0 : i32
    %c0_i32_1 = arith.constant 0 : i32
    %c0_i32_2 = arith.constant 0 : i32
    return %c0_i32, %c0_i32_0, %c0_i32_1 : i32, i32, i32
  }
  func.func @transform_2(%arg0: i32, %arg1: i32) -> (i32, i32) {
    %c0_i32 = arith.constant 0 : i32
    %c0_i32_0 = arith.constant 0 : i32
    %c0_i32_1 = arith.constant 0 : i32
    return %c0_i32, %c0_i32_0 : i32, i32
  }
  func.func @transform_3(%arg0: i32, %arg1: i32) -> (i32, i32) {
    %c0_i32 = arith.constant 0 : i32
    %c0_i32_0 = arith.constant 0 : i32
    %c0_i32_1 = arith.constant 0 : i32
    return %c0_i32, %c0_i32_0 : i32, i32
  }
  func.func @transform_4(%arg0: i32, %arg1: i32) -> (i32, i32, i32, i32) {
    %c0_i32 = arith.constant 0 : i32
    %c0_i32_0 = arith.constant 0 : i32
    %c0_i32_1 = arith.constant 0 : i32
    return %arg0, %c0_i32, %arg1, %c0_i32_0 : i32, i32, i32, i32
  }
}

module attributes {stable_mosaic.version = 11 : i64} {
  func.func @_sepconv_bn_relu_kernel(%arg0: i32, %arg1: i32, %arg2: memref<1x16x18x8xf32, #tpu.memory_space<vmem>>, %arg3: memref<3x8x8xf32, #tpu.memory_space<vmem>>, %arg4: memref<1x8xf32, #tpu.memory_space<vmem>>, %arg5: memref<1x8xf32, #tpu.memory_space<vmem>>, %arg6: memref<1x16x16x8xf32, #tpu.memory_space<vmem>>) attributes {dimension_semantics = [#tpu.dimension_semantics<parallel>, #tpu.dimension_semantics<parallel>], iteration_bounds = array<i64: 2, 1>, scalar_prefetch = 0 : i64, scratch_operands = 0 : i64, tpu.core_type = #tpu.core_type<tc>, window_params = [{transform_indices = @transform_0, window_bounds = array<i64: 1, 16, 18, 8>}, {pipeline_mode = #tpu.pipeline_mode<synchronous>, transform_indices = @transform_1, window_bounds = array<i64: 3, 8, 8>}, {pipeline_mode = #tpu.pipeline_mode<synchronous>, transform_indices = @transform_2, window_bounds = array<i64: 1, 8>}, {pipeline_mode = #tpu.pipeline_mode<synchronous>, transform_indices = @transform_3, window_bounds = array<i64: 1, 8>}, {transform_indices = @transform_4, window_bounds = array<i64: 1, 16, 16, 8>}]} {
    %c0 = arith.constant 0 : index
    %c0_0 = arith.constant 0 : index
    %c0_1 = arith.constant 0 : index
    %c0_2 = arith.constant 0 : index
    %0 = vector.load %arg2[%c0, %c0_0, %c0_1, %c0_2] : memref<1x16x18x8xf32, #tpu.memory_space<vmem>>, vector<1x16x18x8xf32>
    %1 = vector.shape_cast %0 : vector<1x16x18x8xf32> to vector<16x18x8xf32>
    %c0_3 = arith.constant 0 : index
    %c0_4 = arith.constant 0 : index
    %c0_5 = arith.constant 0 : index
    %2 = vector.load %arg3[%c0_3, %c0_4, %c0_5] : memref<3x8x8xf32, #tpu.memory_space<vmem>>, vector<3x8x8xf32>
    %cst = arith.constant 0.000000e+00 : f32
    %3 = vector.broadcast %cst : f32 to vector<256x8xf32>
    %4 = vector.extract_strided_slice %1 {offsets = [0, 0, 0], sizes = [16, 16, 8], strides = [1, 1, 1]} : vector<16x18x8xf32> to vector<16x16x8xf32>
    %5 = vector.shape_cast %4 : vector<16x16x8xf32> to vector<256x8xf32>
    %6 = vector.extract_strided_slice %2 {offsets = [0, 0, 0], sizes = [1, 8, 8], strides = [1, 1, 1]} : vector<3x8x8xf32> to vector<1x8x8xf32>
    %7 = vector.shape_cast %6 : vector<1x8x8xf32> to vector<8x8xf32>
    %cst_6 = arith.constant dense<0.000000e+00> : vector<256x8xf32>
    %8 = tpu.matmul %5, %7, %cst_6 {dimension_numbers = #tpu.dot_dimension_numbers<[1], [0], [0], [1], [0, 0, 1, 1], [], []>} : vector<256x8xf32>, vector<8x8xf32>, vector<256x8xf32> -> vector<256x8xf32>
    %9 = arith.addf %3, %8 : vector<256x8xf32>
    %10 = vector.extract_strided_slice %1 {offsets = [0, 1, 0], sizes = [16, 16, 8], strides = [1, 1, 1]} : vector<16x18x8xf32> to vector<16x16x8xf32>
    %11 = vector.shape_cast %10 : vector<16x16x8xf32> to vector<256x8xf32>
    %12 = vector.extract_strided_slice %2 {offsets = [1, 0, 0], sizes = [1, 8, 8], strides = [1, 1, 1]} : vector<3x8x8xf32> to vector<1x8x8xf32>
    %13 = vector.shape_cast %12 : vector<1x8x8xf32> to vector<8x8xf32>
    %cst_7 = arith.constant dense<0.000000e+00> : vector<256x8xf32>
    %14 = tpu.matmul %11, %13, %cst_7 {dimension_numbers = #tpu.dot_dimension_numbers<[1], [0], [0], [1], [0, 0, 1, 1], [], []>} : vector<256x8xf32>, vector<8x8xf32>, vector<256x8xf32> -> vector<256x8xf32>
    %15 = arith.addf %9, %14 : vector<256x8xf32>
    %16 = vector.extract_strided_slice %1 {offsets = [0, 2, 0], sizes = [16, 16, 8], strides = [1, 1, 1]} : vector<16x18x8xf32> to vector<16x16x8xf32>
    %17 = vector.shape_cast %16 : vector<16x16x8xf32> to vector<256x8xf32>
    %18 = vector.extract_strided_slice %2 {offsets = [2, 0, 0], sizes = [1, 8, 8], strides = [1, 1, 1]} : vector<3x8x8xf32> to vector<1x8x8xf32>
    %19 = vector.shape_cast %18 : vector<1x8x8xf32> to vector<8x8xf32>
    %cst_8 = arith.constant dense<0.000000e+00> : vector<256x8xf32>
    %20 = tpu.matmul %17, %19, %cst_8 {dimension_numbers = #tpu.dot_dimension_numbers<[1], [0], [0], [1], [0, 0, 1, 1], [], []>} : vector<256x8xf32>, vector<8x8xf32>, vector<256x8xf32> -> vector<256x8xf32>
    %21 = arith.addf %15, %20 : vector<256x8xf32>
    %c0_9 = arith.constant 0 : index
    %c0_10 = arith.constant 0 : index
    %22 = vector.load %arg4[%c0_9, %c0_10] : memref<1x8xf32, #tpu.memory_space<vmem>>, vector<1x8xf32>
    %23 = vector.broadcast %22 : vector<1x8xf32> to vector<256x8xf32>
    %24 = arith.mulf %21, %23 : vector<256x8xf32>
    %c0_11 = arith.constant 0 : index
    %c0_12 = arith.constant 0 : index
    %25 = vector.load %arg5[%c0_11, %c0_12] : memref<1x8xf32, #tpu.memory_space<vmem>>, vector<1x8xf32>
    %26 = vector.broadcast %25 : vector<1x8xf32> to vector<256x8xf32>
    %27 = arith.addf %24, %26 : vector<256x8xf32>
    %cst_13 = arith.constant 0.000000e+00 : f32
    %28 = vector.broadcast %cst_13 : f32 to vector<256x8xf32>
    %29 = arith.maximumf %27, %28 : vector<256x8xf32>
    %30 = vector.shape_cast %29 : vector<256x8xf32> to vector<16x16x8xf32>
    %c0_14 = arith.constant 0 : index
    %c0_15 = arith.constant 0 : index
    %c0_16 = arith.constant 0 : index
    %c0_17 = arith.constant 0 : index
    %31 = vector.load %arg6[%c0_14, %c0_15, %c0_16, %c0_17] : memref<1x16x16x8xf32, #tpu.memory_space<vmem>>, vector<1x16x16x8xf32>
    %32 = vector.shape_cast %31 : vector<1x16x16x8xf32> to vector<16x16x8xf32>
    %33 = vector.shape_cast %30 : vector<16x16x8xf32> to vector<1x16x16x8xf32>
    tpu.vector_store %arg6[%c0_14, %c0_15, %c0_16, %c0_17], %33 {strides = array<i32>} : memref<1x16x16x8xf32, #tpu.memory_space<vmem>>, vector<1x16x16x8xf32>,
    return
  }
  func.func @transform_0(%arg0: i32, %arg1: i32) -> (i32, i32, i32, i32) {
    %c0_i32 = arith.constant 0 : i32
    %c0_i32_0 = arith.constant 0 : i32
    %c0_i32_1 = arith.constant 0 : i32
    return %arg0, %arg1, %c0_i32, %c0_i32_0 : i32, i32, i32, i32
  }
  func.func @transform_1(%arg0: i32, %arg1: i32) -> (i32, i32, i32) {
    %c0_i32 = arith.constant 0 : i32
    %c0_i32_0 = arith.constant 0 : i32
    %c0_i32_1 = arith.constant 0 : i32
    %c0_i32_2 = arith.constant 0 : i32
    return %c0_i32, %c0_i32_0, %c0_i32_1 : i32, i32, i32
  }
  func.func @transform_2(%arg0: i32, %arg1: i32) -> (i32, i32) {
    %c0_i32 = arith.constant 0 : i32
    %c0_i32_0 = arith.constant 0 : i32
    %c0_i32_1 = arith.constant 0 : i32
    return %c0_i32, %c0_i32_0 : i32, i32
  }
  func.func @transform_3(%arg0: i32, %arg1: i32) -> (i32, i32) {
    %c0_i32 = arith.constant 0 : i32
    %c0_i32_0 = arith.constant 0 : i32
    %c0_i32_1 = arith.constant 0 : i32
    return %c0_i32, %c0_i32_0 : i32, i32
  }
  func.func @transform_4(%arg0: i32, %arg1: i32) -> (i32, i32, i32, i32) {
    %c0_i32 = arith.constant 0 : i32
    %c0_i32_0 = arith.constant 0 : i32
    %c0_i32_1 = arith.constant 0 : i32
    return %arg0, %arg1, %c0_i32, %c0_i32_0 : i32, i32, i32, i32
  }
}

module attributes {stable_mosaic.version = 11 : i64} {
  func.func @_sepconv_bn_relu_kernel(%arg0: i32, %arg1: i32, %arg2: memref<1x16x18x4xf32, #tpu.memory_space<vmem>>, %arg3: memref<3x4x8xf32, #tpu.memory_space<vmem>>, %arg4: memref<1x8xf32, #tpu.memory_space<vmem>>, %arg5: memref<1x8xf32, #tpu.memory_space<vmem>>, %arg6: memref<1x16x16x8xf32, #tpu.memory_space<vmem>>) attributes {dimension_semantics = [#tpu.dimension_semantics<parallel>, #tpu.dimension_semantics<parallel>], iteration_bounds = array<i64: 2, 1>, scalar_prefetch = 0 : i64, scratch_operands = 0 : i64, tpu.core_type = #tpu.core_type<tc>, window_params = [{transform_indices = @transform_0, window_bounds = array<i64: 1, 16, 18, 4>}, {pipeline_mode = #tpu.pipeline_mode<synchronous>, transform_indices = @transform_1, window_bounds = array<i64: 3, 4, 8>}, {pipeline_mode = #tpu.pipeline_mode<synchronous>, transform_indices = @transform_2, window_bounds = array<i64: 1, 8>}, {pipeline_mode = #tpu.pipeline_mode<synchronous>, transform_indices = @transform_3, window_bounds = array<i64: 1, 8>}, {transform_indices = @transform_4, window_bounds = array<i64: 1, 16, 16, 8>}]} {
    %c0 = arith.constant 0 : index
    %c0_0 = arith.constant 0 : index
    %c0_1 = arith.constant 0 : index
    %c0_2 = arith.constant 0 : index
    %0 = vector.load %arg2[%c0, %c0_0, %c0_1, %c0_2] : memref<1x16x18x4xf32, #tpu.memory_space<vmem>>, vector<1x16x18x4xf32>
    %1 = vector.shape_cast %0 : vector<1x16x18x4xf32> to vector<16x18x4xf32>
    %c0_3 = arith.constant 0 : index
    %c0_4 = arith.constant 0 : index
    %c0_5 = arith.constant 0 : index
    %2 = vector.load %arg3[%c0_3, %c0_4, %c0_5] : memref<3x4x8xf32, #tpu.memory_space<vmem>>, vector<3x4x8xf32>
    %cst = arith.constant 0.000000e+00 : f32
    %3 = vector.broadcast %cst : f32 to vector<256x8xf32>
    %4 = vector.extract_strided_slice %1 {offsets = [0, 0, 0], sizes = [16, 16, 4], strides = [1, 1, 1]} : vector<16x18x4xf32> to vector<16x16x4xf32>
    %5 = vector.shape_cast %4 : vector<16x16x4xf32> to vector<256x4xf32>
    %6 = vector.extract_strided_slice %2 {offsets = [0, 0, 0], sizes = [1, 4, 8], strides = [1, 1, 1]} : vector<3x4x8xf32> to vector<1x4x8xf32>
    %7 = vector.shape_cast %6 : vector<1x4x8xf32> to vector<4x8xf32>
    %cst_6 = arith.constant dense<0.000000e+00> : vector<256x8xf32>
    %8 = tpu.matmul %5, %7, %cst_6 {dimension_numbers = #tpu.dot_dimension_numbers<[1], [0], [0], [1], [0, 0, 1, 1], [], []>} : vector<256x4xf32>, vector<4x8xf32>, vector<256x8xf32> -> vector<256x8xf32>
    %9 = arith.addf %3, %8 : vector<256x8xf32>
    %10 = vector.extract_strided_slice %1 {offsets = [0, 1, 0], sizes = [16, 16, 4], strides = [1, 1, 1]} : vector<16x18x4xf32> to vector<16x16x4xf32>
    %11 = vector.shape_cast %10 : vector<16x16x4xf32> to vector<256x4xf32>
    %12 = vector.extract_strided_slice %2 {offsets = [1, 0, 0], sizes = [1, 4, 8], strides = [1, 1, 1]} : vector<3x4x8xf32> to vector<1x4x8xf32>
    %13 = vector.shape_cast %12 : vector<1x4x8xf32> to vector<4x8xf32>
    %cst_7 = arith.constant dense<0.000000e+00> : vector<256x8xf32>
    %14 = tpu.matmul %11, %13, %cst_7 {dimension_numbers = #tpu.dot_dimension_numbers<[1], [0], [0], [1], [0, 0, 1, 1], [], []>} : vector<256x4xf32>, vector<4x8xf32>, vector<256x8xf32> -> vector<256x8xf32>
    %15 = arith.addf %9, %14 : vector<256x8xf32>
    %16 = vector.extract_strided_slice %1 {offsets = [0, 2, 0], sizes = [16, 16, 4], strides = [1, 1, 1]} : vector<16x18x4xf32> to vector<16x16x4xf32>
    %17 = vector.shape_cast %16 : vector<16x16x4xf32> to vector<256x4xf32>
    %18 = vector.extract_strided_slice %2 {offsets = [2, 0, 0], sizes = [1, 4, 8], strides = [1, 1, 1]} : vector<3x4x8xf32> to vector<1x4x8xf32>
    %19 = vector.shape_cast %18 : vector<1x4x8xf32> to vector<4x8xf32>
    %cst_8 = arith.constant dense<0.000000e+00> : vector<256x8xf32>
    %20 = tpu.matmul %17, %19, %cst_8 {dimension_numbers = #tpu.dot_dimension_numbers<[1], [0], [0], [1], [0, 0, 1, 1], [], []>} : vector<256x4xf32>, vector<4x8xf32>, vector<256x8xf32> -> vector<256x8xf32>
    %21 = arith.addf %15, %20 : vector<256x8xf32>
    %c0_9 = arith.constant 0 : index
    %c0_10 = arith.constant 0 : index
    %22 = vector.load %arg4[%c0_9, %c0_10] : memref<1x8xf32, #tpu.memory_space<vmem>>, vector<1x8xf32>
    %23 = vector.broadcast %22 : vector<1x8xf32> to vector<256x8xf32>
    %24 = arith.mulf %21, %23 : vector<256x8xf32>
    %c0_11 = arith.constant 0 : index
    %c0_12 = arith.constant 0 : index
    %25 = vector.load %arg5[%c0_11, %c0_12] : memref<1x8xf32, #tpu.memory_space<vmem>>, vector<1x8xf32>
    %26 = vector.broadcast %25 : vector<1x8xf32> to vector<256x8xf32>
    %27 = arith.addf %24, %26 : vector<256x8xf32>
    %cst_13 = arith.constant 0.000000e+00 : f32
    %28 = vector.broadcast %cst_13 : f32 to vector<256x8xf32>
    %29 = arith.maximumf %27, %28 : vector<256x8xf32>
    %30 = vector.shape_cast %29 : vector<256x8xf32> to vector<16x16x8xf32>
    %c0_14 = arith.constant 0 : index
    %c0_15 = arith.constant 0 : index
    %c0_16 = arith.constant 0 : index
    %c0_17 = arith.constant 0 : index
    %31 = vector.load %arg6[%c0_14, %c0_15, %c0_16, %c0_17] : memref<1x16x16x8xf32, #tpu.memory_space<vmem>>, vector<1x16x16x8xf32>
    %32 = vector.shape_cast %31 : vector<1x16x16x8xf32> to vector<16x16x8xf32>
    %33 = vector.shape_cast %30 : vector<16x16x8xf32> to vector<1x16x16x8xf32>
    tpu.vector_store %arg6[%c0_14, %c0_15, %c0_16, %c0_17], %33 {strides = array<i32>} : memref<1x16x16x8xf32, #tpu.memory_space<vmem>>, vector<1x16x16x8xf32>,
    return
  }
  func.func @transform_0(%arg0: i32, %arg1: i32) -> (i32, i32, i32, i32) {
    %c0_i32 = arith.constant 0 : i32
    %c0_i32_0 = arith.constant 0 : i32
    %c0_i32_1 = arith.constant 0 : i32
    return %arg0, %arg1, %c0_i32, %c0_i32_0 : i32, i32, i32, i32
  }
  func.func @transform_1(%arg0: i32, %arg1: i32) -> (i32, i32, i32) {
    %c0_i32 = arith.constant 0 : i32
    %c0_i32_0 = arith.constant 0 : i32
    %c0_i32_1 = arith.constant 0 : i32
    %c0_i32_2 = arith.constant 0 : i32
    return %c0_i32, %c0_i32_0, %c0_i32_1 : i32, i32, i32
  }
  func.func @transform_2(%arg0: i32, %arg1: i32) -> (i32, i32) {
    %c0_i32 = arith.constant 0 : i32
    %c0_i32_0 = arith.constant 0 : i32
    %c0_i32_1 = arith.constant 0 : i32
    return %c0_i32, %c0_i32_0 : i32, i32
  }
  func.func @transform_3(%arg0: i32, %arg1: i32) -> (i32, i32) {
    %c0_i32 = arith.constant 0 : i32
    %c0_i32_0 = arith.constant 0 : i32
    %c0_i32_1 = arith.constant 0 : i32
    return %c0_i32, %c0_i32_0 : i32, i32
  }
  func.func @transform_4(%arg0: i32, %arg1: i32) -> (i32, i32, i32, i32) {
    %c0_i32 = arith.constant 0 : i32
    %c0_i32_0 = arith.constant 0 : i32
    %c0_i32_1 = arith.constant 0 : i32
    return %arg0, %arg1, %c0_i32, %c0_i32_0 : i32, i32, i32, i32
  }
}

module attributes {stable_mosaic.version = 11 : i64} {
  func.func @_sepconv_add_proj_kernel(%arg0: i32, %arg1: i32, %arg2: memref<1x18x16x8xf32, #tpu.memory_space<vmem>>, %arg3: memref<1x16x16x8xf32, #tpu.memory_space<vmem>>, %arg4: memref<3x8x8xf32, #tpu.memory_space<vmem>>, %arg5: memref<1x8xf32, #tpu.memory_space<vmem>>, %arg6: memref<1x8xf32, #tpu.memory_space<vmem>>, %arg7: memref<8x8xf32, #tpu.memory_space<vmem>>, %arg8: memref<1x8xf32, #tpu.memory_space<vmem>>, %arg9: memref<1x8xf32, #tpu.memory_space<vmem>>, %arg10: memref<1x16x16x8xf32, #tpu.memory_space<vmem>>) attributes {dimension_semantics = [#tpu.dimension_semantics<parallel>, #tpu.dimension_semantics<parallel>], iteration_bounds = array<i64: 2, 1>, scalar_prefetch = 0 : i64, scratch_operands = 0 : i64, tpu.core_type = #tpu.core_type<tc>, window_params = [{transform_indices = @transform_0, window_bounds = array<i64: 1, 18, 16, 8>}, {transform_indices = @transform_1, window_bounds = array<i64: 1, 16, 16, 8>}, {pipeline_mode = #tpu.pipeline_mode<synchronous>, transform_indices = @transform_2, window_bounds = array<i64: 3, 8, 8>}, {pipeline_mode = #tpu.pipeline_mode<synchronous>, transform_indices = @transform_3, window_bounds = array<i64: 1, 8>}, {pipeline_mode = #tpu.pipeline_mode<synchronous>, transform_indices = @transform_4, window_bounds = array<i64: 1, 8>}, {pipeline_mode = #tpu.pipeline_mode<synchronous>, transform_indices = @transform_5, window_bounds = array<i64: 8, 8>}, {pipeline_mode = #tpu.pipeline_mode<synchronous>, transform_indices = @transform_6, window_bounds = array<i64: 1, 8>}, {pipeline_mode = #tpu.pipeline_mode<synchronous>, transform_indices = @transform_7, window_bounds = array<i64: 1, 8>}, {transform_indices = @transform_8, window_bounds = array<i64: 1, 16, 16, 8>}]} {
    %c0 = arith.constant 0 : index
    %c0_0 = arith.constant 0 : index
    %c0_1 = arith.constant 0 : index
    %c0_2 = arith.constant 0 : index
    %0 = vector.load %arg2[%c0, %c0_0, %c0_1, %c0_2] : memref<1x18x16x8xf32, #tpu.memory_space<vmem>>, vector<1x18x16x8xf32>
    %1 = vector.shape_cast %0 : vector<1x18x16x8xf32> to vector<18x16x8xf32>
    %c0_3 = arith.constant 0 : index
    %c0_4 = arith.constant 0 : index
    %c0_5 = arith.constant 0 : index
    %2 = vector.load %arg4[%c0_3, %c0_4, %c0_5] : memref<3x8x8xf32, #tpu.memory_space<vmem>>, vector<3x8x8xf32>
    %cst = arith.constant 0.000000e+00 : f32
    %3 = vector.broadcast %cst : f32 to vector<256x8xf32>
    %4 = vector.extract_strided_slice %1 {offsets = [0, 0, 0], sizes = [16, 16, 8], strides = [1, 1, 1]} : vector<18x16x8xf32> to vector<16x16x8xf32>
    %5 = vector.shape_cast %4 : vector<16x16x8xf32> to vector<256x8xf32>
    %6 = vector.extract_strided_slice %2 {offsets = [0, 0, 0], sizes = [1, 8, 8], strides = [1, 1, 1]} : vector<3x8x8xf32> to vector<1x8x8xf32>
    %7 = vector.shape_cast %6 : vector<1x8x8xf32> to vector<8x8xf32>
    %cst_6 = arith.constant dense<0.000000e+00> : vector<256x8xf32>
    %8 = tpu.matmul %5, %7, %cst_6 {dimension_numbers = #tpu.dot_dimension_numbers<[1], [0], [0], [1], [0, 0, 1, 1], [], []>} : vector<256x8xf32>, vector<8x8xf32>, vector<256x8xf32> -> vector<256x8xf32>
    %9 = arith.addf %3, %8 : vector<256x8xf32>
    %10 = vector.extract_strided_slice %1 {offsets = [1, 0, 0], sizes = [16, 16, 8], strides = [1, 1, 1]} : vector<18x16x8xf32> to vector<16x16x8xf32>
    %11 = vector.shape_cast %10 : vector<16x16x8xf32> to vector<256x8xf32>
    %12 = vector.extract_strided_slice %2 {offsets = [1, 0, 0], sizes = [1, 8, 8], strides = [1, 1, 1]} : vector<3x8x8xf32> to vector<1x8x8xf32>
    %13 = vector.shape_cast %12 : vector<1x8x8xf32> to vector<8x8xf32>
    %cst_7 = arith.constant dense<0.000000e+00> : vector<256x8xf32>
    %14 = tpu.matmul %11, %13, %cst_7 {dimension_numbers = #tpu.dot_dimension_numbers<[1], [0], [0], [1], [0, 0, 1, 1], [], []>} : vector<256x8xf32>, vector<8x8xf32>, vector<256x8xf32> -> vector<256x8xf32>
    %15 = arith.addf %9, %14 : vector<256x8xf32>
    %16 = vector.extract_strided_slice %1 {offsets = [2, 0, 0], sizes = [16, 16, 8], strides = [1, 1, 1]} : vector<18x16x8xf32> to vector<16x16x8xf32>
    %17 = vector.shape_cast %16 : vector<16x16x8xf32> to vector<256x8xf32>
    %18 = vector.extract_strided_slice %2 {offsets = [2, 0, 0], sizes = [1, 8, 8], strides = [1, 1, 1]} : vector<3x8x8xf32> to vector<1x8x8xf32>
    %19 = vector.shape_cast %18 : vector<1x8x8xf32> to vector<8x8xf32>
    %cst_8 = arith.constant dense<0.000000e+00> : vector<256x8xf32>
    %20 = tpu.matmul %17, %19, %cst_8 {dimension_numbers = #tpu.dot_dimension_numbers<[1], [0], [0], [1], [0, 0, 1, 1], [], []>} : vector<256x8xf32>, vector<8x8xf32>, vector<256x8xf32> -> vector<256x8xf32>
    %21 = arith.addf %15, %20 : vector<256x8xf32>
    %c0_9 = arith.constant 0 : index
    %c0_10 = arith.constant 0 : index
    %22 = vector.load %arg5[%c0_9, %c0_10] : memref<1x8xf32, #tpu.memory_space<vmem>>, vector<1x8xf32>
    %23 = vector.broadcast %22 : vector<1x8xf32> to vector<256x8xf32>
    %24 = arith.mulf %21, %23 : vector<256x8xf32>
    %c0_11 = arith.constant 0 : index
    %c0_12 = arith.constant 0 : index
    %25 = vector.load %arg6[%c0_11, %c0_12] : memref<1x8xf32, #tpu.memory_space<vmem>>, vector<1x8xf32>
    %26 = vector.broadcast %25 : vector<1x8xf32> to vector<256x8xf32>
    %27 = arith.addf %24, %26 : vector<256x8xf32>
    %cst_13 = arith.constant 0.000000e+00 : f32
    %28 = vector.broadcast %cst_13 : f32 to vector<256x8xf32>
    %29 = arith.maximumf %27, %28 : vector<256x8xf32>
    %c0_14 = arith.constant 0 : index
    %c0_15 = arith.constant 0 : index
    %c0_16 = arith.constant 0 : index
    %c0_17 = arith.constant 0 : index
    %30 = vector.load %arg3[%c0_14, %c0_15, %c0_16, %c0_17] : memref<1x16x16x8xf32, #tpu.memory_space<vmem>>, vector<1x16x16x8xf32>
    %31 = vector.shape_cast %30 : vector<1x16x16x8xf32> to vector<16x16x8xf32>
    %32 = vector.shape_cast %31 : vector<16x16x8xf32> to vector<256x8xf32>
    %33 = arith.addf %29, %32 : vector<256x8xf32>
    %c0_18 = arith.constant 0 : index
    %c0_19 = arith.constant 0 : index
    %34 = vector.load %arg7[%c0_18, %c0_19] : memref<8x8xf32, #tpu.memory_space<vmem>>, vector<8x8xf32>
    %cst_20 = arith.constant dense<0.000000e+00> : vector<256x8xf32>
    %35 = tpu.matmul %33, %34, %cst_20 {dimension_numbers = #tpu.dot_dimension_numbers<[1], [0], [0], [1], [0, 0, 1, 1], [], []>} : vector<256x8xf32>, vector<8x8xf32>, vector<256x8xf32> -> vector<256x8xf32>
    %c0_21 = arith.constant 0 : index
    %c0_22 = arith.constant 0 : index
    %36 = vector.load %arg8[%c0_21, %c0_22] : memref<1x8xf32, #tpu.memory_space<vmem>>, vector<1x8xf32>
    %37 = vector.broadcast %36 : vector<1x8xf32> to vector<256x8xf32>
    %38 = arith.mulf %35, %37 : vector<256x8xf32>
    %c0_23 = arith.constant 0 : index
    %c0_24 = arith.constant 0 : index
    %39 = vector.load %arg9[%c0_23, %c0_24] : memref<1x8xf32, #tpu.memory_space<vmem>>, vector<1x8xf32>
    %40 = vector.broadcast %39 : vector<1x8xf32> to vector<256x8xf32>
    %41 = arith.addf %38, %40 : vector<256x8xf32>
    %42 = vector.shape_cast %41 : vector<256x8xf32> to vector<16x16x8xf32>
    %c0_25 = arith.constant 0 : index
    %c0_26 = arith.constant 0 : index
    %c0_27 = arith.constant 0 : index
    %c0_28 = arith.constant 0 : index
    %43 = vector.load %arg10[%c0_25, %c0_26, %c0_27, %c0_28] : memref<1x16x16x8xf32, #tpu.memory_space<vmem>>, vector<1x16x16x8xf32>
    %44 = vector.shape_cast %43 : vector<1x16x16x8xf32> to vector<16x16x8xf32>
    %45 = vector.shape_cast %42 : vector<16x16x8xf32> to vector<1x16x16x8xf32>
    tpu.vector_store %arg10[%c0_25, %c0_26, %c0_27, %c0_28], %45 {strides = array<i32>} : memref<1x16x16x8xf32, #tpu.memory_space<vmem>>, vector<1x16x16x8xf32>,
    return
  }
  func.func @transform_0(%arg0: i32, %arg1: i32) -> (i32, i32, i32, i32) {
    %c0_i32 = arith.constant 0 : i32
    %c0_i32_0 = arith.constant 0 : i32
    %c0_i32_1 = arith.constant 0 : i32
    return %arg0, %c0_i32, %arg1, %c0_i32_0 : i32, i32, i32, i32
  }
  func.func @transform_1(%arg0: i32, %arg1: i32) -> (i32, i32, i32, i32) {
    %c0_i32 = arith.constant 0 : i32
    %c0_i32_0 = arith.constant 0 : i32
    %c0_i32_1 = arith.constant 0 : i32
    return %arg0, %c0_i32, %arg1, %c0_i32_0 : i32, i32, i32, i32
  }
  func.func @transform_2(%arg0: i32, %arg1: i32) -> (i32, i32, i32) {
    %c0_i32 = arith.constant 0 : i32
    %c0_i32_0 = arith.constant 0 : i32
    %c0_i32_1 = arith.constant 0 : i32
    %c0_i32_2 = arith.constant 0 : i32
    return %c0_i32, %c0_i32_0, %c0_i32_1 : i32, i32, i32
  }
  func.func @transform_3(%arg0: i32, %arg1: i32) -> (i32, i32) {
    %c0_i32 = arith.constant 0 : i32
    %c0_i32_0 = arith.constant 0 : i32
    %c0_i32_1 = arith.constant 0 : i32
    return %c0_i32, %c0_i32_0 : i32, i32
  }
  func.func @transform_4(%arg0: i32, %arg1: i32) -> (i32, i32) {
    %c0_i32 = arith.constant 0 : i32
    %c0_i32_0 = arith.constant 0 : i32
    %c0_i32_1 = arith.constant 0 : i32
    return %c0_i32, %c0_i32_0 : i32, i32
  }
  func.func @transform_5(%arg0: i32, %arg1: i32) -> (i32, i32) {
    %c0_i32 = arith.constant 0 : i32
    %c0_i32_0 = arith.constant 0 : i32
    %c0_i32_1 = arith.constant 0 : i32
    return %c0_i32, %c0_i32_0 : i32, i32
  }
  func.func @transform_6(%arg0: i32, %arg1: i32) -> (i32, i32) {
    %c0_i32 = arith.constant 0 : i32
    %c0_i32_0 = arith.constant 0 : i32
    %c0_i32_1 = arith.constant 0 : i32
    return %c0_i32, %c0_i32_0 : i32, i32
  }
  func.func @transform_7(%arg0: i32, %arg1: i32) -> (i32, i32) {
    %c0_i32 = arith.constant 0 : i32
    %c0_i32_0 = arith.constant 0 : i32
    %c0_i32_1 = arith.constant 0 : i32
    return %c0_i32, %c0_i32_0 : i32, i32
  }
  func.func @transform_8(%arg0: i32, %arg1: i32) -> (i32, i32, i32, i32) {
    %c0_i32 = arith.constant 0 : i32
    %c0_i32_0 = arith.constant 0 : i32
    %c0_i32_1 = arith.constant 0 : i32
    return %arg0, %c0_i32, %arg1, %c0_i32_0 : i32, i32, i32, i32
  }
}

</mosaic_0001>

<bundles_post_ra>
// kernel: gc_bn_relu_forward.5
= control target key start
LH: loop header
LB: loop body
LE: loop exit
PB: predicated region body
PF: predicated region fallthrough
CT: control target
= control target key end

     0   :  { %s1485_s15 = smov 0   ;;  %s1487_s16 = smov 0   ;;  %s1985_s0 = inlined_call_operand.vmem [shape: f32[2,16,18,8], index: 0, kind: input, shape index: {}]   ;;  %s1986_s1 = inlined_call_operand.vmem [shape: f32[3,8,8], index: 1, kind: input, shape index: {}]   ;;  %s1987_s2 = inlined_call_operand.vmem [shape: f32[1,8], index: 2, kind: input, shape index: {}]   ;;  %s1988_s3 = inlined_call_operand.vmem [shape: f32[1,8], index: 3, kind: input, shape index: {}]   ;;  %s1989_s4 = inlined_call_operand.vmem [shape: f32[2,16,16,8], index: 4, kind: output, shape index: {}]  }
   0x1   :  { %s1489_s17 = smov 0  }
   0x2 LB: > { %s26_s18 = sadd.s32 1, %s1454_s16  ;;  %p1303_p0 = scmp.ge.s32.totalorder %s1458_s17, 1  ;;  %s1458_s17 = sphi %s1489_s17, %s14_s17   ;;  %s1454_s16 = sphi %s1487_s16, %s1991_s16   ;;  %s1450_s15 = sphi %s1485_s15, %s1990_s15  }
   0x3   : > { %p28_p1 = scmp.ge.s32.totalorder %s26_s18, 2  ;;  %p184_p2 = scmp.lt.s32.totalorder %s1458_s17, 3 }
   0x5   : > { %s1993_s18 = smov (%p28_p1, %s26_s18), 0  ;;  %p185_p3 = pnand %p1303_p0, %p184_p2 }
   0x6   : > { %p221_p4 = scmp.lt.s32.totalorder (!%p185_p3), %s1450_s15, 1 }
   0x7   : > { %188 = sbr.rel (%p185_p3) target bundleno = 346 (0x15a), region = 36 }
   0xc   : > { %v291_v0 = vld [vmem:[%s1986_s1 + $0x8] sm:$0xff]  ;;  %v292_v1 = vld [vmem:[%s1986_s1 + $0x10] sm:$0xff]  ;;  %v290_v2 = vld [vmem:[%s1986_s1] sm:$0xff]  ;;  %s1995_s15 = smov (!%p221_p4, %s1450_s15), 1  ;;  %vm341_vm0 = vcmask 1046528   ;;  %vm422_vm1 = vcmask 64512  }
   0xd   : > { %1406 = vmatpush.msra.mxu3 %v291_v0  ;;  %937 = vmatpush.msra.mxu2 %v292_v1  ;;  %s1409_s25 = smul.u32 384, %s1995_s15  ;;  %vm777_vm2 = vcmask 1045504   ;;  %s1405_s7 = sshll.u32 %s1995_s15, 8 }
   0xe   : > { %502 = vmatpush.msra.mxu0 %v291_v0  ;;  %679 = vmatpush.msra.mxu1 %v290_v2  ;;  %s1746_s10 = scalar_lea.vmem %s1989_s4, %s1405_s7 }
   0xf   : > { %1407 = vmatpush.msrb.mxu3 %v290_v2  ;;  %s1518_s28 = scalar_lea.vmem %s1985_s0, %s1409_s25 }
  0x10   : > { %v1521_v3 = vld [vmem:[%s1518_s28 + $0x120] sm:$0xff]  ;;  %v1524_v4 = vld [vmem:[%s1518_s28 + $0x128] sm:$0xff]  ;;  %v1532_v13 = vld [vmem:[%s1518_s28 + $0x130] sm:$0x3] }
  0x11   : > { %v242_v5 = vld [vmem:[%s1518_s28] sm:$0xff]  ;;  %v402_v6 = vrot.slane %v1521_v3, 1  ;;  %v403_v7 = vrot.slane %v1524_v4, 1  ;;  %v243_v8 = vld [vmem:[%s1518_s28 + $0x8] sm:$0xff]  ;;  %v244_v15 = vld [vmem:[%s1518_s28 + $0x10] sm:$0x3] }
  0x12   : > { %v778_v9 = vrot.slane %v242_v5, 2  ;;  %v342_v10 = vrot.slane %v242_v5, 1  ;;  %1339 = vmatmul.msk.f32.vlgmr.msra.gmra.mxu1 %vm422_vm1, %v242_v5  ;;  %v779_v11 = vrot.slane %v243_v8, 2  ;;  %v343_v12 = vrot.slane %v243_v8, 1  ;;  %v1547_v24 = vld [vmem:[%s1518_s28 + $0x138] sm:$0xff]  ;;  %v1550_v25 = vld [vmem:[%s1518_s28 + $0x140] sm:$0xff] }
  0x13   : > { %v404_v14 = vsel %vm341_vm0, %v402_v6, %v403_v7  ;;  %v405_v18 = vrot.slane %v1532_v13, 1  ;;  %v781_v19 = vrot.slane %v244_v15, 2  ;;  %v345_v20 = vrot.slane %v244_v15, 1  ;;  %v245_v26 = vld [vmem:[%s1518_s28 + $0x18] sm:$0xff]  ;;  %v246_v27 = vld [vmem:[%s1518_s28 + $0x20] sm:$0xff]  ;;  %v1576_v45 = vld [vmem:[%s1518_s28 + $0x150] sm:$0xff] }
  0x14   : > { %1331 = vmatmul.msk.f32.vlgmr.msra.gmra.mxu3 %vm422_vm1, %v404_v14  ;;  %v780_v16 = vsel %vm777_vm2, %v778_v9, %v779_v11  ;;  %v344_v17 = vsel %vm341_vm0, %v342_v10, %v343_v12  ;;  %v407_v28 = vrot.slane %v1547_v24, 1  ;;  %v408_v29 = vrot.slane %v1550_v25, 1  ;;  %v1564_v37 = vld [vmem:[%s1518_s28 + $0x148] sm:$0x3]  ;;  %v1579_v46 = vld [vmem:[%s1518_s28 + $0x158] sm:$0xff]  ;;  %v248_v47 = vld [vmem:[%s1518_s28 + $0x30] sm:$0xff] }
  0x15   : > { %1371 = vmatmul.msk.f32.vlgmr.msra.gmra.mxu2 %vm422_vm1, %v780_v16  ;;  %1307 = vmatmul.msk.f32.vlgmr.msra.gmra.mxu0 %vm422_vm1, %v344_v17  ;;  %v406_v21 = vsel %vm341_vm0, %v403_v7, %v405_v18  ;;  %v782_v22 = vsel %vm777_vm2, %v779_v11, %v781_v19  ;;  %v346_v23 = vsel %vm341_vm0, %v343_v12, %v345_v20  ;;  %v783_v30 = vrot.slane %v245_v26, 2  ;;  %v247_v38 = vld [vmem:[%s1518_s28 + $0x28] sm:$0x3]  ;;  %v249_v48 = vld [vmem:[%s1518_s28 + $0x38] sm:$0xff]  ;;  %v1593_v58 = vld [vmem:[%s1518_s28 + $0x160] sm:$0x3] }
  0x16   : > { %1408 = vmatpush.msra.mxu3 %v292_v1  ;;  %v784_v31 = vrot.slane %v246_v27, 2  ;;  %v347_v32 = vrot.slane %v245_v26, 1  ;;  %v348_v33 = vrot.slane %v246_v27, 1  ;;  %v409_v34 = vsel %vm341_vm0, %v407_v28, %v408_v29  ;;  %v250_v59 = vld [vmem:[%s1518_s28 + $0x40] sm:$0x3]  ;;  %v1605_v2 = vld [vmem:[%s1518_s28 + $0x168] sm:$0xff] }
  0x17   : > { %v410_v39 = vrot.slane %v1564_v37, 1  ;;  %v786_v40 = vrot.slane %v247_v38, 2  ;;  %v350_v41 = vrot.slane %v247_v38, 1  ;;  %v412_v49 = vrot.slane %v1576_v45, 1  ;;  %v1608_v5 = vld [vmem:[%s1518_s28 + $0x170] sm:$0xff]  ;;  %v251_v6 = vld [vmem:[%s1518_s28 + $0x48] sm:$0xff] }
  0x18   : > { %v785_v35 = vsel %vm777_vm2, %v783_v30, %v784_v31  ;;  %v349_v36 = vsel %vm341_vm0, %v347_v32, %v348_v33  ;;  %v413_v50 = vrot.slane %v1579_v46, 1  ;;  %v788_v51 = vrot.slane %v248_v47, 2  ;;  %v252_v7 = vld [vmem:[%s1518_s28 + $0x50] sm:$0xff]  ;;  %v1622_v18 = vld [vmem:[%s1518_s28 + $0x178] sm:$0x3]  ;;  %v254_v28 = vld [vmem:[%s1518_s28 + $0x60] sm:$0xff] }
  0x19   : > { %v411_v42 = vsel %vm341_vm0, %v408_v29, %v410_v39  ;;  %v787_v43 = vsel %vm777_vm2, %v784_v31, %v786_v40  ;;  %v351_v44 = vsel %vm341_vm0, %v348_v33, %v350_v41  ;;  %v789_v52 = vrot.slane %v249_v48, 2  ;;  %v253_v19 = vld [vmem:[%s1518_s28 + $0x58] sm:$0x3]  ;;  %v255_v29 = vld [vmem:[%s1518_s28 + $0x68] sm:$0xff] }
  0x1a   : > { %1340 = vmatmul.msk.f32.gmra.mxu1 %vm422_vm1, %v243_v8  ;;  %v352_v53 = vrot.slane %v248_v47, 1  ;;  %v353_v54 = vrot.slane %v249_v48, 1  ;;  %v414_v55 = vsel %vm341_vm0, %v412_v49, %v413_v50  ;;  %v415_v60 = vrot.slane %v1593_v58, 1 }
  0x1b   : > { %v790_v56 = vsel %vm777_vm2, %v788_v51, %v789_v52  ;;  %v791_v61 = vrot.slane %v250_v59, 2  ;;  %v355_v62 = vrot.slane %v250_v59, 1  ;;  %v417_v8 = vrot.slane %v1605_v2, 1  ;;  %v261_v59 = vld [vmem:[%s1518_s28 + $0x98] sm:$0xff] }
  0x1c   : > { %1332 = vmatmul.msk.f32.gmra.mxu3 %vm422_vm1, %v406_v21  ;;  %v354_v57 = vsel %vm341_vm0, %v352_v53, %v353_v54  ;;  %v416_v63 = vsel %vm341_vm0, %v413_v50, %v415_v60  ;;  %v418_v9 = vrot.slane %v1608_v5, 1  ;;  %v793_v10 = vrot.slane %v251_v6, 2 }
  0x1d   : > { %1372 = vmatmul.msk.f32.gmra.mxu2 %vm422_vm1, %v782_v22  ;;  %1308 = vmatmul.msk.f32.gmra.mxu0 %vm422_vm1, %v346_v23  ;;  %v792_v0 = vsel %vm777_vm2, %v789_v52, %v791_v61  ;;  %v356_v1 = vsel %vm341_vm0, %v353_v54, %v355_v62  ;;  %v794_v11 = vrot.slane %v252_v7, 2  ;;  %v357_v12 = vrot.slane %v251_v6, 1  ;;  %v259_v52 = vld [vmem:[%s1518_s28 + $0x88] sm:$0x3] }
  0x1e   : > { %v358_v14 = vrot.slane %v252_v7, 1  ;;  %v419_v15 = vsel %vm341_vm0, %v417_v8, %v418_v9  ;;  %v420_v20 = vrot.slane %v1622_v18, 1  ;;  %v796_v21 = vrot.slane %v253_v19, 2 }
  0x1f   : > { %v795_v16 = vsel %vm777_vm2, %v793_v10, %v794_v11  ;;  %v360_v22 = vrot.slane %v253_v19, 1  ;;  %v798_v30 = vrot.slane %v254_v28, 2  ;;  %v799_v31 = vrot.slane %v255_v29, 2 }
  0x20   : > { %v359_v17 = vsel %vm341_vm0, %v357_v12, %v358_v14  ;;  %v421_v23 = vsel %vm341_vm0, %v418_v9, %v420_v20  ;;  %v362_v32 = vrot.slane %v254_v28, 1  ;;  %v363_v33 = vrot.slane %v255_v29, 1  ;;  %v264_v12 = vld [vmem:[%s1518_s28 + $0xb0] sm:$0xff] }
  0x21   : > { %v806_v53 = vrot.slane %v259_v52, 2  ;;  %v370_v54 = vrot.slane %v259_v52, 1  ;;  %v809_v61 = vrot.slane %v261_v59, 2  ;;  %v1727_v52 = vld [vmem:[%s1988_s3] ss:$0 sm:$0xff] }
  0x22   : > { %1341 = vmatmul.msk.f32.gmra.mxu1 %vm422_vm1, %v245_v26  ;;  %v797_v26 = vsel %vm777_vm2, %v794_v11, %v796_v21  ;;  %v263_v11 = vld [vmem:[%s1518_s28 + $0xa8] sm:$0xff]  ;;  %v265_v21 = vld [vmem:[%s1518_s28 + $0xb8] sm:$0x3] }
  0x24   : > { %1333 = vmatmul.msk.f32.gmra.mxu3 %vm422_vm1, %v409_v34  ;;  %v800_v34 = vsel %vm777_vm2, %v798_v30, %v799_v31  ;;  %v838_v30 = vrot.slane %v1521_v3, 2 }
  0x25   : > { %1373 = vmatmul.msk.f32.gmra.mxu2 %vm422_vm1, %v785_v35  ;;  %1309 = vmatmul.msk.f32.gmra.mxu0 %vm422_vm1, %v349_v36  ;;  %v364_v35 = vsel %vm341_vm0, %v362_v32, %v363_v33  ;;  %v256_v36 = vld [vmem:[%s1518_s28 + $0x70] sm:$0x3] }
  0x26   : > { %v801_v38 = vrot.slane %v256_v36, 2  ;;  %v365_v39 = vrot.slane %v256_v36, 1 }
  0x28   : > { %v802_v40 = vsel %vm777_vm2, %v799_v31, %v801_v38  ;;  %v366_v41 = vsel %vm341_vm0, %v363_v33, %v365_v39  ;;  %v839_v31 = vrot.slane %v1524_v4, 2 }
  0x2a   : > { %1342 = vmatmul.msk.f32.gmra.mxu1 %vm422_vm1, %v246_v27  ;;  %v361_v27 = vsel %vm341_vm0, %v358_v14, %v360_v22  ;;  %v813_v14 = vrot.slane %v263_v11, 2  ;;  %v816_v22 = vrot.slane %v265_v21, 2  ;;  %v840_v38 = vsel %vm777_vm2, %v838_v30, %v839_v31 }
  0x2c   : > { %1334 = vmatmul.msk.f32.gmra.mxu3 %vm422_vm1, %v411_v42  ;;  %v257_v42 = vld [vmem:[%s1518_s28 + $0x78] sm:$0xff] }
  0x2d   : > { %1374 = vmatmul.msk.f32.gmra.mxu2 %vm422_vm1, %v787_v43  ;;  %1310 = vmatmul.msk.f32.gmra.mxu0 %vm422_vm1, %v351_v44  ;;  %v258_v43 = vld [vmem:[%s1518_s28 + $0x80] sm:$0xff]  ;;  %v803_v44 = vrot.slane %v257_v42, 2 }
  0x2e   : > { %v368_v49 = vrot.slane %v258_v43, 1 }
  0x32   : > { %1343 = vmatmul.msk.f32.gmra.mxu1 %vm422_vm1, %v248_v47  ;;  %v804_v47 = vrot.slane %v258_v43, 2 }
  0x34   : > { %1335 = vmatmul.msk.f32.gmra.mxu3 %vm422_vm1, %v414_v55  ;;  %v805_v50 = vsel %vm777_vm2, %v803_v44, %v804_v47  ;;  %v807_v55 = vsel %vm777_vm2, %v804_v47, %v806_v53 }
  0x35   : > { %1375 = vmatmul.msk.f32.gmra.mxu2 %vm422_vm1, %v790_v56  ;;  %1311 = vmatmul.msk.f32.gmra.mxu0 %vm422_vm1, %v354_v57  ;;  %v371_v56 = vsel %vm341_vm0, %v368_v49, %v370_v54  ;;  %v260_v57 = vld [vmem:[%s1518_s28 + $0x90] sm:$0xff] }
  0x36   : > { %v808_v60 = vrot.slane %v260_v57, 2  ;;  %v372_v62 = vrot.slane %v260_v57, 1 }
  0x3a   : > { %1344 = vmatmul.msk.f32.gmra.mxu1 %vm422_vm1, %v249_v48  ;;  %v367_v48 = vrot.slane %v257_v42, 1 }
  0x3c   : > { %1336 = vmatmul.msk.f32.gmra.mxu3 %vm422_vm1, %v416_v63  ;;  %v369_v51 = vsel %vm341_vm0, %v367_v48, %v368_v49  ;;  %v373_v63 = vrot.slane %v261_v59, 1  ;;  %v1722_v49 = vld [vmem:[%s1987_s2] ss:$0 sm:$0xff] }
  0x3d   : > { %1376 = vmatmul.msk.f32.gmra.mxu2 %vm422_vm1, %v792_v0  ;;  %1312 = vmatmul.msk.f32.gmra.mxu0 %vm422_vm1, %v356_v1  ;;  %v810_v0 = vsel %vm777_vm2, %v808_v60, %v809_v61 }
  0x3e   : > { %v374_v1 = vsel %vm341_vm0, %v372_v62, %v373_v63  ;;  %v843_v62 = vrot.slane %v1547_v24, 2 }
  0x42   : > { %1345 = vmatmul.msk.f32.gmra.mxu1 %vm422_vm1, %v251_v6  ;;  %v262_v6 = vld [vmem:[%s1518_s28 + $0xa0] sm:$0x3] }
  0x43   : > { %v375_v8 = vrot.slane %v262_v6, 1 }
  0x44   : > { %1337 = vmatmul.msk.f32.gmra.mxu3 %vm422_vm1, %v419_v15  ;;  %v814_v15 = vrot.slane %v264_v12, 2 }
  0x45   : > { %1377 = vmatmul.msk.f32.gmra.mxu2 %vm422_vm1, %v795_v16  ;;  %1313 = vmatmul.msk.f32.gmra.mxu0 %vm422_vm1, %v359_v17  ;;  %v376_v10 = vsel %vm341_vm0, %v373_v63, %v375_v8  ;;  %v377_v16 = vrot.slane %v263_v11, 1  ;;  %v378_v17 = vrot.slane %v264_v12, 1  ;;  %v844_v63 = vrot.slane %v1550_v25, 2 }
  0x46   : > { %v815_v19 = vsel %vm777_vm2, %v813_v14, %v814_v15 }
  0x47   : > { %v379_v20 = vsel %vm341_vm0, %v377_v16, %v378_v17 }
  0x4a   : > { %1346 = vmatmul.msk.f32.gmra.mxu1 %vm422_vm1, %v252_v7  ;;  %v811_v7 = vrot.slane %v262_v6, 2 }
  0x4c   : > { %1338 = vmatmul.msk.f32.gmra.mxu3 %vm422_vm1, %v421_v23  ;;  %v812_v9 = vsel %vm777_vm2, %v809_v61, %v811_v7  ;;  %v380_v23 = vrot.slane %v265_v21, 1  ;;  %v846_v21 = vrot.slane %v1564_v37, 2 }
  0x4d   : > { %1378 = vmatmul.msk.f32.gmra.mxu2 %vm422_vm1, %v797_v26  ;;  %1314 = vmatmul.msk.f32.gmra.mxu0 %vm422_vm1, %v361_v27  ;;  %v817_v26 = vsel %vm777_vm2, %v814_v15, %v816_v22 }
  0x4e   : > { %v381_v27 = vsel %vm341_vm0, %v378_v17, %v380_v23  ;;  %v271_v17 = vld [vmem:[%s1518_s28 + $0xe8] sm:$0x3] }
  0x4f   : > { %v826_v22 = vrot.slane %v271_v17, 2 }
  0x52   : > { %1347 = vmatmul.msk.f32.gmra.mxu1 %vm422_vm1, %v254_v28  ;;  %v266_v28 = vld [vmem:[%s1518_s28 + $0xc0] sm:$0xff] }
  0x53   : > { %v818_v32 = vrot.slane %v266_v28, 2 }
  0x54   : > { %1363 = vmatmul.msk.f32.vlgmr.msrb.gmra.mxu3 %vm422_vm1, %v1521_v3 }
  0x55   : > { %1379 = vmatmul.msk.f32.gmra.mxu2 %vm422_vm1, %v800_v34  ;;  %1315 = vmatmul.msk.f32.gmra.mxu0 %vm422_vm1, %v364_v35  ;;  %v382_v35 = vrot.slane %v266_v28, 1 }
  0x5a   : > { %1348 = vmatmul.msk.f32.gmra.mxu1 %vm422_vm1, %v255_v29  ;;  %v267_v29 = vld [vmem:[%s1518_s28 + $0xc8] sm:$0xff] }
  0x5b   : > { %v819_v33 = vrot.slane %v267_v29, 2  ;;  %v383_v36 = vrot.slane %v267_v29, 1 }
  0x5c   : > { %1364 = vmatmul.msk.f32.gmra.mxu3 %vm422_vm1, %v1524_v4  ;;  %v841_v4 = vrot.slane %v1532_v13, 2 }
  0x5d   : > { %1380 = vmatmul.msk.f32.gmra.mxu2 %vm422_vm1, %v802_v40  ;;  %1316 = vmatmul.msk.f32.gmra.mxu0 %vm422_vm1, %v366_v41  ;;  %v820_v39 = vsel %vm777_vm2, %v818_v32, %v819_v33  ;;  %v384_v41 = vsel %vm341_vm0, %v382_v35, %v383_v36  ;;  %v272_v35 = vld [vmem:[%s1518_s28 + $0xf0] sm:$0xff] }
  0x5e   : > { %v842_v13 = vsel %vm777_vm2, %v839_v31, %v841_v4  ;;  %v847_v31 = vsel %vm777_vm2, %v844_v63, %v846_v21 }
  0x62   : > { %1349 = vmatmul.msk.f32.gmra.mxu1 %vm422_vm1, %v257_v42  ;;  %v268_v42 = vld [vmem:[%s1518_s28 + $0xd0] sm:$0x3] }
  0x63   : > { %v385_v47 = vrot.slane %v268_v42, 1 }
  0x64   : > { %1365 = vmatmul.msk.f32.gmra.mxu3 %vm422_vm1, %v1547_v24 }
  0x65   : > { %1381 = vmatmul.msk.f32.gmra.mxu2 %vm422_vm1, %v805_v50  ;;  %1317 = vmatmul.msk.f32.gmra.mxu0 %vm422_vm1, %v369_v51 }
  0x6a   : > { %1350 = vmatmul.msk.f32.gmra.mxu1 %vm422_vm1, %v258_v43  ;;  %v821_v43 = vrot.slane %v268_v42, 2  ;;  %v828_v42 = vrot.slane %v272_v35, 2 }
  0x6c   : > { %1366 = vmatmul.msk.f32.gmra.mxu3 %vm422_vm1, %v1550_v25  ;;  %v822_v53 = vsel %vm777_vm2, %v819_v33, %v821_v43  ;;  %v845_v25 = vsel %vm777_vm2, %v843_v62, %v844_v63  ;;  %v392_v43 = vrot.slane %v272_v35, 1 }
  0x6d   : > { %1382 = vmatmul.msk.f32.gmra.mxu2 %vm422_vm1, %v807_v55  ;;  %1318 = vmatmul.msk.f32.gmra.mxu0 %vm422_vm1, %v371_v56  ;;  %v386_v55 = vsel %vm341_vm0, %v383_v36, %v385_v47  ;;  %v273_v36 = vld [vmem:[%s1518_s28 + $0xf8] sm:$0xff] }
  0x72   : > { %1351 = vmatmul.msk.f32.gmra.mxu1 %vm422_vm1, %v260_v57  ;;  %v269_v57 = vld [vmem:[%s1518_s28 + $0xd8] sm:$0xff] }
  0x73   : > { %v387_v7 = vrot.slane %v269_v57, 1 }
  0x74   : > { %1367 = vmatmul.msk.f32.gmra.mxu3 %vm422_vm1, %v1576_v45 }
  0x75   : > { %1383 = vmatmul.msk.f32.gmra.mxu2 %vm422_vm1, %v810_v0  ;;  %1319 = vmatmul.msk.f32.gmra.mxu0 %vm422_vm1, %v374_v1  ;;  %v823_v0 = vrot.slane %v269_v57, 2 }
  0x7a   : > { %1352 = vmatmul.msk.f32.gmra.mxu1 %vm422_vm1, %v261_v59  ;;  %v270_v59 = vld [vmem:[%s1518_s28 + $0xe0] sm:$0xff] }
  0x7b   : > { %v824_v1 = vrot.slane %v270_v59, 2  ;;  %v388_v8 = vrot.slane %v270_v59, 1 }
  0x7c   : > { %1368 = vmatmul.msk.f32.gmra.mxu3 %vm422_vm1, %v1579_v46 }
  0x7d   : > { %1384 = vmatmul.msk.f32.gmra.mxu2 %vm422_vm1, %v812_v9  ;;  %1320 = vmatmul.msk.f32.gmra.mxu0 %vm422_vm1, %v376_v10  ;;  %v389_v15 = vsel %vm341_vm0, %v387_v7, %v388_v8  ;;  %v827_v32 = vsel %vm777_vm2, %v824_v1, %v826_v22 }
  0x82   : > { %1353 = vmatmul.msk.f32.gmra.mxu1 %vm422_vm1, %v263_v11 }
  0x84   : > { %1369 = vmatmul.msk.f32.gmra.mxu3 %vm422_vm1, %v1605_v2 }
  0x85   : > { %1385 = vmatmul.msk.f32.gmra.mxu2 %vm422_vm1, %v815_v19  ;;  %1321 = vmatmul.msk.f32.gmra.mxu0 %vm422_vm1, %v379_v20 }
  0x8a   : > { %1354 = vmatmul.msk.f32.gmra.mxu1 %vm422_vm1, %v264_v12  ;;  %v825_v12 = vsel %vm777_vm2, %v823_v0, %v824_v1 }
  0x8c   : > { %1370 = vmatmul.msk.f32.gmra.mxu3 %vm422_vm1, %v1608_v5 }
  0x8d   : > { %1386 = vmatmul.msk.f32.gmra.mxu2 %vm422_vm1, %v817_v26  ;;  %1322 = vmatmul.msk.f32.gmra.mxu0 %vm422_vm1, %v381_v27  ;;  %v390_v26 = vrot.slane %v271_v17, 1  ;;  %v854_v17 = vrot.slane %v1608_v5, 2 }
  0x8f   : > { %v681_v34 = vpop.f32.mrf.mxu1  ;;  %v391_v37 = vsel %vm341_vm0, %v388_v8, %v390_v26 }
  0x92   : > { %1355 = vmatmul.msk.f32.gmra.mxu1 %vm422_vm1, %v266_v28  ;;  %v504_v40 = vpop.f32.mrf.mxu0 }
  0x93   : > { %v682_v3 = vadd.f32 %v681_v34, %v504_v40  ;;  %v848_v40 = vrot.slane %v1576_v45, 2 }
  0x94   : > { %1395 = vmatmul.msk.f32.vlgmr.msra.gmra.mxu3 %vm422_vm1, %v840_v38 }
  0x95   : > { %1387 = vmatmul.msk.f32.gmra.mxu2 %vm422_vm1, %v820_v39  ;;  %1323 = vmatmul.msk.f32.gmra.mxu0 %vm422_vm1, %v384_v41  ;;  %v849_v41 = vrot.slane %v1579_v46, 2 }
  0x97   : > { %v684_v44 = vpop.f32.mrf.mxu1  ;;  %v1717_v48 = vpop.f32.mrf.mxu3 }
  0x98   : > { %v939_v50 = vpop.f32.mrf.mxu2 }
  0x99   : > { %v1035_v51 = vadd.f32 %v939_v50, %v682_v3  ;;  %v829_v3 = vrot.slane %v273_v36, 2 }
  0x9a   : > { %1356 = vmatmul.msk.f32.gmra.mxu1 %vm422_vm1, %v267_v29  ;;  %v507_v54 = vpop.f32.mrf.mxu0 }
  0x9b   : > { %v1071_v56 = vmul.f32 %v1722_v49, %v1035_v51  ;;  %v685_v61 = vadd.f32 %v684_v44, %v507_v54  ;;  %v393_v44 = vrot.slane %v273_v36, 1  ;;  %v830_v45 = vsel %vm777_vm2, %v828_v42, %v829_v3 }
  0x9c   : > { %1396 = vmatmul.msk.f32.gmra.mxu3 %vm422_vm1, %v842_v13 }
  0x9d   : > { %v1107_v60 = vadd.f32 %v1727_v52, %v1071_v56  ;;  %1388 = vmatmul.msk.f32.gmra.mxu2 %vm422_vm1, %v822_v53  ;;  %1324 = vmatmul.msk.f32.gmra.mxu0 %vm422_vm1, %v386_v55  ;;  %v850_v53 = vsel %vm777_vm2, %v848_v40, %v849_v41  ;;  %v394_v54 = vsel %vm341_vm0, %v392_v43, %v393_v44  ;;  %v274_v56 = vld [vmem:[%s1518_s28 + $0x100] sm:$0x3] }
  0x9e   : > { %v395_v63 = vrot.slane %v274_v56, 1 }
  0x9f   : > { %v687_v6 = vpop.f32.mrf.mxu1  ;;  %v1139_v9 = vmax.f32 %v1107_v60, 0.0  ;;  %v1748_v10 = vpop.f32.mrf.mxu3  ;;  %v851_v60 = vrot.slane %v1593_v58, 2 }
  0xa0   : > { %v942_v11 = vpop.f32.mrf.mxu2  ;;  %v396_v58 = vsel %vm341_vm0, %v393_v44, %v395_v63 }
  0xa1   : > { %1171 = vst.msk [vmem:[%s1746_s10] sm:$0xff] %vm422_vm1, %v1139_v9  ;;  %v1036_v24 = vadd.f32 %v942_v11, %v685_v61  ;;  %v831_v61 = vrot.slane %v274_v56, 2  ;;  %v852_v8 = vsel %vm777_vm2, %v849_v41, %v851_v60 }
  0xa2   : > { %1357 = vmatmul.msk.f32.gmra.mxu1 %vm422_vm1, %v269_v57  ;;  %v510_v14 = vpop.f32.mrf.mxu0 }
  0xa3   : > { %v1072_v16 = vmul.f32 %v1722_v49, %v1036_v24  ;;  %v688_v20 = vadd.f32 %v687_v6, %v510_v14  ;;  %v832_v9 = vsel %vm777_vm2, %v829_v3, %v831_v61 }
  0xa4   : > { %1397 = vmatmul.msk.f32.gmra.mxu3 %vm422_vm1, %v845_v25  ;;  %v275_v25 = vld [vmem:[%s1518_s28 + $0x108] sm:$0xff] }
  0xa5   : > { %v1108_v19 = vadd.f32 %v1727_v52, %v1072_v16  ;;  %1389 = vmatmul.msk.f32.gmra.mxu2 %vm422_vm1, %v825_v12  ;;  %1325 = vmatmul.msk.f32.gmra.mxu0 %vm422_vm1, %v389_v15  ;;  %v276_v12 = vld [vmem:[%s1518_s28 + $0x110] sm:$0xff]  ;;  %v853_v16 = vrot.slane %v1605_v2, 2  ;;  %v397_v22 = vrot.slane %v275_v25, 1 }
  0xa7   : > { %v690_v23 = vpop.f32.mrf.mxu1  ;;  %v1140_v27 = vmax.f32 %v1108_v19, 0.0  ;;  %v1763_v28 = vpop.f32.mrf.mxu3  ;;  %v833_v19 = vrot.slane %v275_v25, 2 }
  0xa8   : > { %v945_v29 = vpop.f32.mrf.mxu2 }
  0xa9   : > { %1172 = vst.msk [vmem:[%s1746_s10 + $0x8] sm:$0xff] %vm422_vm1, %v1140_v27  ;;  %v1037_v30 = vadd.f32 %v945_v29, %v688_v20  ;;  %v834_v20 = vrot.slane %v276_v12, 2 }
  0xaa   : > { %1358 = vmatmul.msk.f32.gmra.mxu1 %vm422_vm1, %v270_v59  ;;  %v513_v33 = vpop.f32.mrf.mxu0 }
  0xab   : > { %v1073_v34 = vmul.f32 %v1722_v49, %v1037_v30  ;;  %v691_v39 = vadd.f32 %v690_v23, %v513_v33  ;;  %v398_v23 = vrot.slane %v276_v12, 1  ;;  %v835_v2 = vsel %vm777_vm2, %v833_v19, %v834_v20 }
  0xac   : > { %1398 = vmatmul.msk.f32.gmra.mxu3 %vm422_vm1, %v847_v31  ;;  %v855_v31 = vsel %vm777_vm2, %v853_v16, %v854_v17 }
  0xad   : > { %v1109_v38 = vadd.f32 %v1727_v52, %v1073_v34  ;;  %1390 = vmatmul.msk.f32.gmra.mxu2 %vm422_vm1, %v827_v32  ;;  %1326 = vmatmul.msk.f32.gmra.mxu0 %vm422_vm1, %v391_v37  ;;  %v399_v32 = vsel %vm341_vm0, %v397_v22, %v398_v23  ;;  %v277_v37 = vld [vmem:[%s1518_s28 + $0x118] sm:$0x3] }
  0xae   : > { %v400_v40 = vrot.slane %v277_v37, 1 }
  0xaf   : > { %v693_v4 = vpop.f32.mrf.mxu1  ;;  %v1141_v47 = vmax.f32 %v1109_v38, 0.0  ;;  %v1780_v50 = vpop.f32.mrf.mxu3  ;;  %v836_v38 = vrot.slane %v277_v37, 2 }
  0xb0   : > { %v948_v51 = vpop.f32.mrf.mxu2 }
  0xb1   : > { %1173 = vst.msk [vmem:[%s1746_s10 + $0x10] sm:$0xff] %vm422_vm1, %v1141_v47  ;;  %v1038_v13 = vadd.f32 %v948_v51, %v691_v39  ;;  %v837_v44 = vsel %vm777_vm2, %v834_v20, %v836_v38 }
  0xb2   : > { %1359 = vmatmul.msk.f32.gmra.mxu1 %vm422_vm1, %v272_v35  ;;  %v516_v46 = vpop.f32.mrf.mxu0 }
  0xb3   : > { %v1074_v55 = vmul.f32 %v1722_v49, %v1038_v13  ;;  %v694_v59 = vadd.f32 %v693_v4, %v516_v46 }
  0xb4   : > { %1399 = vmatmul.msk.f32.gmra.mxu3 %vm422_vm1, %v850_v53 }
  0xb5   : > { %v1110_v57 = vadd.f32 %v1727_v52, %v1074_v55  ;;  %1391 = vmatmul.msk.f32.gmra.mxu2 %vm422_vm1, %v830_v45  ;;  %1327 = vmatmul.msk.f32.gmra.mxu0 %vm422_vm1, %v394_v54 }
  0xb7   : > { %v696_v62 = vpop.f32.mrf.mxu1  ;;  %v1142_v0 = vmax.f32 %v1110_v57, 0.0  ;;  %v1795_v1 = vpop.f32.mrf.mxu3 }
  0xb8   : > { %v951_v6 = vpop.f32.mrf.mxu2 }
  0xb9   : > { %1174 = vst.msk [vmem:[%s1746_s10 + $0x18] sm:$0xff] %vm422_vm1, %v1142_v0  ;;  %v1039_v7 = vadd.f32 %v951_v6, %v694_v59 }
  0xba   : > { %1360 = vmatmul.msk.f32.gmra.mxu1 %vm422_vm1, %v273_v36  ;;  %v519_v11 = vpop.f32.mrf.mxu0  ;;  %v856_v36 = vrot.slane %v1622_v18, 2  ;;  %v401_v18 = vsel %vm341_vm0, %v398_v23, %v400_v40 }
  0xbb   : > { %v1075_v24 = vmul.f32 %v1722_v49, %v1039_v7  ;;  %v697_v15 = vadd.f32 %v696_v62, %v519_v11 }
  0xbc   : > { %1400 = vmatmul.msk.f32.gmra.mxu3 %vm422_vm1, %v852_v8  ;;  %v857_v43 = vsel %vm777_vm2, %v854_v17, %v856_v36 }
  0xbd   : > { %v1111_v14 = vadd.f32 %v1727_v52, %v1075_v24  ;;  %1392 = vmatmul.msk.f32.gmra.mxu2 %vm422_vm1, %v832_v9  ;;  %1328 = vmatmul.msk.f32.gmra.mxu0 %vm422_vm1, %v396_v58 }
  0xbf   : > { %v699_v21 = vpop.f32.mrf.mxu1  ;;  %v1143_v26 = vmax.f32 %v1111_v14, 0.0  ;;  %v1812_v27 = vpop.f32.mrf.mxu3 }
  0xc0   : > { %v954_v29 = vpop.f32.mrf.mxu2 }
  0xc1   : > { %1175 = vst.msk [vmem:[%s1746_s10 + $0x20] sm:$0xff] %vm422_vm1, %v1143_v26  ;;  %v1040_v30 = vadd.f32 %v954_v29, %v697_v15 }
  0xc2   : > { %1361 = vmatmul.msk.f32.gmra.mxu1 %vm422_vm1, %v275_v25  ;;  %v522_v5 = vpop.f32.mrf.mxu0 }
  0xc3   : > { %v1076_v33 = vmul.f32 %v1722_v49, %v1040_v30  ;;  %v700_v35 = vadd.f32 %v699_v21, %v522_v5 }
  0xc4   : > { %1401 = vmatmul.msk.f32.gmra.mxu3 %vm422_vm1, %v855_v31 }
  0xc5   : > { %v1112_v34 = vadd.f32 %v1727_v52, %v1076_v33  ;;  %1393 = vmatmul.msk.f32.gmra.mxu2 %vm422_vm1, %v835_v2  ;;  %1329 = vmatmul.msk.f32.gmra.mxu0 %vm422_vm1, %v399_v32 }
  0xc7   : > { %v702_v39 = vpop.f32.mrf.mxu1  ;;  %v1144_v41 = vmax.f32 %v1112_v34, 0.0  ;;  %v1827_v42 = vpop.f32.mrf.mxu3 }
  0xc8   : > { %v957_v3 = vpop.f32.mrf.mxu2 }
  0xc9   : > { %1176 = vst.msk [vmem:[%s1746_s10 + $0x28] sm:$0xff] %vm422_vm1, %v1144_v41  ;;  %v1041_v4 = vadd.f32 %v957_v3, %v700_v35 }
  0xca   : > { %1362 = vmatmul.msk.f32.gmra.mxu1 %vm422_vm1, %v276_v12  ;;  %v525_v47 = vpop.f32.mrf.mxu0 }
  0xcb   : > { %v1077_v51 = vmul.f32 %v1722_v49, %v1041_v4  ;;  %v703_v53 = vadd.f32 %v702_v39, %v525_v47 }
  0xcc   : > { %1402 = vmatmul.msk.f32.gmra.mxu3 %vm422_vm1, %v857_v43 }
  0xcd   : > { %v1113_v13 = vadd.f32 %v1727_v52, %v1077_v51  ;;  %1394 = vmatmul.msk.f32.gmra.mxu2 %vm422_vm1, %v837_v44  ;;  %1330 = vmatmul.msk.f32.gmra.mxu0 %vm422_vm1, %v401_v18 }
  0xcf   : > { %v705_v45 = vpop.f32.mrf.mxu1  ;;  %v1145_v46 = vmax.f32 %v1113_v13, 0.0  ;;  %v1840_v54 = vpop.f32.mrf.mxu3 }
  0xd0   : > { %v960_v55 = vpop.f32.mrf.mxu2 }
  0xd1   : > { %1177 = vst.msk [vmem:[%s1746_s10 + $0x30] sm:$0xff] %vm422_vm1, %v1145_v46  ;;  %v1042_v56 = vadd.f32 %v960_v55, %v703_v53 }
  0xd2   : > { %v528_v57 = vpop.f32.mrf.mxu0 }
  0xd3   : > { %v1078_v59 = vmul.f32 %v1722_v49, %v1042_v56  ;;  %v706_v61 = vadd.f32 %v705_v45, %v528_v57 }
  0xd5   : > { %v1114_v60 = vadd.f32 %v1727_v52, %v1078_v59 }
  0xd7   : > { %v708_v62 = vpop.f32.mrf.mxu1  ;;  %v1146_v63 = vmax.f32 %v1114_v60, 0.0  ;;  %v1846_v0 = vpop.f32.mrf.mxu3 }
  0xd8   : > { %v963_v6 = vpop.f32.mrf.mxu2 }
  0xd9   : > { %1178 = vst.msk [vmem:[%s1746_s10 + $0x38] sm:$0xff] %vm422_vm1, %v1146_v63  ;;  %v1043_v7 = vadd.f32 %v963_v6, %v706_v61 }
  0xda   : > { %v531_v8 = vpop.f32.mrf.mxu0 }
  0xdb   : > { %v1079_v9 = vmul.f32 %v1722_v49, %v1043_v7  ;;  %v709_v58 = vadd.f32 %v708_v62, %v531_v8 }
  0xdd   : > { %v1115_v11 = vadd.f32 %v1727_v52, %v1079_v9 }
  0xdf   : > { %v711_v24 = vpop.f32.mrf.mxu1  ;;  %v1147_v25 = vmax.f32 %v1115_v11, 0.0  ;;  %v1852_v12 = vpop.f32.mrf.mxu3 }
  0xe0   : > { %v966_v14 = vpop.f32.mrf.mxu2 }
  0xe1   : > { %1179 = vst.msk [vmem:[%s1746_s10 + $0x40] sm:$0xff] %vm422_vm1, %v1147_v25  ;;  %v1044_v15 = vadd.f32 %v966_v14, %v709_v58 }
  0xe2   : > { %v534_v16 = vpop.f32.mrf.mxu0 }
  0xe3   : > { %v1080_v17 = vmul.f32 %v1722_v49, %v1044_v15  ;;  %v712_v20 = vadd.f32 %v711_v24, %v534_v16 }
  0xe5   : > { %v1116_v19 = vadd.f32 %v1727_v52, %v1080_v17 }
  0xe7   : > { %v714_v21 = vpop.f32.mrf.mxu1  ;;  %v1148_v22 = vmax.f32 %v1116_v19, 0.0  ;;  %v1858_v23 = vpop.f32.mrf.mxu3 }
  0xe8   : > { %v969_v26 = vpop.f32.mrf.mxu2 }
  0xe9   : > { %1180 = vst.msk [vmem:[%s1746_s10 + $0x48] sm:$0xff] %vm422_vm1, %v1148_v22  ;;  %v1045_v29 = vadd.f32 %v969_v26, %v712_v20  ;;  %v754_v26 = vadd.f32 %v1846_v0, %v1717_v48  ;;  %v757_v0 = vadd.f32 %v1852_v12, %v1748_v10 }
  0xea   : > { %v537_v30 = vpop.f32.mrf.mxu0 }
  0xeb   : > { %v1081_v31 = vmul.f32 %v1722_v49, %v1045_v29  ;;  %v715_v5 = vadd.f32 %v714_v21, %v537_v30 }
  0xed   : > { %v1117_v2 = vadd.f32 %v1727_v52, %v1081_v31 }
  0xef   : > { %v717_v32 = vpop.f32.mrf.mxu1  ;;  %v1149_v33 = vmax.f32 %v1117_v2, 0.0  ;;  %v1864_v37 = vpop.f32.mrf.mxu3 }
  0xf0   : > { %v972_v34 = vpop.f32.mrf.mxu2 }
  0xf1   : > { %1181 = vst.msk [vmem:[%s1746_s10 + $0x50] sm:$0xff] %vm422_vm1, %v1149_v33  ;;  %v1046_v35 = vadd.f32 %v972_v34, %v715_v5 }
  0xf2   : > { %v540_v36 = vpop.f32.mrf.mxu0 }
  0xf3   : > { %v1082_v38 = vmul.f32 %v1722_v49, %v1046_v35  ;;  %v718_v40 = vadd.f32 %v717_v32, %v540_v36 }
  0xf5   : > { %v1118_v39 = vadd.f32 %v1727_v52, %v1082_v38 }
  0xf7   : > { %v720_v41 = vpop.f32.mrf.mxu1  ;;  %v1150_v3 = vmax.f32 %v1118_v39, 0.0  ;;  %v1870_v4 = vpop.f32.mrf.mxu3 }
  0xf8   : > { %v975_v43 = vpop.f32.mrf.mxu2 }
  0xf9   : > { %1182 = vst.msk [vmem:[%s1746_s10 + $0x58] sm:$0xff] %vm422_vm1, %v1150_v3  ;;  %v1047_v44 = vadd.f32 %v975_v43, %v718_v40 }
  0xfa   : > { %v543_v47 = vpop.f32.mrf.mxu0 }
  0xfb   : > { %v1083_v18 = vmul.f32 %v1722_v49, %v1047_v44  ;;  %v721_v13 = vadd.f32 %v720_v41, %v543_v47 }
  0xfd   : > { %v1119_v51 = vadd.f32 %v1727_v52, %v1083_v18 }
  0xff   : > { %v723_v53 = vpop.f32.mrf.mxu1  ;;  %v1151_v45 = vmax.f32 %v1119_v51, 0.0  ;;  %v1876_v46 = vpop.f32.mrf.mxu3 }
 0x100   : > { %v978_v55 = vpop.f32.mrf.mxu2 }
 0x101   : > { %1183 = vst.msk [vmem:[%s1746_s10 + $0x60] sm:$0xff] %vm422_vm1, %v1151_v45  ;;  %v1048_v56 = vadd.f32 %v978_v55, %v721_v13  ;;  %v760_v45 = vadd.f32 %v1858_v23, %v1763_v28 }
 0x102   : > { %v546_v57 = vpop.f32.mrf.mxu0 }
 0x103   : > { %v1084_v59 = vmul.f32 %v1722_v49, %v1048_v56  ;;  %v724_v61 = vadd.f32 %v723_v53, %v546_v57 }
 0x105   : > { %v1120_v60 = vadd.f32 %v1727_v52, %v1084_v59 }
 0x107   : > { %v726_v62 = vpop.f32.mrf.mxu1  ;;  %v1152_v63 = vmax.f32 %v1120_v60, 0.0  ;;  %v1882_v6 = vpop.f32.mrf.mxu3 }
 0x108   : > { %v981_v7 = vpop.f32.mrf.mxu2 }
 0x109   : > { %1184 = vst.msk [vmem:[%s1746_s10 + $0x68] sm:$0xff] %vm422_vm1, %v1152_v63  ;;  %v1049_v8 = vadd.f32 %v981_v7, %v724_v61 }
 0x10a   : > { %v549_v9 = vpop.f32.mrf.mxu0 }
 0x10b   : > { %v1085_v11 = vmul.f32 %v1722_v49, %v1049_v8  ;;  %v727_v24 = vadd.f32 %v726_v62, %v549_v9 }
 0x10d   : > { %v1121_v58 = vadd.f32 %v1727_v52, %v1085_v11  ;;  %v763_v11 = vadd.f32 %v1864_v37, %v1780_v50 }
 0x10f   : > { %v729_v25 = vpop.f32.mrf.mxu1  ;;  %v1153_v14 = vmax.f32 %v1121_v58, 0.0  ;;  %v1888_v15 = vpop.f32.mrf.mxu3 }
 0x110   : > { %v984_v16 = vpop.f32.mrf.mxu2 }
 0x111   : > { %1185 = vst.msk [vmem:[%s1746_s10 + $0x70] sm:$0xff] %vm422_vm1, %v1153_v14  ;;  %v1050_v17 = vadd.f32 %v984_v16, %v727_v24 }
 0x112   : > { %v552_v19 = vpop.f32.mrf.mxu0 }
 0x113   : > { %v1086_v20 = vmul.f32 %v1722_v49, %v1050_v17  ;;  %v730_v22 = vadd.f32 %v729_v25, %v552_v19 }
 0x115   : > { %v1122_v21 = vadd.f32 %v1727_v52, %v1086_v20 }
 0x117   : > { %v732_v29 = vpop.f32.mrf.mxu1  ;;  %v1154_v30 = vmax.f32 %v1122_v21, 0.0  ;;  %v1011_v31 = vpop.f32.mrf.mxu3 }
 0x118   : > { %v987_v2 = vpop.f32.mrf.mxu2  ;;  %v1059_v5 = vadd.f32 %v1011_v31, %v754_v26 }
 0x119   : > { %1186 = vst.msk [vmem:[%s1746_s10 + $0x78] sm:$0xff] %vm422_vm1, %v1154_v30  ;;  %v1051_v32 = vadd.f32 %v987_v2, %v730_v22 }
 0x11a   : > { %v1095_v33 = vmul.f32 %v1722_v49, %v1059_v5  ;;  %v555_v34 = vpop.f32.mrf.mxu0 }
 0x11b   : > { %v1087_v35 = vmul.f32 %v1722_v49, %v1051_v32  ;;  %v733_v48 = vadd.f32 %v732_v29, %v555_v34  ;;  %v766_v29 = vadd.f32 %v1870_v4, %v1795_v1 }
 0x11c   : > { %v1131_v36 = vadd.f32 %v1727_v52, %v1095_v33 }
 0x11d   : > { %v1123_v38 = vadd.f32 %v1727_v52, %v1087_v35 }
 0x11e   : > { %v1163_v39 = vmax.f32 %v1131_v36, 0.0 }
 0x11f   : > { %v735_v40 = vpop.f32.mrf.mxu1  ;;  %v1155_v41 = vmax.f32 %v1123_v38, 0.0  ;;  %v1014_v3 = vpop.f32.mrf.mxu3 }
 0x120   : > { %1195 = vst.msk [vmem:[%s1746_s10 + $0xc0] sm:$0xff] %vm422_vm1, %v1163_v39  ;;  %v990_v43 = vpop.f32.mrf.mxu2  ;;  %v1060_v44 = vadd.f32 %v1014_v3, %v757_v0  ;;  %v769_v0 = vadd.f32 %v1876_v46, %v1812_v27 }
 0x121   : > { %1187 = vst.msk [vmem:[%s1746_s10 + $0x80] sm:$0xff] %vm422_vm1, %v1155_v41  ;;  %v1052_v47 = vadd.f32 %v990_v43, %v733_v48 }
 0x122   : > { %v1096_v18 = vmul.f32 %v1722_v49, %v1060_v44  ;;  %v558_v51 = vpop.f32.mrf.mxu0 }
 0x123   : > { %v1088_v13 = vmul.f32 %v1722_v49, %v1052_v47  ;;  %v736_v53 = vadd.f32 %v735_v40, %v558_v51 }
 0x124   : > { %v1132_v10 = vadd.f32 %v1727_v52, %v1096_v18 }
 0x125   : > { %v1124_v12 = vadd.f32 %v1727_v52, %v1088_v13 }
 0x126   : > { %v1164_v55 = vmax.f32 %v1132_v10, 0.0 }
 0x127   : > { %v738_v56 = vpop.f32.mrf.mxu1  ;;  %v1156_v57 = vmax.f32 %v1124_v12, 0.0  ;;  %v1017_v59 = vpop.f32.mrf.mxu3  ;;  %v772_v12 = vadd.f32 %v1882_v6, %v1827_v42 }
 0x128   : > { %1196 = vst.msk [vmem:[%s1746_s10 + $0xc8] sm:$0xff] %vm422_vm1, %v1164_v55  ;;  %v993_v60 = vpop.f32.mrf.mxu2  ;;  %v1061_v61 = vadd.f32 %v1017_v59, %v760_v45 }
 0x129   : > { %1188 = vst.msk [vmem:[%s1746_s10 + $0x88] sm:$0xff] %vm422_vm1, %v1156_v57  ;;  %v1053_v62 = vadd.f32 %v993_v60, %v736_v53 }
 0x12a   : > { %v1097_v63 = vmul.f32 %v1722_v49, %v1061_v61  ;;  %v561_v7 = vpop.f32.mrf.mxu0 }
 0x12b   : > { %v1089_v8 = vmul.f32 %v1722_v49, %v1053_v62  ;;  %v739_v9 = vadd.f32 %v738_v56, %v561_v7 }
 0x12c   : > { %v1133_v28 = vadd.f32 %v1727_v52, %v1097_v63 }
 0x12d   : > { %v1125_v23 = vadd.f32 %v1727_v52, %v1089_v8  ;;  %v775_v8 = vadd.f32 %v1888_v15, %v1840_v54 }
 0x12e   : > { %v1165_v58 = vmax.f32 %v1133_v28, 0.0 }
 0x12f   : > { %v741_v24 = vpop.f32.mrf.mxu1  ;;  %v1157_v25 = vmax.f32 %v1125_v23, 0.0  ;;  %v1020_v14 = vpop.f32.mrf.mxu3 }
 0x130   : > { %1197 = vst.msk [vmem:[%s1746_s10 + $0xd0] sm:$0xff] %vm422_vm1, %v1165_v58  ;;  %v996_v16 = vpop.f32.mrf.mxu2  ;;  %v1062_v17 = vadd.f32 %v1020_v14, %v763_v11 }
 0x131   : > { %1189 = vst.msk [vmem:[%s1746_s10 + $0x90] sm:$0xff] %vm422_vm1, %v1157_v25  ;;  %v1054_v19 = vadd.f32 %v996_v16, %v739_v9 }
 0x132   : > { %v1098_v20 = vmul.f32 %v1722_v49, %v1062_v17  ;;  %v564_v21 = vpop.f32.mrf.mxu0 }
 0x133   : > { %v1090_v22 = vmul.f32 %v1722_v49, %v1054_v19  ;;  %v742_v26 = vadd.f32 %v741_v24, %v564_v21 }
 0x134   : > { %v1134_v50 = vadd.f32 %v1727_v52, %v1098_v20 }
 0x135   : > { %v1126_v37 = vadd.f32 %v1727_v52, %v1090_v22 }
 0x136   : > { %v1166_v30 = vmax.f32 %v1134_v50, 0.0 }
 0x137   : > { %v744_v31 = vpop.f32.mrf.mxu1  ;;  %v1158_v2 = vmax.f32 %v1126_v37, 0.0  ;;  %v1023_v5 = vpop.f32.mrf.mxu3 }
 0x138   : > { %1198 = vst.msk [vmem:[%s1746_s10 + $0xd8] sm:$0xff] %vm422_vm1, %v1166_v30  ;;  %v999_v32 = vpop.f32.mrf.mxu2  ;;  %v1063_v33 = vadd.f32 %v1023_v5, %v766_v29 }
 0x139   : > { %1190 = vst.msk [vmem:[%s1746_s10 + $0x98] sm:$0xff] %vm422_vm1, %v1158_v2  ;;  %v1055_v34 = vadd.f32 %v999_v32, %v742_v26 }
 0x13a   : > { %v1099_v35 = vmul.f32 %v1722_v49, %v1063_v33  ;;  %v567_v36 = vpop.f32.mrf.mxu0 }
 0x13b   : > { %v1091_v38 = vmul.f32 %v1722_v49, %v1055_v34  ;;  %v745_v48 = vadd.f32 %v744_v31, %v567_v36 }
 0x13c   : > { %v1135_v1 = vadd.f32 %v1727_v52, %v1099_v35 }
 0x13d   : > { %v1127_v4 = vadd.f32 %v1727_v52, %v1091_v38 }
 0x13e   : > { %v1167_v39 = vmax.f32 %v1135_v1, 0.0 }
 0x13f   : > { %v1159_v40 = vmax.f32 %v1127_v4, 0.0  ;;  %v1026_v41 = vpop.f32.mrf.mxu3  ;;  %v747_v44 = vpop.f32.mrf.mxu1 }
 0x140   : > { %1199 = vst.msk [vmem:[%s1746_s10 + $0xe0] sm:$0xff] %vm422_vm1, %v1167_v39  ;;  %v1002_v3 = vpop.f32.mrf.mxu2  ;;  %v1064_v43 = vadd.f32 %v1026_v41, %v769_v0 }
 0x141   : > { %1191 = vst.msk [vmem:[%s1746_s10 + $0xa0] sm:$0xff] %vm422_vm1, %v1159_v40  ;;  %v1056_v47 = vadd.f32 %v1002_v3, %v745_v48 }
 0x142   : > { %v1100_v18 = vmul.f32 %v1722_v49, %v1064_v43  ;;  %v570_v51 = vpop.f32.mrf.mxu0 }
 0x143   : > { %v1092_v13 = vmul.f32 %v1722_v49, %v1056_v47  ;;  %v748_v10 = vadd.f32 %v747_v44, %v570_v51 }
 0x144   : > { %v1136_v27 = vadd.f32 %v1727_v52, %v1100_v18 }
 0x145   : > { %v1128_v46 = vadd.f32 %v1727_v52, %v1092_v13 }
 0x146   : > { %v1168_v53 = vmax.f32 %v1136_v27, 0.0 }
 0x147   : > { %v1160_v45 = vmax.f32 %v1128_v46, 0.0  ;;  %v1029_v55 = vpop.f32.mrf.mxu3  ;;  %v750_v62 = vpop.f32.mrf.mxu1 }
 0x148   : > { %1200 = vst.msk [vmem:[%s1746_s10 + $0xe8] sm:$0xff] %vm422_vm1, %v1168_v53  ;;  %v1005_v56 = vpop.f32.mrf.mxu2  ;;  %v1065_v57 = vadd.f32 %v1029_v55, %v772_v12 }
 0x149   : > { %1192 = vst.msk [vmem:[%s1746_s10 + $0xa8] sm:$0xff] %vm422_vm1, %v1160_v45  ;;  %v1057_v59 = vadd.f32 %v1005_v56, %v748_v10 }
 0x14a   : > { %v1101_v60 = vmul.f32 %v1722_v49, %v1065_v57  ;;  %v573_v61 = vpop.f32.mrf.mxu0 }
 0x14b   : > { %v1093_v63 = vmul.f32 %v1722_v49, %v1057_v59  ;;  %v751_v7 = vadd.f32 %v750_v62, %v573_v61 }
 0x14c   : > { %v1137_v42 = vadd.f32 %v1727_v52, %v1101_v60 }
 0x14d   : > { %v1129_v6 = vadd.f32 %v1727_v52, %v1093_v63 }
 0x14e   : > { %v1169_v28 = vmax.f32 %v1137_v42, 0.0 }
 0x14f   : > { %v1161_v23 = vmax.f32 %v1129_v6, 0.0  ;;  %v1032_v9 = vpop.f32.mrf.mxu3 }
 0x150   : > { %1201 = vst.msk [vmem:[%s1746_s10 + $0xf0] sm:$0xff] %vm422_vm1, %v1169_v28  ;;  %v1008_v11 = vpop.f32.mrf.mxu2  ;;  %v1066_v58 = vadd.f32 %v1032_v9, %v775_v8 }
 0x151   : > { %1193 = vst.msk [vmem:[%s1746_s10 + $0xb0] sm:$0xff] %vm422_vm1, %v1161_v23  ;;  %v1058_v24 = vadd.f32 %v1008_v11, %v751_v7 }
 0x152   : > { %v1102_v25 = vmul.f32 %v1722_v49, %v1066_v58 }
 0x153   : > { %v1094_v14 = vmul.f32 %v1722_v49, %v1058_v24 }
 0x154   : > { %v1138_v16 = vadd.f32 %v1727_v52, %v1102_v25 }
 0x155   : > { %v1130_v17 = vadd.f32 %v1727_v52, %v1094_v14 }
 0x156   : > { %v1170_v54 = vmax.f32 %v1138_v16, 0.0 }
 0x157   : > { %v1162_v15 = vmax.f32 %v1130_v17, 0.0 }
 0x158   : > { %1202 = vst.msk [vmem:[%s1746_s10 + $0xf8] sm:$0xff] %vm422_vm1, %v1170_v54 }
 0x159   : > { %1194 = vst.msk [vmem:[%s1746_s10 + $0xb8] sm:$0xff] %vm422_vm1, %v1162_v15 }
 0x15a PF: > { %s14_s17 = sadd.s32 1, %s1458_s17   ;;  %s1990_s15 = smov %s1454_s16 }
 0x15b   : > { %p11_p5 = scmp.ge.s32.totalorder %s14_s17, 4   ;;  %s1991_s16 = smov %s1993_s18 }
 0x15d   :  { %13 = sbr.rel (!%p11_p5) target bundleno = 2 (0x2), region = 66 }

// kernel: gc_bn_relu_forward.4
= control target key start
LH: loop header
LB: loop body
LE: loop exit
PB: predicated region body
PF: predicated region fallthrough
CT: control target
= control target key end

     0   :  { %s1179_s15 = smov 0   ;;  %s1181_s16 = smov 0   ;;  %s1621_s0 = inlined_call_operand.vmem [shape: f32[2,18,16,4], index: 0, kind: input, shape index: {}]   ;;  %s1622_s1 = inlined_call_operand.vmem [shape: f32[3,4,8], index: 1, kind: input, shape index: {}]   ;;  %s1623_s2 = inlined_call_operand.vmem [shape: f32[1,8], index: 2, kind: input, shape index: {}]   ;;  %s1624_s3 = inlined_call_operand.vmem [shape: f32[1,8], index: 3, kind: input, shape index: {}]   ;;  %s1625_s4 = inlined_call_operand.vmem [shape: f32[2,16,16,8], index: 4, kind: output, shape index: {}]  }
   0x1   :  { %s1183_s17 = smov 0  }
   0x2 LB: > { %s26_s18 = sadd.s32 1, %s1148_s16  ;;  %p994_p0 = scmp.ge.s32.totalorder %s1152_s17, 1  ;;  %s1152_s17 = sphi %s1183_s17, %s14_s17   ;;  %s1148_s16 = sphi %s1181_s16, %s1627_s16   ;;  %s1144_s15 = sphi %s1179_s15, %s1626_s15  }
   0x3   : > { %p28_p1 = scmp.ge.s32.totalorder %s26_s18, 2  ;;  %p183_p2 = scmp.lt.s32.totalorder %s1152_s17, 3 }
   0x5   : > { %s1629_s18 = smov (%p28_p1, %s26_s18), 0  ;;  %p184_p3 = pnand %p994_p0, %p183_p2 }
   0x6   : > { %p218_p4 = scmp.lt.s32.totalorder (!%p184_p3), %s1144_s15, 1 }
   0x7   : > { %187 = sbr.rel (%p184_p3) target bundleno = 343 (0x157), region = 36 }
   0xc   : > { %v274_v0 = vld [vmem:[%s1622_s1 + $0x4] sm:$0xf]  ;;  %vm373_vm0 = vcmask 1043456   ;;  %v275_v1 = vld [vmem:[%s1622_s1 + $0x8] sm:$0xf]  ;;  %s1631_s15 = smov (!%p218_p4, %s1144_s15), 1 }
   0xd   : > { %1100 = vmatpush.msk.msra.mxu3 %vm373_vm0, %v274_v0  ;;  %1064 = vmatpush.msk.msra.mxu2 %vm373_vm0, %v275_v1  ;;  %v273_v2 = vld [vmem:[%s1622_s1] sm:$0xf]  ;;  %s1103_s25 = smul.u32 288, %s1631_s15  ;;  %vm276_vm1 = vcmask 31744   ;;  %s1099_s7 = sshll.u32 %s1631_s15, 8  ;;  %vm870_vm2 = vcmask 64512  }
   0xe   : > { %998 = vmatpush.msk.msra.mxu0 %vm373_vm0, %v274_v0  ;;  %1031 = vmatpush.msk.msra.mxu1 %vm373_vm0, %v273_v2  ;;  %v1362_v37 = vld [vmem:[%s1623_s2] ss:$0 sm:$0xff]  ;;  %s1384_s10 = scalar_lea.vmem %s1625_s4, %s1099_s7 }
   0xf   : > { %1101 = vmatpush.msk.msrb.mxu3 %vm373_vm0, %v273_v2  ;;  %s1217_s28 = scalar_lea.vmem %s1621_s0, %s1103_s25  ;;  %v1369_v41 = vld [vmem:[%s1624_s3] ss:$0 sm:$0xff] }
  0x10   : > { %v1220_v3 = vld [vmem:[%s1217_s28 + $0xd0] sm:$0xff]  ;;  %v241_v4 = vld [vmem:[%s1217_s28 + $0x20] sm:$0xff]  ;;  %v1232_v7 = vld [vmem:[%s1217_s28 + $0xd8] sm:$0xff] }
  0x11   : > { %v239_v5 = vld [vmem:[%s1217_s28 + $0x10] sm:$0xff]  ;;  %1023 = vmatmul.msk.f32.vlgmr.msra.gmra.mxu3 %vm276_vm1, %v1220_v3  ;;  %1065 = vmatmul.msk.f32.vlgmr.msra.gmra.mxu2 %vm276_vm1, %v241_v4  ;;  %v237_v6 = vld [vmem:[%s1217_s28] sm:$0xff]  ;;  %v242_v8 = vld [vmem:[%s1217_s28 + $0x28] sm:$0xff] }
  0x12   : > { %999 = vmatmul.msk.f32.vlgmr.msra.gmra.mxu0 %vm276_vm1, %v239_v5  ;;  %1032 = vmatmul.msk.f32.vlgmr.msra.gmra.mxu1 %vm276_vm1, %v237_v6  ;;  %v240_v9 = vld [vmem:[%s1217_s28 + $0x18] sm:$0xff]  ;;  %v238_v10 = vld [vmem:[%s1217_s28 + $0x8] sm:$0xff]  ;;  %v1243_v11 = vld [vmem:[%s1217_s28 + $0xe0] sm:$0xff] }
  0x13   : > { %1102 = vmatpush.msk.msra.mxu3 %vm373_vm0, %v275_v1  ;;  %v243_v12 = vld [vmem:[%s1217_s28 + $0x30] sm:$0xff]  ;;  %v1252_v13 = vld [vmem:[%s1217_s28 + $0xe8] sm:$0xff]  ;;  %v244_v14 = vld [vmem:[%s1217_s28 + $0x38] sm:$0xff] }
  0x14   : > { %v1261_v15 = vld [vmem:[%s1217_s28 + $0xf0] sm:$0xff]  ;;  %v245_v16 = vld [vmem:[%s1217_s28 + $0x40] sm:$0xff]  ;;  %v1270_v17 = vld [vmem:[%s1217_s28 + $0xf8] sm:$0xff] }
  0x15   : > { %v246_v18 = vld [vmem:[%s1217_s28 + $0x48] sm:$0xff]  ;;  %v1279_v19 = vld [vmem:[%s1217_s28 + $0x100] sm:$0xff]  ;;  %v247_v20 = vld [vmem:[%s1217_s28 + $0x50] sm:$0xff] }
  0x16   : > { %v1288_v21 = vld [vmem:[%s1217_s28 + $0x108] sm:$0xff]  ;;  %v248_v22 = vld [vmem:[%s1217_s28 + $0x58] sm:$0xff]  ;;  %v1297_v23 = vld [vmem:[%s1217_s28 + $0xc0] sm:$0xff] }
  0x17   : > { %v249_v24 = vld [vmem:[%s1217_s28 + $0x60] sm:$0xff]  ;;  %v1306_v25 = vld [vmem:[%s1217_s28 + $0xc8] sm:$0xff]  ;;  %v251_v27 = vld [vmem:[%s1217_s28 + $0x70] sm:$0xff] }
  0x18   : > { %v250_v26 = vld [vmem:[%s1217_s28 + $0x68] sm:$0xff]  ;;  %v252_v28 = vld [vmem:[%s1217_s28 + $0x78] sm:$0xff]  ;;  %v253_v29 = vld [vmem:[%s1217_s28 + $0x80] sm:$0xff] }
  0x19   : > { %1024 = vmatmul.msk.f32.gmra.mxu3 %vm276_vm1, %v1232_v7  ;;  %1066 = vmatmul.msk.f32.gmra.mxu2 %vm276_vm1, %v242_v8  ;;  %v254_v30 = vld [vmem:[%s1217_s28 + $0x88] sm:$0xff]  ;;  %v255_v31 = vld [vmem:[%s1217_s28 + $0x90] sm:$0xff]  ;;  %v256_v32 = vld [vmem:[%s1217_s28 + $0x98] sm:$0xff] }
  0x1a   : > { %1000 = vmatmul.msk.f32.gmra.mxu0 %vm276_vm1, %v240_v9  ;;  %1033 = vmatmul.msk.f32.gmra.mxu1 %vm276_vm1, %v238_v10  ;;  %v1351_v33 = vld [vmem:[%s1217_s28 + $0xa0] sm:$0xff]  ;;  %v1372_v42 = vld [vmem:[%s1217_s28 + $0xa8] sm:$0xff]  ;;  %v1393_v52 = vld [vmem:[%s1217_s28 + $0xb0] sm:$0xff] }
  0x1b   : > { %v1409_v62 = vld [vmem:[%s1217_s28 + $0xb8] sm:$0xff] }
  0x21   : > { %1025 = vmatmul.msk.f32.gmra.mxu3 %vm276_vm1, %v1243_v11  ;;  %1067 = vmatmul.msk.f32.gmra.mxu2 %vm276_vm1, %v243_v12 }
  0x22   : > { %1001 = vmatmul.msk.f32.gmra.mxu0 %vm276_vm1, %v241_v4  ;;  %1034 = vmatmul.msk.f32.gmra.mxu1 %vm276_vm1, %v239_v5 }
  0x29   : > { %1026 = vmatmul.msk.f32.gmra.mxu3 %vm276_vm1, %v1252_v13  ;;  %1068 = vmatmul.msk.f32.gmra.mxu2 %vm276_vm1, %v244_v14 }
  0x2a   : > { %1002 = vmatmul.msk.f32.gmra.mxu0 %vm276_vm1, %v242_v8  ;;  %1035 = vmatmul.msk.f32.gmra.mxu1 %vm276_vm1, %v240_v9 }
  0x31   : > { %1027 = vmatmul.msk.f32.gmra.mxu3 %vm276_vm1, %v1261_v15  ;;  %1069 = vmatmul.msk.f32.gmra.mxu2 %vm276_vm1, %v245_v16 }
  0x32   : > { %1003 = vmatmul.msk.f32.gmra.mxu0 %vm276_vm1, %v243_v12  ;;  %1036 = vmatmul.msk.f32.gmra.mxu1 %vm276_vm1, %v241_v4 }
  0x39   : > { %1028 = vmatmul.msk.f32.gmra.mxu3 %vm276_vm1, %v1270_v17  ;;  %1070 = vmatmul.msk.f32.gmra.mxu2 %vm276_vm1, %v246_v18 }
  0x3a   : > { %1004 = vmatmul.msk.f32.gmra.mxu0 %vm276_vm1, %v244_v14  ;;  %1037 = vmatmul.msk.f32.gmra.mxu1 %vm276_vm1, %v242_v8 }
  0x41   : > { %1029 = vmatmul.msk.f32.gmra.mxu3 %vm276_vm1, %v1279_v19  ;;  %1071 = vmatmul.msk.f32.gmra.mxu2 %vm276_vm1, %v247_v20 }
  0x42   : > { %1005 = vmatmul.msk.f32.gmra.mxu0 %vm276_vm1, %v245_v16  ;;  %1038 = vmatmul.msk.f32.gmra.mxu1 %vm276_vm1, %v243_v12 }
  0x49   : > { %1030 = vmatmul.msk.f32.gmra.mxu3 %vm276_vm1, %v1288_v21  ;;  %1072 = vmatmul.msk.f32.gmra.mxu2 %vm276_vm1, %v248_v22 }
  0x4a   : > { %1006 = vmatmul.msk.f32.gmra.mxu0 %vm276_vm1, %v246_v18  ;;  %1039 = vmatmul.msk.f32.gmra.mxu1 %vm276_vm1, %v244_v14 }
  0x51   : > { %1056 = vmatmul.msk.f32.vlgmr.msrb.gmra.mxu3 %vm276_vm1, %v1297_v23  ;;  %1073 = vmatmul.msk.f32.gmra.mxu2 %vm276_vm1, %v249_v24 }
  0x52   : > { %1007 = vmatmul.msk.f32.gmra.mxu0 %vm276_vm1, %v247_v20  ;;  %1040 = vmatmul.msk.f32.gmra.mxu1 %vm276_vm1, %v245_v16 }
  0x59   : > { %1057 = vmatmul.msk.f32.gmra.mxu3 %vm276_vm1, %v1306_v25  ;;  %1074 = vmatmul.msk.f32.gmra.mxu2 %vm276_vm1, %v250_v26 }
  0x5a   : > { %1008 = vmatmul.msk.f32.gmra.mxu0 %vm276_vm1, %v248_v22  ;;  %1041 = vmatmul.msk.f32.gmra.mxu1 %vm276_vm1, %v246_v18 }
  0x61   : > { %1058 = vmatmul.msk.f32.gmra.mxu3 %vm276_vm1, %v1220_v3  ;;  %1075 = vmatmul.msk.f32.gmra.mxu2 %vm276_vm1, %v251_v27 }
  0x62   : > { %1009 = vmatmul.msk.f32.gmra.mxu0 %vm276_vm1, %v249_v24  ;;  %1042 = vmatmul.msk.f32.gmra.mxu1 %vm276_vm1, %v247_v20 }
  0x69   : > { %1059 = vmatmul.msk.f32.gmra.mxu3 %vm276_vm1, %v1232_v7  ;;  %1076 = vmatmul.msk.f32.gmra.mxu2 %vm276_vm1, %v252_v28 }
  0x6a   : > { %1010 = vmatmul.msk.f32.gmra.mxu0 %vm276_vm1, %v250_v26  ;;  %1043 = vmatmul.msk.f32.gmra.mxu1 %vm276_vm1, %v248_v22 }
  0x71   : > { %1060 = vmatmul.msk.f32.gmra.mxu3 %vm276_vm1, %v1243_v11  ;;  %1077 = vmatmul.msk.f32.gmra.mxu2 %vm276_vm1, %v253_v29 }
  0x72   : > { %1011 = vmatmul.msk.f32.gmra.mxu0 %vm276_vm1, %v251_v27  ;;  %1044 = vmatmul.msk.f32.gmra.mxu1 %vm276_vm1, %v249_v24 }
  0x79   : > { %1061 = vmatmul.msk.f32.gmra.mxu3 %vm276_vm1, %v1252_v13  ;;  %1078 = vmatmul.msk.f32.gmra.mxu2 %vm276_vm1, %v254_v30 }
  0x7a   : > { %1012 = vmatmul.msk.f32.gmra.mxu0 %vm276_vm1, %v252_v28  ;;  %1045 = vmatmul.msk.f32.gmra.mxu1 %vm276_vm1, %v250_v26 }
  0x81   : > { %1062 = vmatmul.msk.f32.gmra.mxu3 %vm276_vm1, %v1261_v15  ;;  %1079 = vmatmul.msk.f32.gmra.mxu2 %vm276_vm1, %v255_v31 }
  0x82   : > { %1013 = vmatmul.msk.f32.gmra.mxu0 %vm276_vm1, %v253_v29  ;;  %1046 = vmatmul.msk.f32.gmra.mxu1 %vm276_vm1, %v251_v27 }
  0x89   : > { %1063 = vmatmul.msk.f32.gmra.mxu3 %vm276_vm1, %v1270_v17  ;;  %1080 = vmatmul.msk.f32.gmra.mxu2 %vm276_vm1, %v256_v32 }
  0x8a   : > { %1014 = vmatmul.msk.f32.gmra.mxu0 %vm276_vm1, %v254_v30  ;;  %1047 = vmatmul.msk.f32.gmra.mxu1 %vm276_vm1, %v252_v28 }
  0x8f   : > { %v394_v34 = vpop.f32.mrf.mxu0  ;;  %v516_v35 = vpop.f32.mrf.mxu1 }
  0x90   : > { %v517_v36 = vadd.f32 %v516_v35, %v394_v34 }
  0x91   : > { %1081 = vmatmul.msk.f32.gmra.mxu2 %vm276_vm1, %v1351_v33  ;;  %1089 = vmatmul.msk.f32.vlgmr.msra.gmra.mxu3 %vm276_vm1, %v1243_v11 }
  0x92   : > { %1015 = vmatmul.msk.f32.gmra.mxu0 %vm276_vm1, %v255_v31  ;;  %1048 = vmatmul.msk.f32.gmra.mxu1 %vm276_vm1, %v253_v29 }
  0x94   : > { %v1364_v38 = vpop.f32.mrf.mxu3  ;;  %v638_v39 = vpop.f32.mrf.mxu2 }
  0x95   : > { %v734_v40 = vadd.f32 %v638_v39, %v517_v36 }
  0x97   : > { %v770_v43 = vmul.f32 %v1362_v37, %v734_v40  ;;  %v397_v44 = vpop.f32.mrf.mxu0  ;;  %v519_v45 = vpop.f32.mrf.mxu1 }
  0x98   : > { %v520_v47 = vadd.f32 %v519_v45, %v397_v44 }
  0x99   : > { %v806_v46 = vadd.f32 %v1369_v41, %v770_v43  ;;  %1082 = vmatmul.msk.f32.gmra.mxu2 %vm276_vm1, %v1372_v42  ;;  %1090 = vmatmul.msk.f32.gmra.mxu3 %vm276_vm1, %v1252_v13  ;;  %v272_v43 = vld [vmem:[%s1217_s28 + $0x118] sm:$0xff] }
  0x9a   : > { %1016 = vmatmul.msk.f32.gmra.mxu0 %vm276_vm1, %v256_v32  ;;  %1049 = vmatmul.msk.f32.gmra.mxu1 %vm276_vm1, %v254_v30 }
  0x9b   : > { %v838_v48 = vmax.f32 %v806_v46, 0.0 }
  0x9c   : > { %v1388_v49 = vpop.f32.mrf.mxu3  ;;  %v641_v50 = vpop.f32.mrf.mxu2 }
  0x9d   : > { %871 = vst.msk [vmem:[%s1384_s10] sm:$0xff] %vm870_vm2, %v838_v48  ;;  %v735_v51 = vadd.f32 %v641_v50, %v520_v47 }
  0x9f   : > { %v771_v53 = vmul.f32 %v1362_v37, %v735_v51  ;;  %v400_v54 = vpop.f32.mrf.mxu0  ;;  %v522_v55 = vpop.f32.mrf.mxu1 }
  0xa0   : > { %v523_v57 = vadd.f32 %v522_v55, %v400_v54 }
  0xa1   : > { %v807_v56 = vadd.f32 %v1369_v41, %v771_v53  ;;  %1083 = vmatmul.msk.f32.gmra.mxu2 %vm276_vm1, %v1393_v52  ;;  %1091 = vmatmul.msk.f32.gmra.mxu3 %vm276_vm1, %v1261_v15 }
  0xa2   : > { %1017 = vmatmul.msk.f32.gmra.mxu0 %vm276_vm1, %v1351_v33  ;;  %1050 = vmatmul.msk.f32.gmra.mxu1 %vm276_vm1, %v255_v31  ;;  %v271_v31 = vld [vmem:[%s1217_s28 + $0x110] sm:$0xff] }
  0xa3   : > { %v839_v58 = vmax.f32 %v807_v56, 0.0 }
  0xa4   : > { %v1404_v59 = vpop.f32.mrf.mxu3  ;;  %v644_v60 = vpop.f32.mrf.mxu2 }
  0xa5   : > { %872 = vst.msk [vmem:[%s1384_s10 + $0x8] sm:$0xff] %vm870_vm2, %v839_v58  ;;  %v736_v61 = vadd.f32 %v644_v60, %v523_v57 }
  0xa7   : > { %v772_v63 = vmul.f32 %v1362_v37, %v736_v61  ;;  %v403_v0 = vpop.f32.mrf.mxu0  ;;  %v525_v1 = vpop.f32.mrf.mxu1 }
  0xa8   : > { %v526_v4 = vadd.f32 %v525_v1, %v403_v0 }
  0xa9   : > { %v808_v2 = vadd.f32 %v1369_v41, %v772_v63  ;;  %1084 = vmatmul.msk.f32.gmra.mxu2 %vm276_vm1, %v1409_v62  ;;  %1092 = vmatmul.msk.f32.gmra.mxu3 %vm276_vm1, %v1270_v17 }
  0xaa   : > { %1018 = vmatmul.msk.f32.gmra.mxu0 %vm276_vm1, %v1372_v42  ;;  %1051 = vmatmul.msk.f32.gmra.mxu1 %vm276_vm1, %v256_v32 }
  0xab   : > { %v840_v5 = vmax.f32 %v808_v2, 0.0 }
  0xac   : > { %v1420_v6 = vpop.f32.mrf.mxu3  ;;  %v647_v8 = vpop.f32.mrf.mxu2 }
  0xad   : > { %873 = vst.msk [vmem:[%s1384_s10 + $0x10] sm:$0xff] %vm870_vm2, %v840_v5  ;;  %v737_v9 = vadd.f32 %v647_v8, %v526_v4 }
  0xaf   : > { %v773_v10 = vmul.f32 %v1362_v37, %v737_v9  ;;  %v406_v11 = vpop.f32.mrf.mxu0  ;;  %v528_v12 = vpop.f32.mrf.mxu1 }
  0xb0   : > { %v529_v14 = vadd.f32 %v528_v12, %v406_v11 }
  0xb1   : > { %v809_v13 = vadd.f32 %v1369_v41, %v773_v10  ;;  %1085 = vmatmul.msk.f32.gmra.mxu2 %vm276_vm1, %v1297_v23  ;;  %1093 = vmatmul.msk.f32.gmra.mxu3 %vm276_vm1, %v1279_v19 }
  0xb2   : > { %1019 = vmatmul.msk.f32.gmra.mxu0 %vm276_vm1, %v1393_v52  ;;  %1052 = vmatmul.msk.f32.gmra.mxu1 %vm276_vm1, %v1351_v33 }
  0xb3   : > { %v841_v15 = vmax.f32 %v809_v13, 0.0 }
  0xb4   : > { %v1434_v16 = vpop.f32.mrf.mxu3  ;;  %v650_v17 = vpop.f32.mrf.mxu2 }
  0xb5   : > { %874 = vst.msk [vmem:[%s1384_s10 + $0x18] sm:$0xff] %vm870_vm2, %v841_v15  ;;  %v738_v18 = vadd.f32 %v650_v17, %v529_v14 }
  0xb7   : > { %v774_v20 = vmul.f32 %v1362_v37, %v738_v18  ;;  %v409_v22 = vpop.f32.mrf.mxu0  ;;  %v531_v19 = vpop.f32.mrf.mxu1 }
  0xb8   : > { %v532_v26 = vadd.f32 %v531_v19, %v409_v22 }
  0xb9   : > { %v810_v24 = vadd.f32 %v1369_v41, %v774_v20  ;;  %1086 = vmatmul.msk.f32.gmra.mxu2 %vm276_vm1, %v1306_v25  ;;  %1094 = vmatmul.msk.f32.gmra.mxu3 %vm276_vm1, %v1288_v21 }
  0xba   : > { %1020 = vmatmul.msk.f32.gmra.mxu0 %vm276_vm1, %v1409_v62  ;;  %1053 = vmatmul.msk.f32.gmra.mxu1 %vm276_vm1, %v1372_v42 }
  0xbb   : > { %v842_v27 = vmax.f32 %v810_v24, 0.0 }
  0xbc   : > { %v1448_v28 = vpop.f32.mrf.mxu3  ;;  %v653_v29 = vpop.f32.mrf.mxu2 }
  0xbd   : > { %875 = vst.msk [vmem:[%s1384_s10 + $0x20] sm:$0xff] %vm870_vm2, %v842_v27  ;;  %v739_v30 = vadd.f32 %v653_v29, %v532_v26 }
  0xbf   : > { %v775_v32 = vmul.f32 %v1362_v37, %v739_v30  ;;  %v412_v21 = vpop.f32.mrf.mxu0  ;;  %v534_v33 = vpop.f32.mrf.mxu1 }
  0xc0   : > { %v535_v35 = vadd.f32 %v534_v33, %v412_v21 }
  0xc1   : > { %v811_v34 = vadd.f32 %v1369_v41, %v775_v32  ;;  %1087 = vmatmul.msk.f32.gmra.mxu2 %vm276_vm1, %v1220_v3  ;;  %1095 = vmatmul.msk.f32.gmra.mxu3 %vm276_vm1, %v271_v31 }
  0xc2   : > { %1021 = vmatmul.msk.f32.gmra.mxu0 %vm276_vm1, %v1297_v23  ;;  %1054 = vmatmul.msk.f32.gmra.mxu1 %vm276_vm1, %v1393_v52 }
  0xc3   : > { %v843_v36 = vmax.f32 %v811_v34, 0.0 }
  0xc4   : > { %v1462_v39 = vpop.f32.mrf.mxu3  ;;  %v656_v40 = vpop.f32.mrf.mxu2 }
  0xc5   : > { %876 = vst.msk [vmem:[%s1384_s10 + $0x28] sm:$0xff] %vm870_vm2, %v843_v36  ;;  %v740_v42 = vadd.f32 %v656_v40, %v535_v35 }
  0xc7   : > { %v776_v3 = vmul.f32 %v1362_v37, %v740_v42  ;;  %v415_v44 = vpop.f32.mrf.mxu0  ;;  %v537_v45 = vpop.f32.mrf.mxu1 }
  0xc8   : > { %v538_v23 = vadd.f32 %v537_v45, %v415_v44 }
  0xc9   : > { %v812_v46 = vadd.f32 %v1369_v41, %v776_v3  ;;  %1088 = vmatmul.msk.f32.gmra.mxu2 %vm276_vm1, %v1232_v7  ;;  %1096 = vmatmul.msk.f32.gmra.mxu3 %vm276_vm1, %v272_v43 }
  0xca   : > { %1022 = vmatmul.msk.f32.gmra.mxu0 %vm276_vm1, %v1306_v25  ;;  %1055 = vmatmul.msk.f32.gmra.mxu1 %vm276_vm1, %v1409_v62 }
  0xcb   : > { %v844_v47 = vmax.f32 %v812_v46, 0.0 }
  0xcc   : > { %v1476_v48 = vpop.f32.mrf.mxu3  ;;  %v659_v50 = vpop.f32.mrf.mxu2 }
  0xcd   : > { %877 = vst.msk [vmem:[%s1384_s10 + $0x30] sm:$0xff] %vm870_vm2, %v844_v47  ;;  %v741_v51 = vadd.f32 %v659_v50, %v538_v23 }
  0xcf   : > { %v777_v52 = vmul.f32 %v1362_v37, %v741_v51  ;;  %v418_v7 = vpop.f32.mrf.mxu0  ;;  %v540_v53 = vpop.f32.mrf.mxu1 }
  0xd0   : > { %v541_v55 = vadd.f32 %v540_v53, %v418_v7 }
  0xd1   : > { %v813_v54 = vadd.f32 %v1369_v41, %v777_v52 }
  0xd3   : > { %v845_v56 = vmax.f32 %v813_v54, 0.0 }
  0xd4   : > { %v1482_v25 = vpop.f32.mrf.mxu3  ;;  %v662_v57 = vpop.f32.mrf.mxu2 }
  0xd5   : > { %878 = vst.msk [vmem:[%s1384_s10 + $0x38] sm:$0xff] %vm870_vm2, %v845_v56  ;;  %v742_v58 = vadd.f32 %v662_v57, %v541_v55 }
  0xd7   : > { %v778_v60 = vmul.f32 %v1362_v37, %v742_v58  ;;  %v421_v61 = vpop.f32.mrf.mxu0  ;;  %v543_v62 = vpop.f32.mrf.mxu1 }
  0xd8   : > { %v544_v0 = vadd.f32 %v543_v62, %v421_v61 }
  0xd9   : > { %v814_v63 = vadd.f32 %v1369_v41, %v778_v60 }
  0xdb   : > { %v846_v1 = vmax.f32 %v814_v63, 0.0 }
  0xdc   : > { %v1488_v2 = vpop.f32.mrf.mxu3  ;;  %v665_v4 = vpop.f32.mrf.mxu2 }
  0xdd   : > { %879 = vst.msk [vmem:[%s1384_s10 + $0x40] sm:$0xff] %vm870_vm2, %v846_v1  ;;  %v743_v5 = vadd.f32 %v665_v4, %v544_v0 }
  0xdf   : > { %v779_v8 = vmul.f32 %v1362_v37, %v743_v5  ;;  %v424_v9 = vpop.f32.mrf.mxu0  ;;  %v546_v10 = vpop.f32.mrf.mxu1 }
  0xe0   : > { %v547_v12 = vadd.f32 %v546_v10, %v424_v9 }
  0xe1   : > { %v815_v11 = vadd.f32 %v1369_v41, %v779_v8 }
  0xe3   : > { %v847_v13 = vmax.f32 %v815_v11, 0.0 }
  0xe4   : > { %v1494_v14 = vpop.f32.mrf.mxu3  ;;  %v668_v15 = vpop.f32.mrf.mxu2 }
  0xe5   : > { %880 = vst.msk [vmem:[%s1384_s10 + $0x48] sm:$0xff] %vm870_vm2, %v847_v13  ;;  %v744_v17 = vadd.f32 %v668_v15, %v547_v12 }
  0xe7   : > { %v780_v18 = vmul.f32 %v1362_v37, %v744_v17  ;;  %v427_v20 = vpop.f32.mrf.mxu0  ;;  %v549_v22 = vpop.f32.mrf.mxu1  ;;  %v589_v17 = vadd.f32 %v1482_v25, %v1364_v38  ;;  %v592_v25 = vadd.f32 %v1488_v2, %v1388_v49 }
  0xe8   : > { %v550_v24 = vadd.f32 %v549_v22, %v427_v20 }
  0xe9   : > { %v816_v19 = vadd.f32 %v1369_v41, %v780_v18 }
  0xeb   : > { %v848_v26 = vmax.f32 %v816_v19, 0.0 }
  0xec   : > { %v1500_v27 = vpop.f32.mrf.mxu3  ;;  %v671_v29 = vpop.f32.mrf.mxu2 }
  0xed   : > { %881 = vst.msk [vmem:[%s1384_s10 + $0x50] sm:$0xff] %vm870_vm2, %v848_v26  ;;  %v745_v30 = vadd.f32 %v671_v29, %v550_v24 }
  0xef   : > { %v781_v31 = vmul.f32 %v1362_v37, %v745_v30  ;;  %v430_v32 = vpop.f32.mrf.mxu0  ;;  %v552_v21 = vpop.f32.mrf.mxu1 }
  0xf0   : > { %v553_v34 = vadd.f32 %v552_v21, %v430_v32 }
  0xf1   : > { %v817_v33 = vadd.f32 %v1369_v41, %v781_v31 }
  0xf3   : > { %v849_v35 = vmax.f32 %v817_v33, 0.0 }
  0xf4   : > { %v1506_v36 = vpop.f32.mrf.mxu3  ;;  %v674_v40 = vpop.f32.mrf.mxu2 }
  0xf5   : > { %882 = vst.msk [vmem:[%s1384_s10 + $0x58] sm:$0xff] %vm870_vm2, %v849_v35  ;;  %v746_v42 = vadd.f32 %v674_v40, %v553_v34 }
  0xf7   : > { %v782_v43 = vmul.f32 %v1362_v37, %v746_v42  ;;  %v433_v3 = vpop.f32.mrf.mxu0  ;;  %v555_v44 = vpop.f32.mrf.mxu1 }
  0xf8   : > { %v556_v46 = vadd.f32 %v555_v44, %v433_v3 }
  0xf9   : > { %v818_v45 = vadd.f32 %v1369_v41, %v782_v43 }
  0xfb   : > { %v850_v23 = vmax.f32 %v818_v45, 0.0 }
  0xfc   : > { %v1512_v47 = vpop.f32.mrf.mxu3  ;;  %v677_v50 = vpop.f32.mrf.mxu2 }
  0xfd   : > { %883 = vst.msk [vmem:[%s1384_s10 + $0x60] sm:$0xff] %vm870_vm2, %v850_v23  ;;  %v747_v51 = vadd.f32 %v677_v50, %v556_v46  ;;  %v595_v50 = vadd.f32 %v1494_v14, %v1404_v59 }
  0xff   : > { %v783_v52 = vmul.f32 %v1362_v37, %v747_v51  ;;  %v436_v7 = vpop.f32.mrf.mxu0  ;;  %v558_v53 = vpop.f32.mrf.mxu1 }
 0x100   : > { %v559_v55 = vadd.f32 %v558_v53, %v436_v7 }
 0x101   : > { %v819_v54 = vadd.f32 %v1369_v41, %v783_v52 }
 0x103   : > { %v851_v56 = vmax.f32 %v819_v54, 0.0 }
 0x104   : > { %v1518_v57 = vpop.f32.mrf.mxu3  ;;  %v680_v58 = vpop.f32.mrf.mxu2 }
 0x105   : > { %884 = vst.msk [vmem:[%s1384_s10 + $0x68] sm:$0xff] %vm870_vm2, %v851_v56  ;;  %v748_v60 = vadd.f32 %v680_v58, %v559_v55 }
 0x107   : > { %v784_v61 = vmul.f32 %v1362_v37, %v748_v60  ;;  %v439_v62 = vpop.f32.mrf.mxu0  ;;  %v561_v63 = vpop.f32.mrf.mxu1 }
 0x108   : > { %v562_v1 = vadd.f32 %v561_v63, %v439_v62  ;;  %v598_v63 = vadd.f32 %v1500_v27, %v1420_v6 }
 0x109   : > { %v820_v0 = vadd.f32 %v1369_v41, %v784_v61 }
 0x10b   : > { %v852_v4 = vmax.f32 %v820_v0, 0.0 }
 0x10c   : > { %v1524_v5 = vpop.f32.mrf.mxu3  ;;  %v683_v8 = vpop.f32.mrf.mxu2 }
 0x10d   : > { %885 = vst.msk [vmem:[%s1384_s10 + $0x70] sm:$0xff] %vm870_vm2, %v852_v4  ;;  %v749_v9 = vadd.f32 %v683_v8, %v562_v1 }
 0x10f   : > { %v785_v10 = vmul.f32 %v1362_v37, %v749_v9  ;;  %v442_v11 = vpop.f32.mrf.mxu0  ;;  %v564_v12 = vpop.f32.mrf.mxu1 }
 0x110   : > { %v565_v15 = vadd.f32 %v564_v12, %v442_v11 }
 0x111   : > { %v821_v13 = vadd.f32 %v1369_v41, %v785_v10 }
 0x113   : > { %v853_v18 = vmax.f32 %v821_v13, 0.0 }
 0x114   : > { %v686_v20 = vpop.f32.mrf.mxu2  ;;  %v710_v22 = vpop.f32.mrf.mxu3 }
 0x115   : > { %886 = vst.msk [vmem:[%s1384_s10 + $0x78] sm:$0xff] %vm870_vm2, %v853_v18  ;;  %v750_v19 = vadd.f32 %v686_v20, %v565_v15  ;;  %v758_v24 = vadd.f32 %v710_v22, %v589_v17  ;;  %v601_v18 = vadd.f32 %v1506_v36, %v1434_v16 }
 0x117   : > { %v786_v26 = vmul.f32 %v1362_v37, %v750_v19  ;;  %v794_v29 = vmul.f32 %v1362_v37, %v758_v24  ;;  %v445_v30 = vpop.f32.mrf.mxu0  ;;  %v567_v31 = vpop.f32.mrf.mxu1 }
 0x118   : > { %v568_v38 = vadd.f32 %v567_v31, %v445_v30 }
 0x119   : > { %v822_v32 = vadd.f32 %v1369_v41, %v786_v26  ;;  %v830_v21 = vadd.f32 %v1369_v41, %v794_v29 }
 0x11b   : > { %v854_v33 = vmax.f32 %v822_v32, 0.0  ;;  %v862_v34 = vmax.f32 %v830_v21, 0.0 }
 0x11c   : > { %v689_v35 = vpop.f32.mrf.mxu2  ;;  %v713_v40 = vpop.f32.mrf.mxu3 }
 0x11d   : > { %887 = vst.msk [vmem:[%s1384_s10 + $0x80] sm:$0xff] %vm870_vm2, %v854_v33  ;;  %v751_v42 = vadd.f32 %v689_v35, %v568_v38  ;;  %v759_v43 = vadd.f32 %v713_v40, %v592_v25  ;;  %v604_v25 = vadd.f32 %v1512_v47, %v1448_v28 }
 0x11e   : > { %895 = vst.msk [vmem:[%s1384_s10 + $0xc0] sm:$0xff] %vm870_vm2, %v862_v34 }
 0x11f   : > { %v787_v3 = vmul.f32 %v1362_v37, %v751_v42  ;;  %v795_v44 = vmul.f32 %v1362_v37, %v759_v43  ;;  %v448_v45 = vpop.f32.mrf.mxu0  ;;  %v570_v46 = vpop.f32.mrf.mxu1 }
 0x120   : > { %v571_v23 = vadd.f32 %v570_v46, %v448_v45 }
 0x121   : > { %v823_v49 = vadd.f32 %v1369_v41, %v787_v3  ;;  %v831_v2 = vadd.f32 %v1369_v41, %v795_v44 }
 0x123   : > { %v855_v51 = vmax.f32 %v823_v49, 0.0  ;;  %v863_v52 = vmax.f32 %v831_v2, 0.0  ;;  %v607_v2 = vadd.f32 %v1518_v57, %v1462_v39 }
 0x124   : > { %v692_v7 = vpop.f32.mrf.mxu2  ;;  %v716_v53 = vpop.f32.mrf.mxu3 }
 0x125   : > { %888 = vst.msk [vmem:[%s1384_s10 + $0x88] sm:$0xff] %vm870_vm2, %v855_v51  ;;  %v752_v54 = vadd.f32 %v692_v7, %v571_v23  ;;  %v760_v55 = vadd.f32 %v716_v53, %v595_v50 }
 0x126   : > { %896 = vst.msk [vmem:[%s1384_s10 + $0xc8] sm:$0xff] %vm870_vm2, %v863_v52 }
 0x127   : > { %v788_v56 = vmul.f32 %v1362_v37, %v752_v54  ;;  %v796_v58 = vmul.f32 %v1362_v37, %v760_v55  ;;  %v451_v60 = vpop.f32.mrf.mxu0  ;;  %v573_v61 = vpop.f32.mrf.mxu1 }
 0x128   : > { %v574_v62 = vadd.f32 %v573_v61, %v451_v60  ;;  %v610_v61 = vadd.f32 %v1524_v5, %v1476_v48 }
 0x129   : > { %v824_v59 = vadd.f32 %v1369_v41, %v788_v56  ;;  %v832_v14 = vadd.f32 %v1369_v41, %v796_v58 }
 0x12b   : > { %v856_v0 = vmax.f32 %v824_v59, 0.0  ;;  %v864_v1 = vmax.f32 %v832_v14, 0.0 }
 0x12c   : > { %v695_v4 = vpop.f32.mrf.mxu2  ;;  %v719_v8 = vpop.f32.mrf.mxu3 }
 0x12d   : > { %889 = vst.msk [vmem:[%s1384_s10 + $0x90] sm:$0xff] %vm870_vm2, %v856_v0  ;;  %v753_v9 = vadd.f32 %v695_v4, %v574_v62  ;;  %v761_v10 = vadd.f32 %v719_v8, %v598_v63 }
 0x12e   : > { %897 = vst.msk [vmem:[%s1384_s10 + $0xd0] sm:$0xff] %vm870_vm2, %v864_v1 }
 0x12f   : > { %v789_v11 = vmul.f32 %v1362_v37, %v753_v9  ;;  %v797_v12 = vmul.f32 %v1362_v37, %v761_v10  ;;  %v454_v13 = vpop.f32.mrf.mxu0  ;;  %v576_v15 = vpop.f32.mrf.mxu1 }
 0x130   : > { %v577_v17 = vadd.f32 %v576_v15, %v454_v13 }
 0x131   : > { %v825_v6 = vadd.f32 %v1369_v41, %v789_v11  ;;  %v833_v27 = vadd.f32 %v1369_v41, %v797_v12 }
 0x133   : > { %v857_v20 = vmax.f32 %v825_v6, 0.0  ;;  %v865_v22 = vmax.f32 %v833_v27, 0.0 }
 0x134   : > { %v698_v19 = vpop.f32.mrf.mxu2  ;;  %v722_v24 = vpop.f32.mrf.mxu3 }
 0x135   : > { %890 = vst.msk [vmem:[%s1384_s10 + $0x98] sm:$0xff] %vm870_vm2, %v857_v20  ;;  %v754_v26 = vadd.f32 %v698_v19, %v577_v17  ;;  %v762_v29 = vadd.f32 %v722_v24, %v601_v18 }
 0x136   : > { %898 = vst.msk [vmem:[%s1384_s10 + $0xd8] sm:$0xff] %vm870_vm2, %v865_v22 }
 0x137   : > { %v790_v30 = vmul.f32 %v1362_v37, %v754_v26  ;;  %v798_v31 = vmul.f32 %v1362_v37, %v762_v29  ;;  %v457_v32 = vpop.f32.mrf.mxu0  ;;  %v579_v21 = vpop.f32.mrf.mxu1 }
 0x138   : > { %v580_v38 = vadd.f32 %v579_v21, %v457_v32 }
 0x139   : > { %v826_v16 = vadd.f32 %v1369_v41, %v790_v30  ;;  %v834_v36 = vadd.f32 %v1369_v41, %v798_v31 }
 0x13b   : > { %v858_v33 = vmax.f32 %v826_v16, 0.0  ;;  %v866_v34 = vmax.f32 %v834_v36, 0.0 }
 0x13c   : > { %v701_v35 = vpop.f32.mrf.mxu2  ;;  %v725_v40 = vpop.f32.mrf.mxu3 }
 0x13d   : > { %891 = vst.msk [vmem:[%s1384_s10 + $0xa0] sm:$0xff] %vm870_vm2, %v858_v33  ;;  %v755_v42 = vadd.f32 %v701_v35, %v580_v38  ;;  %v763_v43 = vadd.f32 %v725_v40, %v604_v25 }
 0x13e   : > { %899 = vst.msk [vmem:[%s1384_s10 + $0xe0] sm:$0xff] %vm870_vm2, %v866_v34 }
 0x13f   : > { %v791_v3 = vmul.f32 %v1362_v37, %v755_v42  ;;  %v799_v44 = vmul.f32 %v1362_v37, %v763_v43  ;;  %v460_v45 = vpop.f32.mrf.mxu0  ;;  %v582_v46 = vpop.f32.mrf.mxu1 }
 0x140   : > { %v583_v49 = vadd.f32 %v582_v46, %v460_v45 }
 0x141   : > { %v827_v28 = vadd.f32 %v1369_v41, %v791_v3  ;;  %v835_v47 = vadd.f32 %v1369_v41, %v799_v44 }
 0x143   : > { %v859_v23 = vmax.f32 %v827_v28, 0.0  ;;  %v867_v50 = vmax.f32 %v835_v47, 0.0 }
 0x144   : > { %v704_v51 = vpop.f32.mrf.mxu2  ;;  %v728_v52 = vpop.f32.mrf.mxu3 }
 0x145   : > { %892 = vst.msk [vmem:[%s1384_s10 + $0xa8] sm:$0xff] %vm870_vm2, %v859_v23  ;;  %v756_v7 = vadd.f32 %v704_v51, %v583_v49  ;;  %v764_v53 = vadd.f32 %v728_v52, %v607_v2 }
 0x146   : > { %900 = vst.msk [vmem:[%s1384_s10 + $0xe8] sm:$0xff] %vm870_vm2, %v867_v50 }
 0x147   : > { %v792_v54 = vmul.f32 %v1362_v37, %v756_v7  ;;  %v800_v55 = vmul.f32 %v1362_v37, %v764_v53  ;;  %v463_v56 = vpop.f32.mrf.mxu0  ;;  %v585_v58 = vpop.f32.mrf.mxu1 }
 0x148   : > { %v586_v60 = vadd.f32 %v585_v58, %v463_v56 }
 0x149   : > { %v828_v39 = vadd.f32 %v1369_v41, %v792_v54  ;;  %v836_v57 = vadd.f32 %v1369_v41, %v800_v55 }
 0x14b   : > { %v860_v59 = vmax.f32 %v828_v39, 0.0  ;;  %v868_v14 = vmax.f32 %v836_v57, 0.0 }
 0x14c   : > { %v707_v62 = vpop.f32.mrf.mxu2  ;;  %v731_v63 = vpop.f32.mrf.mxu3 }
 0x14d   : > { %893 = vst.msk [vmem:[%s1384_s10 + $0xb0] sm:$0xff] %vm870_vm2, %v860_v59  ;;  %v757_v0 = vadd.f32 %v707_v62, %v586_v60  ;;  %v765_v1 = vadd.f32 %v731_v63, %v610_v61 }
 0x14e   : > { %901 = vst.msk [vmem:[%s1384_s10 + $0xf0] sm:$0xff] %vm870_vm2, %v868_v14 }
 0x14f   : > { %v793_v4 = vmul.f32 %v1362_v37, %v757_v0  ;;  %v801_v8 = vmul.f32 %v1362_v37, %v765_v1 }
 0x151   : > { %v829_v9 = vadd.f32 %v1369_v41, %v793_v4  ;;  %v837_v10 = vadd.f32 %v1369_v41, %v801_v8 }
 0x153   : > { %v861_v48 = vmax.f32 %v829_v9, 0.0  ;;  %v869_v5 = vmax.f32 %v837_v10, 0.0 }
 0x155   : > { %894 = vst.msk [vmem:[%s1384_s10 + $0xb8] sm:$0xff] %vm870_vm2, %v861_v48 }
 0x156   : > { %902 = vst.msk [vmem:[%s1384_s10 + $0xf8] sm:$0xff] %vm870_vm2, %v869_v5 }
 0x157 PF: > { %s14_s17 = sadd.s32 1, %s1152_s17   ;;  %s1626_s15 = smov %s1148_s16 }
 0x158   : > { %p11_p5 = scmp.ge.s32.totalorder %s14_s17, 4   ;;  %s1627_s16 = smov %s1629_s18 }
 0x15a   :  { %13 = sbr.rel (!%p11_p5) target bundleno = 2 (0x2), region = 66 }

// kernel: gc_bn_relu_forward.6
= control target key start
LH: loop header
LB: loop body
LE: loop exit
PB: predicated region body
PF: predicated region fallthrough
CT: control target
= control target key end

     0   :  { %s1499_s15 = smov 0   ;;  %s1501_s16 = smov 0   ;;  %s2005_s0 = inlined_call_operand.vmem [shape: f32[2,16,18,4], index: 0, kind: input, shape index: {}]   ;;  %s2006_s1 = inlined_call_operand.vmem [shape: f32[3,4,8], index: 1, kind: input, shape index: {}]   ;;  %s2007_s2 = inlined_call_operand.vmem [shape: f32[1,8], index: 2, kind: input, shape index: {}]   ;;  %s2008_s3 = inlined_call_operand.vmem [shape: f32[1,8], index: 3, kind: input, shape index: {}]   ;;  %s2009_s4 = inlined_call_operand.vmem [shape: f32[2,16,16,8], index: 4, kind: output, shape index: {}]  }
   0x1   :  { %s1503_s17 = smov 0  }
   0x2 LB: > { %s26_s18 = sadd.s32 1, %s1468_s16  ;;  %p1314_p0 = scmp.ge.s32.totalorder %s1472_s17, 1  ;;  %s1472_s17 = sphi %s1503_s17, %s14_s17   ;;  %s1468_s16 = sphi %s1501_s16, %s2011_s16   ;;  %s1464_s15 = sphi %s1499_s15, %s2010_s15  }
   0x3   : > { %p28_p1 = scmp.ge.s32.totalorder %s26_s18, 2  ;;  %p184_p2 = scmp.lt.s32.totalorder %s1472_s17, 3 }
   0x5   : > { %s2013_s18 = smov (%p28_p1, %s26_s18), 0  ;;  %p185_p3 = pnand %p1314_p0, %p184_p2 }
   0x6   : > { %p221_p4 = scmp.lt.s32.totalorder (!%p185_p3), %s1464_s15, 1 }
   0x7   : > { %188 = sbr.rel (%p185_p3) target bundleno = 346 (0x15a), region = 36 }
   0xc   : > { %v291_v0 = vld [vmem:[%s2006_s1 + $0x4] sm:$0xf]  ;;  %vm487_vm0 = vcmask 1043456   ;;  %v292_v1 = vld [vmem:[%s2006_s1 + $0x8] sm:$0xf]  ;;  %s2015_s15 = smov (!%p221_p4, %s1464_s15), 1 }
   0xd   : > { %1420 = vmatpush.msk.msra.mxu3 %vm487_vm0, %v291_v0  ;;  %1384 = vmatpush.msk.msra.mxu2 %vm487_vm0, %v292_v1  ;;  %v290_v2 = vld [vmem:[%s2006_s1] sm:$0xf]  ;;  %s1423_s25 = smul.u32 384, %s2015_s15  ;;  %vm341_vm1 = vcmask 1046528   ;;  %vm422_vm2 = vcmask 31744   ;;  %vm784_vm3 = vcmask 1045504  }
   0xe   : > { %1318 = vmatpush.msk.msra.mxu0 %vm487_vm0, %v291_v0  ;;  %1351 = vmatpush.msk.msra.mxu1 %vm487_vm0, %v290_v2  ;;  %s1419_s7 = sshll.u32 %s2015_s15, 8  ;;  %vm1181_vm4 = vcmask 64512  }
   0xf   : > { %1421 = vmatpush.msk.msrb.mxu3 %vm487_vm0, %v290_v2  ;;  %s1537_s28 = scalar_lea.vmem %s2005_s0, %s1423_s25  ;;  %s1766_s10 = scalar_lea.vmem %s2009_s4, %s1419_s7 }
  0x10   : > { %v1540_v3 = vld [vmem:[%s1537_s28 + $0x120] sm:$0xff]  ;;  %v1543_v4 = vld [vmem:[%s1537_s28 + $0x128] sm:$0xff]  ;;  %v1551_v13 = vld [vmem:[%s1537_s28 + $0x130] sm:$0x3] }
  0x11   : > { %v242_v5 = vld [vmem:[%s1537_s28] sm:$0xff]  ;;  %v402_v6 = vrot.slane %v1540_v3, 1  ;;  %v403_v7 = vrot.slane %v1543_v4, 1  ;;  %v243_v8 = vld [vmem:[%s1537_s28 + $0x8] sm:$0xff]  ;;  %v244_v15 = vld [vmem:[%s1537_s28 + $0x10] sm:$0x3] }
  0x12   : > { %v785_v9 = vrot.slane %v242_v5, 2  ;;  %v342_v10 = vrot.slane %v242_v5, 1  ;;  %1352 = vmatmul.msk.f32.vlgmr.msra.gmra.mxu1 %vm422_vm2, %v242_v5  ;;  %v786_v11 = vrot.slane %v243_v8, 2  ;;  %v343_v12 = vrot.slane %v243_v8, 1  ;;  %v1567_v24 = vld [vmem:[%s1537_s28 + $0x138] sm:$0xff]  ;;  %v1570_v25 = vld [vmem:[%s1537_s28 + $0x140] sm:$0xff] }
  0x13   : > { %v404_v14 = vsel %vm341_vm1, %v402_v6, %v403_v7  ;;  %v405_v18 = vrot.slane %v1551_v13, 1  ;;  %v788_v19 = vrot.slane %v244_v15, 2  ;;  %v345_v20 = vrot.slane %v244_v15, 1  ;;  %v245_v26 = vld [vmem:[%s1537_s28 + $0x18] sm:$0xff]  ;;  %v246_v27 = vld [vmem:[%s1537_s28 + $0x20] sm:$0xff]  ;;  %v1596_v45 = vld [vmem:[%s1537_s28 + $0x150] sm:$0xff] }
  0x14   : > { %1343 = vmatmul.msk.f32.vlgmr.msra.gmra.mxu3 %vm422_vm2, %v404_v14  ;;  %v787_v16 = vsel %vm784_vm3, %v785_v9, %v786_v11  ;;  %v344_v17 = vsel %vm341_vm1, %v342_v10, %v343_v12  ;;  %v407_v28 = vrot.slane %v1567_v24, 1  ;;  %v408_v29 = vrot.slane %v1570_v25, 1  ;;  %v1584_v37 = vld [vmem:[%s1537_s28 + $0x148] sm:$0x3]  ;;  %v1599_v46 = vld [vmem:[%s1537_s28 + $0x158] sm:$0xff]  ;;  %v248_v47 = vld [vmem:[%s1537_s28 + $0x30] sm:$0xff] }
  0x15   : > { %1385 = vmatmul.msk.f32.vlgmr.msra.gmra.mxu2 %vm422_vm2, %v787_v16  ;;  %1319 = vmatmul.msk.f32.vlgmr.msra.gmra.mxu0 %vm422_vm2, %v344_v17  ;;  %v406_v21 = vsel %vm341_vm1, %v403_v7, %v405_v18  ;;  %v789_v22 = vsel %vm784_vm3, %v786_v11, %v788_v19  ;;  %v346_v23 = vsel %vm341_vm1, %v343_v12, %v345_v20  ;;  %v790_v30 = vrot.slane %v245_v26, 2  ;;  %v247_v38 = vld [vmem:[%s1537_s28 + $0x28] sm:$0x3]  ;;  %v249_v48 = vld [vmem:[%s1537_s28 + $0x38] sm:$0xff]  ;;  %v1613_v58 = vld [vmem:[%s1537_s28 + $0x160] sm:$0x3] }
  0x16   : > { %1422 = vmatpush.msk.msra.mxu3 %vm487_vm0, %v292_v1  ;;  %v791_v31 = vrot.slane %v246_v27, 2  ;;  %v347_v32 = vrot.slane %v245_v26, 1  ;;  %v348_v33 = vrot.slane %v246_v27, 1  ;;  %v409_v34 = vsel %vm341_vm1, %v407_v28, %v408_v29  ;;  %v250_v59 = vld [vmem:[%s1537_s28 + $0x40] sm:$0x3]  ;;  %v1625_v2 = vld [vmem:[%s1537_s28 + $0x168] sm:$0xff] }
  0x17   : > { %v410_v39 = vrot.slane %v1584_v37, 1  ;;  %v793_v40 = vrot.slane %v247_v38, 2  ;;  %v350_v41 = vrot.slane %v247_v38, 1  ;;  %v412_v49 = vrot.slane %v1596_v45, 1  ;;  %v1628_v5 = vld [vmem:[%s1537_s28 + $0x170] sm:$0xff]  ;;  %v251_v6 = vld [vmem:[%s1537_s28 + $0x48] sm:$0xff] }
  0x18   : > { %v792_v35 = vsel %vm784_vm3, %v790_v30, %v791_v31  ;;  %v349_v36 = vsel %vm341_vm1, %v347_v32, %v348_v33  ;;  %v413_v50 = vrot.slane %v1599_v46, 1  ;;  %v795_v51 = vrot.slane %v248_v47, 2  ;;  %v252_v7 = vld [vmem:[%s1537_s28 + $0x50] sm:$0xff]  ;;  %v1642_v18 = vld [vmem:[%s1537_s28 + $0x178] sm:$0x3]  ;;  %v254_v28 = vld [vmem:[%s1537_s28 + $0x60] sm:$0xff] }
  0x19   : > { %v411_v42 = vsel %vm341_vm1, %v408_v29, %v410_v39  ;;  %v794_v43 = vsel %vm784_vm3, %v791_v31, %v793_v40  ;;  %v351_v44 = vsel %vm341_vm1, %v348_v33, %v350_v41  ;;  %v796_v52 = vrot.slane %v249_v48, 2  ;;  %v253_v19 = vld [vmem:[%s1537_s28 + $0x58] sm:$0x3]  ;;  %v255_v29 = vld [vmem:[%s1537_s28 + $0x68] sm:$0xff] }
  0x1a   : > { %1353 = vmatmul.msk.f32.gmra.mxu1 %vm422_vm2, %v243_v8  ;;  %v352_v53 = vrot.slane %v248_v47, 1  ;;  %v353_v54 = vrot.slane %v249_v48, 1  ;;  %v414_v55 = vsel %vm341_vm1, %v412_v49, %v413_v50  ;;  %v415_v60 = vrot.slane %v1613_v58, 1 }
  0x1b   : > { %v797_v56 = vsel %vm784_vm3, %v795_v51, %v796_v52  ;;  %v798_v61 = vrot.slane %v250_v59, 2  ;;  %v355_v62 = vrot.slane %v250_v59, 1  ;;  %v417_v8 = vrot.slane %v1625_v2, 1  ;;  %v261_v59 = vld [vmem:[%s1537_s28 + $0x98] sm:$0xff] }
  0x1c   : > { %1344 = vmatmul.msk.f32.gmra.mxu3 %vm422_vm2, %v406_v21  ;;  %v354_v57 = vsel %vm341_vm1, %v352_v53, %v353_v54  ;;  %v416_v63 = vsel %vm341_vm1, %v413_v50, %v415_v60  ;;  %v418_v9 = vrot.slane %v1628_v5, 1  ;;  %v800_v10 = vrot.slane %v251_v6, 2 }
  0x1d   : > { %1386 = vmatmul.msk.f32.gmra.mxu2 %vm422_vm2, %v789_v22  ;;  %1320 = vmatmul.msk.f32.gmra.mxu0 %vm422_vm2, %v346_v23  ;;  %v799_v0 = vsel %vm784_vm3, %v796_v52, %v798_v61  ;;  %v356_v1 = vsel %vm341_vm1, %v353_v54, %v355_v62  ;;  %v801_v11 = vrot.slane %v252_v7, 2  ;;  %v357_v12 = vrot.slane %v251_v6, 1  ;;  %v259_v52 = vld [vmem:[%s1537_s28 + $0x88] sm:$0x3] }
  0x1e   : > { %v358_v14 = vrot.slane %v252_v7, 1  ;;  %v419_v15 = vsel %vm341_vm1, %v417_v8, %v418_v9  ;;  %v420_v20 = vrot.slane %v1642_v18, 1  ;;  %v803_v21 = vrot.slane %v253_v19, 2 }
  0x1f   : > { %v802_v16 = vsel %vm784_vm3, %v800_v10, %v801_v11  ;;  %v360_v22 = vrot.slane %v253_v19, 1  ;;  %v805_v30 = vrot.slane %v254_v28, 2  ;;  %v806_v31 = vrot.slane %v255_v29, 2 }
  0x20   : > { %v359_v17 = vsel %vm341_vm1, %v357_v12, %v358_v14  ;;  %v421_v23 = vsel %vm341_vm1, %v418_v9, %v420_v20  ;;  %v362_v32 = vrot.slane %v254_v28, 1  ;;  %v363_v33 = vrot.slane %v255_v29, 1  ;;  %v264_v12 = vld [vmem:[%s1537_s28 + $0xb0] sm:$0xff] }
  0x21   : > { %v813_v53 = vrot.slane %v259_v52, 2  ;;  %v370_v54 = vrot.slane %v259_v52, 1  ;;  %v816_v61 = vrot.slane %v261_v59, 2  ;;  %v1747_v52 = vld [vmem:[%s2008_s3] ss:$0 sm:$0xff] }
  0x22   : > { %1354 = vmatmul.msk.f32.gmra.mxu1 %vm422_vm2, %v245_v26  ;;  %v804_v26 = vsel %vm784_vm3, %v801_v11, %v803_v21  ;;  %v263_v11 = vld [vmem:[%s1537_s28 + $0xa8] sm:$0xff]  ;;  %v265_v21 = vld [vmem:[%s1537_s28 + $0xb8] sm:$0x3] }
  0x24   : > { %1345 = vmatmul.msk.f32.gmra.mxu3 %vm422_vm2, %v409_v34  ;;  %v807_v34 = vsel %vm784_vm3, %v805_v30, %v806_v31  ;;  %v845_v30 = vrot.slane %v1540_v3, 2 }
  0x25   : > { %1387 = vmatmul.msk.f32.gmra.mxu2 %vm422_vm2, %v792_v35  ;;  %1321 = vmatmul.msk.f32.gmra.mxu0 %vm422_vm2, %v349_v36  ;;  %v364_v35 = vsel %vm341_vm1, %v362_v32, %v363_v33  ;;  %v256_v36 = vld [vmem:[%s1537_s28 + $0x70] sm:$0x3] }
  0x26   : > { %v808_v38 = vrot.slane %v256_v36, 2  ;;  %v365_v39 = vrot.slane %v256_v36, 1 }
  0x28   : > { %v809_v40 = vsel %vm784_vm3, %v806_v31, %v808_v38  ;;  %v366_v41 = vsel %vm341_vm1, %v363_v33, %v365_v39  ;;  %v846_v31 = vrot.slane %v1543_v4, 2 }
  0x2a   : > { %1355 = vmatmul.msk.f32.gmra.mxu1 %vm422_vm2, %v246_v27  ;;  %v361_v27 = vsel %vm341_vm1, %v358_v14, %v360_v22  ;;  %v820_v14 = vrot.slane %v263_v11, 2  ;;  %v823_v22 = vrot.slane %v265_v21, 2  ;;  %v847_v38 = vsel %vm784_vm3, %v845_v30, %v846_v31 }
  0x2c   : > { %1346 = vmatmul.msk.f32.gmra.mxu3 %vm422_vm2, %v411_v42  ;;  %v257_v42 = vld [vmem:[%s1537_s28 + $0x78] sm:$0xff] }
  0x2d   : > { %1388 = vmatmul.msk.f32.gmra.mxu2 %vm422_vm2, %v794_v43  ;;  %1322 = vmatmul.msk.f32.gmra.mxu0 %vm422_vm2, %v351_v44  ;;  %v258_v43 = vld [vmem:[%s1537_s28 + $0x80] sm:$0xff]  ;;  %v810_v44 = vrot.slane %v257_v42, 2 }
  0x2e   : > { %v368_v49 = vrot.slane %v258_v43, 1 }
  0x32   : > { %1356 = vmatmul.msk.f32.gmra.mxu1 %vm422_vm2, %v248_v47  ;;  %v811_v47 = vrot.slane %v258_v43, 2 }
  0x34   : > { %1347 = vmatmul.msk.f32.gmra.mxu3 %vm422_vm2, %v414_v55  ;;  %v812_v50 = vsel %vm784_vm3, %v810_v44, %v811_v47  ;;  %v814_v55 = vsel %vm784_vm3, %v811_v47, %v813_v53 }
  0x35   : > { %1389 = vmatmul.msk.f32.gmra.mxu2 %vm422_vm2, %v797_v56  ;;  %1323 = vmatmul.msk.f32.gmra.mxu0 %vm422_vm2, %v354_v57  ;;  %v371_v56 = vsel %vm341_vm1, %v368_v49, %v370_v54  ;;  %v260_v57 = vld [vmem:[%s1537_s28 + $0x90] sm:$0xff] }
  0x36   : > { %v815_v60 = vrot.slane %v260_v57, 2  ;;  %v372_v62 = vrot.slane %v260_v57, 1 }
  0x3a   : > { %1357 = vmatmul.msk.f32.gmra.mxu1 %vm422_vm2, %v249_v48  ;;  %v367_v48 = vrot.slane %v257_v42, 1 }
  0x3c   : > { %1348 = vmatmul.msk.f32.gmra.mxu3 %vm422_vm2, %v416_v63  ;;  %v369_v51 = vsel %vm341_vm1, %v367_v48, %v368_v49  ;;  %v373_v63 = vrot.slane %v261_v59, 1  ;;  %v1742_v49 = vld [vmem:[%s2007_s2] ss:$0 sm:$0xff] }
  0x3d   : > { %1390 = vmatmul.msk.f32.gmra.mxu2 %vm422_vm2, %v799_v0  ;;  %1324 = vmatmul.msk.f32.gmra.mxu0 %vm422_vm2, %v356_v1  ;;  %v817_v0 = vsel %vm784_vm3, %v815_v60, %v816_v61 }
  0x3e   : > { %v374_v1 = vsel %vm341_vm1, %v372_v62, %v373_v63  ;;  %v850_v62 = vrot.slane %v1567_v24, 2 }
  0x42   : > { %1358 = vmatmul.msk.f32.gmra.mxu1 %vm422_vm2, %v251_v6  ;;  %v262_v6 = vld [vmem:[%s1537_s28 + $0xa0] sm:$0x3] }
  0x43   : > { %v375_v8 = vrot.slane %v262_v6, 1 }
  0x44   : > { %1349 = vmatmul.msk.f32.gmra.mxu3 %vm422_vm2, %v419_v15  ;;  %v821_v15 = vrot.slane %v264_v12, 2 }
  0x45   : > { %1391 = vmatmul.msk.f32.gmra.mxu2 %vm422_vm2, %v802_v16  ;;  %1325 = vmatmul.msk.f32.gmra.mxu0 %vm422_vm2, %v359_v17  ;;  %v376_v10 = vsel %vm341_vm1, %v373_v63, %v375_v8  ;;  %v377_v16 = vrot.slane %v263_v11, 1  ;;  %v378_v17 = vrot.slane %v264_v12, 1  ;;  %v851_v63 = vrot.slane %v1570_v25, 2 }
  0x46   : > { %v822_v19 = vsel %vm784_vm3, %v820_v14, %v821_v15 }
  0x47   : > { %v379_v20 = vsel %vm341_vm1, %v377_v16, %v378_v17 }
  0x4a   : > { %1359 = vmatmul.msk.f32.gmra.mxu1 %vm422_vm2, %v252_v7  ;;  %v818_v7 = vrot.slane %v262_v6, 2 }
  0x4c   : > { %1350 = vmatmul.msk.f32.gmra.mxu3 %vm422_vm2, %v421_v23  ;;  %v819_v9 = vsel %vm784_vm3, %v816_v61, %v818_v7  ;;  %v380_v23 = vrot.slane %v265_v21, 1  ;;  %v853_v21 = vrot.slane %v1584_v37, 2 }
  0x4d   : > { %1392 = vmatmul.msk.f32.gmra.mxu2 %vm422_vm2, %v804_v26  ;;  %1326 = vmatmul.msk.f32.gmra.mxu0 %vm422_vm2, %v361_v27  ;;  %v824_v26 = vsel %vm784_vm3, %v821_v15, %v823_v22 }
  0x4e   : > { %v381_v27 = vsel %vm341_vm1, %v378_v17, %v380_v23  ;;  %v271_v17 = vld [vmem:[%s1537_s28 + $0xe8] sm:$0x3] }
  0x4f   : > { %v833_v22 = vrot.slane %v271_v17, 2 }
  0x52   : > { %1360 = vmatmul.msk.f32.gmra.mxu1 %vm422_vm2, %v254_v28  ;;  %v266_v28 = vld [vmem:[%s1537_s28 + $0xc0] sm:$0xff] }
  0x53   : > { %v825_v32 = vrot.slane %v266_v28, 2 }
  0x54   : > { %1376 = vmatmul.msk.f32.vlgmr.msrb.gmra.mxu3 %vm422_vm2, %v1540_v3 }
  0x55   : > { %1393 = vmatmul.msk.f32.gmra.mxu2 %vm422_vm2, %v807_v34  ;;  %1327 = vmatmul.msk.f32.gmra.mxu0 %vm422_vm2, %v364_v35  ;;  %v382_v35 = vrot.slane %v266_v28, 1 }
  0x5a   : > { %1361 = vmatmul.msk.f32.gmra.mxu1 %vm422_vm2, %v255_v29  ;;  %v267_v29 = vld [vmem:[%s1537_s28 + $0xc8] sm:$0xff] }
  0x5b   : > { %v826_v33 = vrot.slane %v267_v29, 2  ;;  %v383_v36 = vrot.slane %v267_v29, 1 }
  0x5c   : > { %1377 = vmatmul.msk.f32.gmra.mxu3 %vm422_vm2, %v1543_v4  ;;  %v848_v4 = vrot.slane %v1551_v13, 2 }
  0x5d   : > { %1394 = vmatmul.msk.f32.gmra.mxu2 %vm422_vm2, %v809_v40  ;;  %1328 = vmatmul.msk.f32.gmra.mxu0 %vm422_vm2, %v366_v41  ;;  %v827_v39 = vsel %vm784_vm3, %v825_v32, %v826_v33  ;;  %v384_v41 = vsel %vm341_vm1, %v382_v35, %v383_v36  ;;  %v272_v35 = vld [vmem:[%s1537_s28 + $0xf0] sm:$0xff] }
  0x5e   : > { %v849_v13 = vsel %vm784_vm3, %v846_v31, %v848_v4  ;;  %v854_v31 = vsel %vm784_vm3, %v851_v63, %v853_v21 }
  0x62   : > { %1362 = vmatmul.msk.f32.gmra.mxu1 %vm422_vm2, %v257_v42  ;;  %v268_v42 = vld [vmem:[%s1537_s28 + $0xd0] sm:$0x3] }
  0x63   : > { %v385_v47 = vrot.slane %v268_v42, 1 }
  0x64   : > { %1378 = vmatmul.msk.f32.gmra.mxu3 %vm422_vm2, %v1567_v24 }
  0x65   : > { %1395 = vmatmul.msk.f32.gmra.mxu2 %vm422_vm2, %v812_v50  ;;  %1329 = vmatmul.msk.f32.gmra.mxu0 %vm422_vm2, %v369_v51 }
  0x6a   : > { %1363 = vmatmul.msk.f32.gmra.mxu1 %vm422_vm2, %v258_v43  ;;  %v828_v43 = vrot.slane %v268_v42, 2  ;;  %v835_v42 = vrot.slane %v272_v35, 2 }
  0x6c   : > { %1379 = vmatmul.msk.f32.gmra.mxu3 %vm422_vm2, %v1570_v25  ;;  %v829_v53 = vsel %vm784_vm3, %v826_v33, %v828_v43  ;;  %v852_v25 = vsel %vm784_vm3, %v850_v62, %v851_v63  ;;  %v392_v43 = vrot.slane %v272_v35, 1 }
  0x6d   : > { %1396 = vmatmul.msk.f32.gmra.mxu2 %vm422_vm2, %v814_v55  ;;  %1330 = vmatmul.msk.f32.gmra.mxu0 %vm422_vm2, %v371_v56  ;;  %v386_v55 = vsel %vm341_vm1, %v383_v36, %v385_v47  ;;  %v273_v36 = vld [vmem:[%s1537_s28 + $0xf8] sm:$0xff] }
  0x72   : > { %1364 = vmatmul.msk.f32.gmra.mxu1 %vm422_vm2, %v260_v57  ;;  %v269_v57 = vld [vmem:[%s1537_s28 + $0xd8] sm:$0xff] }
  0x73   : > { %v387_v7 = vrot.slane %v269_v57, 1 }
  0x74   : > { %1380 = vmatmul.msk.f32.gmra.mxu3 %vm422_vm2, %v1596_v45 }
  0x75   : > { %1397 = vmatmul.msk.f32.gmra.mxu2 %vm422_vm2, %v817_v0  ;;  %1331 = vmatmul.msk.f32.gmra.mxu0 %vm422_vm2, %v374_v1  ;;  %v830_v0 = vrot.slane %v269_v57, 2 }
  0x7a   : > { %1365 = vmatmul.msk.f32.gmra.mxu1 %vm422_vm2, %v261_v59  ;;  %v270_v59 = vld [vmem:[%s1537_s28 + $0xe0] sm:$0xff] }
  0x7b   : > { %v831_v1 = vrot.slane %v270_v59, 2  ;;  %v388_v8 = vrot.slane %v270_v59, 1 }
  0x7c   : > { %1381 = vmatmul.msk.f32.gmra.mxu3 %vm422_vm2, %v1599_v46 }
  0x7d   : > { %1398 = vmatmul.msk.f32.gmra.mxu2 %vm422_vm2, %v819_v9  ;;  %1332 = vmatmul.msk.f32.gmra.mxu0 %vm422_vm2, %v376_v10  ;;  %v389_v15 = vsel %vm341_vm1, %v387_v7, %v388_v8  ;;  %v834_v32 = vsel %vm784_vm3, %v831_v1, %v833_v22 }
  0x82   : > { %1366 = vmatmul.msk.f32.gmra.mxu1 %vm422_vm2, %v263_v11 }
  0x84   : > { %1382 = vmatmul.msk.f32.gmra.mxu3 %vm422_vm2, %v1625_v2 }
  0x85   : > { %1399 = vmatmul.msk.f32.gmra.mxu2 %vm422_vm2, %v822_v19  ;;  %1333 = vmatmul.msk.f32.gmra.mxu0 %vm422_vm2, %v379_v20 }
  0x8a   : > { %1367 = vmatmul.msk.f32.gmra.mxu1 %vm422_vm2, %v264_v12  ;;  %v832_v12 = vsel %vm784_vm3, %v830_v0, %v831_v1 }
  0x8c   : > { %1383 = vmatmul.msk.f32.gmra.mxu3 %vm422_vm2, %v1628_v5 }
  0x8d   : > { %1400 = vmatmul.msk.f32.gmra.mxu2 %vm422_vm2, %v824_v26  ;;  %1334 = vmatmul.msk.f32.gmra.mxu0 %vm422_vm2, %v381_v27  ;;  %v390_v26 = vrot.slane %v271_v17, 1  ;;  %v861_v17 = vrot.slane %v1628_v5, 2 }
  0x8f   : > { %v688_v34 = vpop.f32.mrf.mxu1  ;;  %v391_v37 = vsel %vm341_vm1, %v388_v8, %v390_v26 }
  0x92   : > { %1368 = vmatmul.msk.f32.gmra.mxu1 %vm422_vm2, %v266_v28  ;;  %v508_v40 = vpop.f32.mrf.mxu0 }
  0x93   : > { %v689_v3 = vadd.f32 %v688_v34, %v508_v40  ;;  %v855_v40 = vrot.slane %v1596_v45, 2 }
  0x94   : > { %1409 = vmatmul.msk.f32.vlgmr.msra.gmra.mxu3 %vm422_vm2, %v847_v38 }
  0x95   : > { %1401 = vmatmul.msk.f32.gmra.mxu2 %vm422_vm2, %v827_v39  ;;  %1335 = vmatmul.msk.f32.gmra.mxu0 %vm422_vm2, %v384_v41  ;;  %v856_v41 = vrot.slane %v1599_v46, 2 }
  0x97   : > { %v691_v44 = vpop.f32.mrf.mxu1  ;;  %v1737_v48 = vpop.f32.mrf.mxu3 }
  0x98   : > { %v949_v50 = vpop.f32.mrf.mxu2 }
  0x99   : > { %v1045_v51 = vadd.f32 %v949_v50, %v689_v3  ;;  %v836_v3 = vrot.slane %v273_v36, 2 }
  0x9a   : > { %1369 = vmatmul.msk.f32.gmra.mxu1 %vm422_vm2, %v267_v29  ;;  %v511_v54 = vpop.f32.mrf.mxu0 }
  0x9b   : > { %v1081_v56 = vmul.f32 %v1742_v49, %v1045_v51  ;;  %v692_v61 = vadd.f32 %v691_v44, %v511_v54  ;;  %v393_v44 = vrot.slane %v273_v36, 1  ;;  %v837_v45 = vsel %vm784_vm3, %v835_v42, %v836_v3 }
  0x9c   : > { %1410 = vmatmul.msk.f32.gmra.mxu3 %vm422_vm2, %v849_v13 }
  0x9d   : > { %v1117_v60 = vadd.f32 %v1747_v52, %v1081_v56  ;;  %1402 = vmatmul.msk.f32.gmra.mxu2 %vm422_vm2, %v829_v53  ;;  %1336 = vmatmul.msk.f32.gmra.mxu0 %vm422_vm2, %v386_v55  ;;  %v857_v53 = vsel %vm784_vm3, %v855_v40, %v856_v41  ;;  %v394_v54 = vsel %vm341_vm1, %v392_v43, %v393_v44  ;;  %v274_v56 = vld [vmem:[%s1537_s28 + $0x100] sm:$0x3] }
  0x9e   : > { %v395_v63 = vrot.slane %v274_v56, 1 }
  0x9f   : > { %v694_v6 = vpop.f32.mrf.mxu1  ;;  %v1149_v9 = vmax.f32 %v1117_v60, 0.0  ;;  %v1768_v10 = vpop.f32.mrf.mxu3  ;;  %v858_v60 = vrot.slane %v1613_v58, 2 }
  0xa0   : > { %v952_v11 = vpop.f32.mrf.mxu2  ;;  %v396_v58 = vsel %vm341_vm1, %v393_v44, %v395_v63 }
  0xa1   : > { %1182 = vst.msk [vmem:[%s1766_s10] sm:$0xff] %vm1181_vm4, %v1149_v9  ;;  %v1046_v24 = vadd.f32 %v952_v11, %v692_v61  ;;  %v838_v61 = vrot.slane %v274_v56, 2  ;;  %v859_v8 = vsel %vm784_vm3, %v856_v41, %v858_v60 }
  0xa2   : > { %1370 = vmatmul.msk.f32.gmra.mxu1 %vm422_vm2, %v269_v57  ;;  %v514_v14 = vpop.f32.mrf.mxu0 }
  0xa3   : > { %v1082_v16 = vmul.f32 %v1742_v49, %v1046_v24  ;;  %v695_v20 = vadd.f32 %v694_v6, %v514_v14  ;;  %v839_v9 = vsel %vm784_vm3, %v836_v3, %v838_v61 }
  0xa4   : > { %1411 = vmatmul.msk.f32.gmra.mxu3 %vm422_vm2, %v852_v25  ;;  %v275_v25 = vld [vmem:[%s1537_s28 + $0x108] sm:$0xff] }
  0xa5   : > { %v1118_v19 = vadd.f32 %v1747_v52, %v1082_v16  ;;  %1403 = vmatmul.msk.f32.gmra.mxu2 %vm422_vm2, %v832_v12  ;;  %1337 = vmatmul.msk.f32.gmra.mxu0 %vm422_vm2, %v389_v15  ;;  %v276_v12 = vld [vmem:[%s1537_s28 + $0x110] sm:$0xff]  ;;  %v860_v16 = vrot.slane %v1625_v2, 2  ;;  %v397_v22 = vrot.slane %v275_v25, 1 }
  0xa7   : > { %v697_v23 = vpop.f32.mrf.mxu1  ;;  %v1150_v27 = vmax.f32 %v1118_v19, 0.0  ;;  %v1783_v28 = vpop.f32.mrf.mxu3  ;;  %v840_v19 = vrot.slane %v275_v25, 2 }
  0xa8   : > { %v955_v29 = vpop.f32.mrf.mxu2 }
  0xa9   : > { %1183 = vst.msk [vmem:[%s1766_s10 + $0x8] sm:$0xff] %vm1181_vm4, %v1150_v27  ;;  %v1047_v30 = vadd.f32 %v955_v29, %v695_v20  ;;  %v841_v20 = vrot.slane %v276_v12, 2 }
  0xaa   : > { %1371 = vmatmul.msk.f32.gmra.mxu1 %vm422_vm2, %v270_v59  ;;  %v517_v33 = vpop.f32.mrf.mxu0 }
  0xab   : > { %v1083_v34 = vmul.f32 %v1742_v49, %v1047_v30  ;;  %v698_v39 = vadd.f32 %v697_v23, %v517_v33  ;;  %v398_v23 = vrot.slane %v276_v12, 1  ;;  %v842_v2 = vsel %vm784_vm3, %v840_v19, %v841_v20 }
  0xac   : > { %1412 = vmatmul.msk.f32.gmra.mxu3 %vm422_vm2, %v854_v31  ;;  %v862_v31 = vsel %vm784_vm3, %v860_v16, %v861_v17 }
  0xad   : > { %v1119_v38 = vadd.f32 %v1747_v52, %v1083_v34  ;;  %1404 = vmatmul.msk.f32.gmra.mxu2 %vm422_vm2, %v834_v32  ;;  %1338 = vmatmul.msk.f32.gmra.mxu0 %vm422_vm2, %v391_v37  ;;  %v399_v32 = vsel %vm341_vm1, %v397_v22, %v398_v23  ;;  %v277_v37 = vld [vmem:[%s1537_s28 + $0x118] sm:$0x3] }
  0xae   : > { %v400_v40 = vrot.slane %v277_v37, 1 }
  0xaf   : > { %v700_v4 = vpop.f32.mrf.mxu1  ;;  %v1151_v47 = vmax.f32 %v1119_v38, 0.0  ;;  %v1800_v50 = vpop.f32.mrf.mxu3  ;;  %v843_v38 = vrot.slane %v277_v37, 2 }
  0xb0   : > { %v958_v51 = vpop.f32.mrf.mxu2 }
  0xb1   : > { %1184 = vst.msk [vmem:[%s1766_s10 + $0x10] sm:$0xff] %vm1181_vm4, %v1151_v47  ;;  %v1048_v13 = vadd.f32 %v958_v51, %v698_v39  ;;  %v844_v44 = vsel %vm784_vm3, %v841_v20, %v843_v38 }
  0xb2   : > { %1372 = vmatmul.msk.f32.gmra.mxu1 %vm422_vm2, %v272_v35  ;;  %v520_v46 = vpop.f32.mrf.mxu0 }
  0xb3   : > { %v1084_v55 = vmul.f32 %v1742_v49, %v1048_v13  ;;  %v701_v59 = vadd.f32 %v700_v4, %v520_v46 }
  0xb4   : > { %1413 = vmatmul.msk.f32.gmra.mxu3 %vm422_vm2, %v857_v53 }
  0xb5   : > { %v1120_v57 = vadd.f32 %v1747_v52, %v1084_v55  ;;  %1405 = vmatmul.msk.f32.gmra.mxu2 %vm422_vm2, %v837_v45  ;;  %1339 = vmatmul.msk.f32.gmra.mxu0 %vm422_vm2, %v394_v54 }
  0xb7   : > { %v703_v62 = vpop.f32.mrf.mxu1  ;;  %v1152_v0 = vmax.f32 %v1120_v57, 0.0  ;;  %v1815_v1 = vpop.f32.mrf.mxu3 }
  0xb8   : > { %v961_v6 = vpop.f32.mrf.mxu2 }
  0xb9   : > { %1185 = vst.msk [vmem:[%s1766_s10 + $0x18] sm:$0xff] %vm1181_vm4, %v1152_v0  ;;  %v1049_v7 = vadd.f32 %v961_v6, %v701_v59 }
  0xba   : > { %1373 = vmatmul.msk.f32.gmra.mxu1 %vm422_vm2, %v273_v36  ;;  %v523_v11 = vpop.f32.mrf.mxu0  ;;  %v863_v36 = vrot.slane %v1642_v18, 2  ;;  %v401_v18 = vsel %vm341_vm1, %v398_v23, %v400_v40 }
  0xbb   : > { %v1085_v24 = vmul.f32 %v1742_v49, %v1049_v7  ;;  %v704_v15 = vadd.f32 %v703_v62, %v523_v11 }
  0xbc   : > { %1414 = vmatmul.msk.f32.gmra.mxu3 %vm422_vm2, %v859_v8  ;;  %v864_v43 = vsel %vm784_vm3, %v861_v17, %v863_v36 }
  0xbd   : > { %v1121_v14 = vadd.f32 %v1747_v52, %v1085_v24  ;;  %1406 = vmatmul.msk.f32.gmra.mxu2 %vm422_vm2, %v839_v9  ;;  %1340 = vmatmul.msk.f32.gmra.mxu0 %vm422_vm2, %v396_v58 }
  0xbf   : > { %v706_v21 = vpop.f32.mrf.mxu1  ;;  %v1153_v26 = vmax.f32 %v1121_v14, 0.0  ;;  %v1832_v27 = vpop.f32.mrf.mxu3 }
  0xc0   : > { %v964_v29 = vpop.f32.mrf.mxu2 }
  0xc1   : > { %1186 = vst.msk [vmem:[%s1766_s10 + $0x20] sm:$0xff] %vm1181_vm4, %v1153_v26  ;;  %v1050_v30 = vadd.f32 %v964_v29, %v704_v15 }
  0xc2   : > { %1374 = vmatmul.msk.f32.gmra.mxu1 %vm422_vm2, %v275_v25  ;;  %v526_v5 = vpop.f32.mrf.mxu0 }
  0xc3   : > { %v1086_v33 = vmul.f32 %v1742_v49, %v1050_v30  ;;  %v707_v35 = vadd.f32 %v706_v21, %v526_v5 }
  0xc4   : > { %1415 = vmatmul.msk.f32.gmra.mxu3 %vm422_vm2, %v862_v31 }
  0xc5   : > { %v1122_v34 = vadd.f32 %v1747_v52, %v1086_v33  ;;  %1407 = vmatmul.msk.f32.gmra.mxu2 %vm422_vm2, %v842_v2  ;;  %1341 = vmatmul.msk.f32.gmra.mxu0 %vm422_vm2, %v399_v32 }
  0xc7   : > { %v709_v39 = vpop.f32.mrf.mxu1  ;;  %v1154_v41 = vmax.f32 %v1122_v34, 0.0  ;;  %v1847_v42 = vpop.f32.mrf.mxu3 }
  0xc8   : > { %v967_v3 = vpop.f32.mrf.mxu2 }
  0xc9   : > { %1187 = vst.msk [vmem:[%s1766_s10 + $0x28] sm:$0xff] %vm1181_vm4, %v1154_v41  ;;  %v1051_v4 = vadd.f32 %v967_v3, %v707_v35 }
  0xca   : > { %1375 = vmatmul.msk.f32.gmra.mxu1 %vm422_vm2, %v276_v12  ;;  %v529_v47 = vpop.f32.mrf.mxu0 }
  0xcb   : > { %v1087_v51 = vmul.f32 %v1742_v49, %v1051_v4  ;;  %v710_v53 = vadd.f32 %v709_v39, %v529_v47 }
  0xcc   : > { %1416 = vmatmul.msk.f32.gmra.mxu3 %vm422_vm2, %v864_v43 }
  0xcd   : > { %v1123_v13 = vadd.f32 %v1747_v52, %v1087_v51  ;;  %1408 = vmatmul.msk.f32.gmra.mxu2 %vm422_vm2, %v844_v44  ;;  %1342 = vmatmul.msk.f32.gmra.mxu0 %vm422_vm2, %v401_v18 }
  0xcf   : > { %v712_v45 = vpop.f32.mrf.mxu1  ;;  %v1155_v46 = vmax.f32 %v1123_v13, 0.0  ;;  %v1860_v54 = vpop.f32.mrf.mxu3 }
  0xd0   : > { %v970_v55 = vpop.f32.mrf.mxu2 }
  0xd1   : > { %1188 = vst.msk [vmem:[%s1766_s10 + $0x30] sm:$0xff] %vm1181_vm4, %v1155_v46  ;;  %v1052_v56 = vadd.f32 %v970_v55, %v710_v53 }
  0xd2   : > { %v532_v57 = vpop.f32.mrf.mxu0 }
  0xd3   : > { %v1088_v59 = vmul.f32 %v1742_v49, %v1052_v56  ;;  %v713_v61 = vadd.f32 %v712_v45, %v532_v57 }
  0xd5   : > { %v1124_v60 = vadd.f32 %v1747_v52, %v1088_v59 }
  0xd7   : > { %v715_v62 = vpop.f32.mrf.mxu1  ;;  %v1156_v63 = vmax.f32 %v1124_v60, 0.0  ;;  %v1866_v0 = vpop.f32.mrf.mxu3 }
  0xd8   : > { %v973_v6 = vpop.f32.mrf.mxu2 }
  0xd9   : > { %1189 = vst.msk [vmem:[%s1766_s10 + $0x38] sm:$0xff] %vm1181_vm4, %v1156_v63  ;;  %v1053_v7 = vadd.f32 %v973_v6, %v713_v61 }
  0xda   : > { %v535_v8 = vpop.f32.mrf.mxu0 }
  0xdb   : > { %v1089_v9 = vmul.f32 %v1742_v49, %v1053_v7  ;;  %v716_v58 = vadd.f32 %v715_v62, %v535_v8 }
  0xdd   : > { %v1125_v11 = vadd.f32 %v1747_v52, %v1089_v9 }
  0xdf   : > { %v718_v24 = vpop.f32.mrf.mxu1  ;;  %v1157_v25 = vmax.f32 %v1125_v11, 0.0  ;;  %v1872_v12 = vpop.f32.mrf.mxu3 }
  0xe0   : > { %v976_v14 = vpop.f32.mrf.mxu2 }
  0xe1   : > { %1190 = vst.msk [vmem:[%s1766_s10 + $0x40] sm:$0xff] %vm1181_vm4, %v1157_v25  ;;  %v1054_v15 = vadd.f32 %v976_v14, %v716_v58 }
  0xe2   : > { %v538_v16 = vpop.f32.mrf.mxu0 }
  0xe3   : > { %v1090_v17 = vmul.f32 %v1742_v49, %v1054_v15  ;;  %v719_v20 = vadd.f32 %v718_v24, %v538_v16 }
  0xe5   : > { %v1126_v19 = vadd.f32 %v1747_v52, %v1090_v17 }
  0xe7   : > { %v721_v21 = vpop.f32.mrf.mxu1  ;;  %v1158_v22 = vmax.f32 %v1126_v19, 0.0  ;;  %v1878_v23 = vpop.f32.mrf.mxu3 }
  0xe8   : > { %v979_v26 = vpop.f32.mrf.mxu2 }
  0xe9   : > { %1191 = vst.msk [vmem:[%s1766_s10 + $0x48] sm:$0xff] %vm1181_vm4, %v1158_v22  ;;  %v1055_v29 = vadd.f32 %v979_v26, %v719_v20  ;;  %v761_v26 = vadd.f32 %v1866_v0, %v1737_v48  ;;  %v764_v0 = vadd.f32 %v1872_v12, %v1768_v10 }
  0xea   : > { %v541_v30 = vpop.f32.mrf.mxu0 }
  0xeb   : > { %v1091_v31 = vmul.f32 %v1742_v49, %v1055_v29  ;;  %v722_v5 = vadd.f32 %v721_v21, %v541_v30 }
  0xed   : > { %v1127_v2 = vadd.f32 %v1747_v52, %v1091_v31 }
  0xef   : > { %v724_v32 = vpop.f32.mrf.mxu1  ;;  %v1159_v33 = vmax.f32 %v1127_v2, 0.0  ;;  %v1884_v37 = vpop.f32.mrf.mxu3 }
  0xf0   : > { %v982_v34 = vpop.f32.mrf.mxu2 }
  0xf1   : > { %1192 = vst.msk [vmem:[%s1766_s10 + $0x50] sm:$0xff] %vm1181_vm4, %v1159_v33  ;;  %v1056_v35 = vadd.f32 %v982_v34, %v722_v5 }
  0xf2   : > { %v544_v36 = vpop.f32.mrf.mxu0 }
  0xf3   : > { %v1092_v38 = vmul.f32 %v1742_v49, %v1056_v35  ;;  %v725_v40 = vadd.f32 %v724_v32, %v544_v36 }
  0xf5   : > { %v1128_v39 = vadd.f32 %v1747_v52, %v1092_v38 }
  0xf7   : > { %v727_v41 = vpop.f32.mrf.mxu1  ;;  %v1160_v3 = vmax.f32 %v1128_v39, 0.0  ;;  %v1890_v4 = vpop.f32.mrf.mxu3 }
  0xf8   : > { %v985_v43 = vpop.f32.mrf.mxu2 }
  0xf9   : > { %1193 = vst.msk [vmem:[%s1766_s10 + $0x58] sm:$0xff] %vm1181_vm4, %v1160_v3  ;;  %v1057_v44 = vadd.f32 %v985_v43, %v725_v40 }
  0xfa   : > { %v547_v47 = vpop.f32.mrf.mxu0 }
  0xfb   : > { %v1093_v18 = vmul.f32 %v1742_v49, %v1057_v44  ;;  %v728_v13 = vadd.f32 %v727_v41, %v547_v47 }
  0xfd   : > { %v1129_v51 = vadd.f32 %v1747_v52, %v1093_v18 }
  0xff   : > { %v730_v53 = vpop.f32.mrf.mxu1  ;;  %v1161_v45 = vmax.f32 %v1129_v51, 0.0  ;;  %v1896_v46 = vpop.f32.mrf.mxu3 }
 0x100   : > { %v988_v55 = vpop.f32.mrf.mxu2 }
 0x101   : > { %1194 = vst.msk [vmem:[%s1766_s10 + $0x60] sm:$0xff] %vm1181_vm4, %v1161_v45  ;;  %v1058_v56 = vadd.f32 %v988_v55, %v728_v13  ;;  %v767_v45 = vadd.f32 %v1878_v23, %v1783_v28 }
 0x102   : > { %v550_v57 = vpop.f32.mrf.mxu0 }
 0x103   : > { %v1094_v59 = vmul.f32 %v1742_v49, %v1058_v56  ;;  %v731_v61 = vadd.f32 %v730_v53, %v550_v57 }
 0x105   : > { %v1130_v60 = vadd.f32 %v1747_v52, %v1094_v59 }
 0x107   : > { %v733_v62 = vpop.f32.mrf.mxu1  ;;  %v1162_v63 = vmax.f32 %v1130_v60, 0.0  ;;  %v1902_v6 = vpop.f32.mrf.mxu3 }
 0x108   : > { %v991_v7 = vpop.f32.mrf.mxu2 }
 0x109   : > { %1195 = vst.msk [vmem:[%s1766_s10 + $0x68] sm:$0xff] %vm1181_vm4, %v1162_v63  ;;  %v1059_v8 = vadd.f32 %v991_v7, %v731_v61 }
 0x10a   : > { %v553_v9 = vpop.f32.mrf.mxu0 }
 0x10b   : > { %v1095_v11 = vmul.f32 %v1742_v49, %v1059_v8  ;;  %v734_v24 = vadd.f32 %v733_v62, %v553_v9 }
 0x10d   : > { %v1131_v58 = vadd.f32 %v1747_v52, %v1095_v11  ;;  %v770_v11 = vadd.f32 %v1884_v37, %v1800_v50 }
 0x10f   : > { %v736_v25 = vpop.f32.mrf.mxu1  ;;  %v1163_v14 = vmax.f32 %v1131_v58, 0.0  ;;  %v1908_v15 = vpop.f32.mrf.mxu3 }
 0x110   : > { %v994_v16 = vpop.f32.mrf.mxu2 }
 0x111   : > { %1196 = vst.msk [vmem:[%s1766_s10 + $0x70] sm:$0xff] %vm1181_vm4, %v1163_v14  ;;  %v1060_v17 = vadd.f32 %v994_v16, %v734_v24 }
 0x112   : > { %v556_v19 = vpop.f32.mrf.mxu0 }
 0x113   : > { %v1096_v20 = vmul.f32 %v1742_v49, %v1060_v17  ;;  %v737_v22 = vadd.f32 %v736_v25, %v556_v19 }
 0x115   : > { %v1132_v21 = vadd.f32 %v1747_v52, %v1096_v20 }
 0x117   : > { %v739_v29 = vpop.f32.mrf.mxu1  ;;  %v1164_v30 = vmax.f32 %v1132_v21, 0.0  ;;  %v1021_v31 = vpop.f32.mrf.mxu3 }
 0x118   : > { %v997_v2 = vpop.f32.mrf.mxu2  ;;  %v1069_v5 = vadd.f32 %v1021_v31, %v761_v26 }
 0x119   : > { %1197 = vst.msk [vmem:[%s1766_s10 + $0x78] sm:$0xff] %vm1181_vm4, %v1164_v30  ;;  %v1061_v32 = vadd.f32 %v997_v2, %v737_v22 }
 0x11a   : > { %v1105_v33 = vmul.f32 %v1742_v49, %v1069_v5  ;;  %v559_v34 = vpop.f32.mrf.mxu0 }
 0x11b   : > { %v1097_v35 = vmul.f32 %v1742_v49, %v1061_v32  ;;  %v740_v48 = vadd.f32 %v739_v29, %v559_v34  ;;  %v773_v29 = vadd.f32 %v1890_v4, %v1815_v1 }
 0x11c   : > { %v1141_v36 = vadd.f32 %v1747_v52, %v1105_v33 }
 0x11d   : > { %v1133_v38 = vadd.f32 %v1747_v52, %v1097_v35 }
 0x11e   : > { %v1173_v39 = vmax.f32 %v1141_v36, 0.0 }
 0x11f   : > { %v742_v40 = vpop.f32.mrf.mxu1  ;;  %v1165_v41 = vmax.f32 %v1133_v38, 0.0  ;;  %v1024_v3 = vpop.f32.mrf.mxu3 }
 0x120   : > { %1206 = vst.msk [vmem:[%s1766_s10 + $0xc0] sm:$0xff] %vm1181_vm4, %v1173_v39  ;;  %v1000_v43 = vpop.f32.mrf.mxu2  ;;  %v1070_v44 = vadd.f32 %v1024_v3, %v764_v0  ;;  %v776_v0 = vadd.f32 %v1896_v46, %v1832_v27 }
 0x121   : > { %1198 = vst.msk [vmem:[%s1766_s10 + $0x80] sm:$0xff] %vm1181_vm4, %v1165_v41  ;;  %v1062_v47 = vadd.f32 %v1000_v43, %v740_v48 }
 0x122   : > { %v1106_v18 = vmul.f32 %v1742_v49, %v1070_v44  ;;  %v562_v51 = vpop.f32.mrf.mxu0 }
 0x123   : > { %v1098_v13 = vmul.f32 %v1742_v49, %v1062_v47  ;;  %v743_v53 = vadd.f32 %v742_v40, %v562_v51 }
 0x124   : > { %v1142_v10 = vadd.f32 %v1747_v52, %v1106_v18 }
 0x125   : > { %v1134_v12 = vadd.f32 %v1747_v52, %v1098_v13 }
 0x126   : > { %v1174_v55 = vmax.f32 %v1142_v10, 0.0 }
 0x127   : > { %v745_v56 = vpop.f32.mrf.mxu1  ;;  %v1166_v57 = vmax.f32 %v1134_v12, 0.0  ;;  %v1027_v59 = vpop.f32.mrf.mxu3  ;;  %v779_v12 = vadd.f32 %v1902_v6, %v1847_v42 }
 0x128   : > { %1207 = vst.msk [vmem:[%s1766_s10 + $0xc8] sm:$0xff] %vm1181_vm4, %v1174_v55  ;;  %v1003_v60 = vpop.f32.mrf.mxu2  ;;  %v1071_v61 = vadd.f32 %v1027_v59, %v767_v45 }
 0x129   : > { %1199 = vst.msk [vmem:[%s1766_s10 + $0x88] sm:$0xff] %vm1181_vm4, %v1166_v57  ;;  %v1063_v62 = vadd.f32 %v1003_v60, %v743_v53 }
 0x12a   : > { %v1107_v63 = vmul.f32 %v1742_v49, %v1071_v61  ;;  %v565_v7 = vpop.f32.mrf.mxu0 }
 0x12b   : > { %v1099_v8 = vmul.f32 %v1742_v49, %v1063_v62  ;;  %v746_v9 = vadd.f32 %v745_v56, %v565_v7 }
 0x12c   : > { %v1143_v28 = vadd.f32 %v1747_v52, %v1107_v63 }
 0x12d   : > { %v1135_v23 = vadd.f32 %v1747_v52, %v1099_v8  ;;  %v782_v8 = vadd.f32 %v1908_v15, %v1860_v54 }
 0x12e   : > { %v1175_v58 = vmax.f32 %v1143_v28, 0.0 }
 0x12f   : > { %v748_v24 = vpop.f32.mrf.mxu1  ;;  %v1167_v25 = vmax.f32 %v1135_v23, 0.0  ;;  %v1030_v14 = vpop.f32.mrf.mxu3 }
 0x130   : > { %1208 = vst.msk [vmem:[%s1766_s10 + $0xd0] sm:$0xff] %vm1181_vm4, %v1175_v58  ;;  %v1006_v16 = vpop.f32.mrf.mxu2  ;;  %v1072_v17 = vadd.f32 %v1030_v14, %v770_v11 }
 0x131   : > { %1200 = vst.msk [vmem:[%s1766_s10 + $0x90] sm:$0xff] %vm1181_vm4, %v1167_v25  ;;  %v1064_v19 = vadd.f32 %v1006_v16, %v746_v9 }
 0x132   : > { %v1108_v20 = vmul.f32 %v1742_v49, %v1072_v17  ;;  %v568_v21 = vpop.f32.mrf.mxu0 }
 0x133   : > { %v1100_v22 = vmul.f32 %v1742_v49, %v1064_v19  ;;  %v749_v26 = vadd.f32 %v748_v24, %v568_v21 }
 0x134   : > { %v1144_v50 = vadd.f32 %v1747_v52, %v1108_v20 }
 0x135   : > { %v1136_v37 = vadd.f32 %v1747_v52, %v1100_v22 }
 0x136   : > { %v1176_v30 = vmax.f32 %v1144_v50, 0.0 }
 0x137   : > { %v751_v31 = vpop.f32.mrf.mxu1  ;;  %v1168_v2 = vmax.f32 %v1136_v37, 0.0  ;;  %v1033_v5 = vpop.f32.mrf.mxu3 }
 0x138   : > { %1209 = vst.msk [vmem:[%s1766_s10 + $0xd8] sm:$0xff] %vm1181_vm4, %v1176_v30  ;;  %v1009_v32 = vpop.f32.mrf.mxu2  ;;  %v1073_v33 = vadd.f32 %v1033_v5, %v773_v29 }
 0x139   : > { %1201 = vst.msk [vmem:[%s1766_s10 + $0x98] sm:$0xff] %vm1181_vm4, %v1168_v2  ;;  %v1065_v34 = vadd.f32 %v1009_v32, %v749_v26 }
 0x13a   : > { %v1109_v35 = vmul.f32 %v1742_v49, %v1073_v33  ;;  %v571_v36 = vpop.f32.mrf.mxu0 }
 0x13b   : > { %v1101_v38 = vmul.f32 %v1742_v49, %v1065_v34  ;;  %v752_v48 = vadd.f32 %v751_v31, %v571_v36 }
 0x13c   : > { %v1145_v1 = vadd.f32 %v1747_v52, %v1109_v35 }
 0x13d   : > { %v1137_v4 = vadd.f32 %v1747_v52, %v1101_v38 }
 0x13e   : > { %v1177_v39 = vmax.f32 %v1145_v1, 0.0 }
 0x13f   : > { %v1169_v40 = vmax.f32 %v1137_v4, 0.0  ;;  %v1036_v41 = vpop.f32.mrf.mxu3  ;;  %v754_v44 = vpop.f32.mrf.mxu1 }
 0x140   : > { %1210 = vst.msk [vmem:[%s1766_s10 + $0xe0] sm:$0xff] %vm1181_vm4, %v1177_v39  ;;  %v1012_v3 = vpop.f32.mrf.mxu2  ;;  %v1074_v43 = vadd.f32 %v1036_v41, %v776_v0 }
 0x141   : > { %1202 = vst.msk [vmem:[%s1766_s10 + $0xa0] sm:$0xff] %vm1181_vm4, %v1169_v40  ;;  %v1066_v47 = vadd.f32 %v1012_v3, %v752_v48 }
 0x142   : > { %v1110_v18 = vmul.f32 %v1742_v49, %v1074_v43  ;;  %v574_v51 = vpop.f32.mrf.mxu0 }
 0x143   : > { %v1102_v13 = vmul.f32 %v1742_v49, %v1066_v47  ;;  %v755_v10 = vadd.f32 %v754_v44, %v574_v51 }
 0x144   : > { %v1146_v27 = vadd.f32 %v1747_v52, %v1110_v18 }
 0x145   : > { %v1138_v46 = vadd.f32 %v1747_v52, %v1102_v13 }
 0x146   : > { %v1178_v53 = vmax.f32 %v1146_v27, 0.0 }
 0x147   : > { %v1170_v45 = vmax.f32 %v1138_v46, 0.0  ;;  %v1039_v55 = vpop.f32.mrf.mxu3  ;;  %v757_v62 = vpop.f32.mrf.mxu1 }
 0x148   : > { %1211 = vst.msk [vmem:[%s1766_s10 + $0xe8] sm:$0xff] %vm1181_vm4, %v1178_v53  ;;  %v1015_v56 = vpop.f32.mrf.mxu2  ;;  %v1075_v57 = vadd.f32 %v1039_v55, %v779_v12 }
 0x149   : > { %1203 = vst.msk [vmem:[%s1766_s10 + $0xa8] sm:$0xff] %vm1181_vm4, %v1170_v45  ;;  %v1067_v59 = vadd.f32 %v1015_v56, %v755_v10 }
 0x14a   : > { %v1111_v60 = vmul.f32 %v1742_v49, %v1075_v57  ;;  %v577_v61 = vpop.f32.mrf.mxu0 }
 0x14b   : > { %v1103_v63 = vmul.f32 %v1742_v49, %v1067_v59  ;;  %v758_v7 = vadd.f32 %v757_v62, %v577_v61 }
 0x14c   : > { %v1147_v42 = vadd.f32 %v1747_v52, %v1111_v60 }
 0x14d   : > { %v1139_v6 = vadd.f32 %v1747_v52, %v1103_v63 }
 0x14e   : > { %v1179_v28 = vmax.f32 %v1147_v42, 0.0 }
 0x14f   : > { %v1171_v23 = vmax.f32 %v1139_v6, 0.0  ;;  %v1042_v9 = vpop.f32.mrf.mxu3 }
 0x150   : > { %1212 = vst.msk [vmem:[%s1766_s10 + $0xf0] sm:$0xff] %vm1181_vm4, %v1179_v28  ;;  %v1018_v11 = vpop.f32.mrf.mxu2  ;;  %v1076_v58 = vadd.f32 %v1042_v9, %v782_v8 }
 0x151   : > { %1204 = vst.msk [vmem:[%s1766_s10 + $0xb0] sm:$0xff] %vm1181_vm4, %v1171_v23  ;;  %v1068_v24 = vadd.f32 %v1018_v11, %v758_v7 }
 0x152   : > { %v1112_v25 = vmul.f32 %v1742_v49, %v1076_v58 }
 0x153   : > { %v1104_v14 = vmul.f32 %v1742_v49, %v1068_v24 }
 0x154   : > { %v1148_v16 = vadd.f32 %v1747_v52, %v1112_v25 }
 0x155   : > { %v1140_v17 = vadd.f32 %v1747_v52, %v1104_v14 }
 0x156   : > { %v1180_v54 = vmax.f32 %v1148_v16, 0.0 }
 0x157   : > { %v1172_v15 = vmax.f32 %v1140_v17, 0.0 }
 0x158   : > { %1213 = vst.msk [vmem:[%s1766_s10 + $0xf8] sm:$0xff] %vm1181_vm4, %v1180_v54 }
 0x159   : > { %1205 = vst.msk [vmem:[%s1766_s10 + $0xb8] sm:$0xff] %vm1181_vm4, %v1172_v15 }
 0x15a PF: > { %s14_s17 = sadd.s32 1, %s1472_s17   ;;  %s2010_s15 = smov %s1468_s16 }
 0x15b   : > { %p11_p5 = scmp.ge.s32.totalorder %s14_s17, 4   ;;  %s2011_s16 = smov %s2013_s18 }
 0x15d   :  { %13 = sbr.rel (!%p11_p5) target bundleno = 2 (0x2), region = 66 }

// kernel: gc_bn_relu_forward.7
= control target key start
LH: loop header
LB: loop body
LE: loop exit
PB: predicated region body
PF: predicated region fallthrough
CT: control target
= control target key end

     0   :  { %s1727_s27 = smov 0   ;;  %s1729_s28 = smov 0   ;;  %s2257_s0 = inlined_call_operand.vmem [shape: f32[2,18,16,8], index: 0, kind: input, shape index: {}]   ;;  %s2258_s1 = inlined_call_operand.vmem [shape: f32[2,16,16,8], index: 1, kind: input, shape index: {}]   ;;  %s2259_s2 = inlined_call_operand.vmem [shape: f32[3,8,8], index: 2, kind: input, shape index: {}]   ;;  %s2260_s3 = inlined_call_operand.vmem [shape: f32[1,8], index: 3, kind: input, shape index: {}]   ;;  %s2261_s4 = inlined_call_operand.vmem [shape: f32[1,8], index: 4, kind: input, shape index: {}]   ;;  %s2262_s5 = inlined_call_operand.vmem [shape: f32[8,8], index: 5, kind: input, shape index: {}]   ;;  %s2263_s6 = inlined_call_operand.vmem [shape: f32[1,8], index: 6, kind: input, shape index: {}]   ;;  %s2264_s7 = inlined_call_operand.vmem [shape: f32[1,8], index: 7, kind: input, shape index: {}]   ;;  %s2265_s8 = inlined_call_operand.vmem [shape: f32[2,16,16,8], index: 8, kind: output, shape index: {}]  }
   0x1   :  { %s1731_s29 = smov 0  }
   0x2 LB: > { %s30_s30 = sadd.s32 1, %s1676_s28  ;;  %p1491_p0 = scmp.ge.s32.totalorder %s1680_s29, 1  ;;  %s1680_s29 = sphi %s1731_s29, %s18_s29   ;;  %s1676_s28 = sphi %s1729_s28, %s2267_s28   ;;  %s1672_s27 = sphi %s1727_s27, %s2266_s27  }
   0x3   : > { %p32_p1 = scmp.ge.s32.totalorder %s30_s30, 2  ;;  %p300_p2 = scmp.lt.s32.totalorder %s1680_s29, 3 }
   0x5   : > { %s2269_s30 = smov (%p32_p1, %s30_s30), 0  ;;  %p301_p3 = pnand %p1491_p0, %p300_p2 }
   0x6   : > { %p352_p4 = scmp.lt.s32.totalorder (!%p301_p3), %s1672_s27, 1 }
   0x7   : > { %304 = sbr.rel (%p301_p3) target bundleno = 544 (0x220), region = 52 }
   0xc   : > { %v419_v0 = vld [vmem:[%s2259_s2 + $0x10] sm:$0xff]  ;;  %v418_v1 = vld [vmem:[%s2259_s2 + $0x8] sm:$0xff]  ;;  %v417_v2 = vld [vmem:[%s2259_s2] sm:$0xff]  ;;  %s2271_s27 = smov (!%p352_p4, %s1672_s27), 1  ;;  %vm420_vm0 = vcmask 64512  }
   0xd   : > { %770 = vmatpush.msra.mxu2 %v419_v0  ;;  %532 = vmatpush.msra.mxu0 %v418_v1  ;;  %s1629_s15 = smul.u32 288, %s2271_s27  ;;  %v1068_v21 = vld [vmem:[%s2262_s5] sm:$0xff]  ;;  %s1627_s23 = sshll.u32 %s2271_s27, 8 }
   0xe   : > { %651 = vmatpush.msra.mxu1 %v417_v2  ;;  %1180 = vmatpush.msra.mxu3 %v1068_v21  ;;  %v1843_v28 = vld [vmem:[%s2260_s3] ss:$0 sm:$0xff]  ;;  %s1860_s10 = scalar_lea.vmem %s2258_s1, %s1627_s23  ;;  %s2062_s17 = scalar_lea.vmem %s2265_s8, %s1627_s23 }
   0xf   : > { %s1760_s18 = scalar_lea.vmem %s2257_s0, %s1629_s15  ;;  %v1849_v31 = vld [vmem:[%s2261_s4] ss:$0 sm:$0xff]  ;;  %v1005_v49 = vld [vmem:[%s1860_s10 + $0x8] sm:$0xff]  ;;  %v1006_v60 = vld [vmem:[%s1860_s10 + $0x10] sm:$0xff] }
  0x10   : > { %v385_v3 = vld [vmem:[%s1760_s18 + $0x20] sm:$0xff]  ;;  %v383_v4 = vld [vmem:[%s1760_s18 + $0x10] sm:$0xff]  ;;  %v386_v6 = vld [vmem:[%s1760_s18 + $0x28] sm:$0xff] }
  0x11   : > { %v381_v5 = vld [vmem:[%s1760_s18] sm:$0xff]  ;;  %1561 = vmatmul.msk.f32.vlgmr.msra.gmra.mxu2 %vm420_vm0, %v385_v3  ;;  %1497 = vmatmul.msk.f32.vlgmr.msra.gmra.mxu0 %vm420_vm0, %v383_v4  ;;  %v384_v7 = vld [vmem:[%s1760_s18 + $0x18] sm:$0xff]  ;;  %v382_v8 = vld [vmem:[%s1760_s18 + $0x8] sm:$0xff] }
  0x12   : > { %1529 = vmatmul.msk.f32.vlgmr.msra.gmra.mxu1 %vm420_vm0, %v381_v5  ;;  %v387_v9 = vld [vmem:[%s1760_s18 + $0x30] sm:$0xff]  ;;  %v388_v10 = vld [vmem:[%s1760_s18 + $0x38] sm:$0xff]  ;;  %v389_v11 = vld [vmem:[%s1760_s18 + $0x40] sm:$0xff] }
  0x13   : > { %v390_v12 = vld [vmem:[%s1760_s18 + $0x48] sm:$0xff]  ;;  %v391_v13 = vld [vmem:[%s1760_s18 + $0x50] sm:$0xff]  ;;  %v392_v14 = vld [vmem:[%s1760_s18 + $0x58] sm:$0xff] }
  0x14   : > { %v393_v15 = vld [vmem:[%s1760_s18 + $0x60] sm:$0xff]  ;;  %v394_v16 = vld [vmem:[%s1760_s18 + $0x68] sm:$0xff]  ;;  %v395_v17 = vld [vmem:[%s1760_s18 + $0x70] sm:$0xff] }
  0x15   : > { %v396_v18 = vld [vmem:[%s1760_s18 + $0x78] sm:$0xff]  ;;  %v397_v19 = vld [vmem:[%s1760_s18 + $0x80] sm:$0xff]  ;;  %v398_v20 = vld [vmem:[%s1760_s18 + $0x88] sm:$0xff] }
  0x16   : > { %v399_v22 = vld [vmem:[%s1760_s18 + $0x90] sm:$0xff]  ;;  %v400_v23 = vld [vmem:[%s1760_s18 + $0x98] sm:$0xff]  ;;  %v1834_v24 = vld [vmem:[%s1760_s18 + $0xa0] sm:$0xff] }
  0x17   : > { %v1852_v32 = vld [vmem:[%s1760_s18 + $0xa8] sm:$0xff]  ;;  %v1004_v38 = vld [vmem:[%s1860_s10] sm:$0xff]  ;;  %v1869_v43 = vld [vmem:[%s1760_s18 + $0xb0] sm:$0xff] }
  0x18   : > { %v1881_v54 = vld [vmem:[%s1760_s18 + $0xb8] sm:$0xff]  ;;  %v1893_v1 = vld [vmem:[%s1760_s18 + $0xc0] sm:$0xff] }
  0x19   : > { %1562 = vmatmul.msk.f32.gmra.mxu2 %vm420_vm0, %v386_v6  ;;  %1498 = vmatmul.msk.f32.gmra.mxu0 %vm420_vm0, %v384_v7 }
  0x1a   : > { %1530 = vmatmul.msk.f32.gmra.mxu1 %vm420_vm0, %v382_v8 }
  0x21   : > { %1563 = vmatmul.msk.f32.gmra.mxu2 %vm420_vm0, %v387_v9  ;;  %1499 = vmatmul.msk.f32.gmra.mxu0 %vm420_vm0, %v385_v3 }
  0x22   : > { %1531 = vmatmul.msk.f32.gmra.mxu1 %vm420_vm0, %v383_v4 }
  0x29   : > { %1564 = vmatmul.msk.f32.gmra.mxu2 %vm420_vm0, %v388_v10  ;;  %1500 = vmatmul.msk.f32.gmra.mxu0 %vm420_vm0, %v386_v6 }
  0x2a   : > { %1532 = vmatmul.msk.f32.gmra.mxu1 %vm420_vm0, %v384_v7  ;;  %v1007_v7 = vld [vmem:[%s1860_s10 + $0x18] sm:$0xff] }
  0x31   : > { %1565 = vmatmul.msk.f32.gmra.mxu2 %vm420_vm0, %v389_v11  ;;  %1501 = vmatmul.msk.f32.gmra.mxu0 %vm420_vm0, %v387_v9 }
  0x32   : > { %1533 = vmatmul.msk.f32.gmra.mxu1 %vm420_vm0, %v385_v3 }
  0x39   : > { %1566 = vmatmul.msk.f32.gmra.mxu2 %vm420_vm0, %v390_v12  ;;  %1502 = vmatmul.msk.f32.gmra.mxu0 %vm420_vm0, %v388_v10 }
  0x3a   : > { %1534 = vmatmul.msk.f32.gmra.mxu1 %vm420_vm0, %v386_v6 }
  0x41   : > { %1567 = vmatmul.msk.f32.gmra.mxu2 %vm420_vm0, %v391_v13  ;;  %1503 = vmatmul.msk.f32.gmra.mxu0 %vm420_vm0, %v389_v11 }
  0x42   : > { %1535 = vmatmul.msk.f32.gmra.mxu1 %vm420_vm0, %v387_v9 }
  0x49   : > { %1568 = vmatmul.msk.f32.gmra.mxu2 %vm420_vm0, %v392_v14  ;;  %1504 = vmatmul.msk.f32.gmra.mxu0 %vm420_vm0, %v390_v12 }
  0x4a   : > { %1536 = vmatmul.msk.f32.gmra.mxu1 %vm420_vm0, %v388_v10 }
  0x51   : > { %1569 = vmatmul.msk.f32.gmra.mxu2 %vm420_vm0, %v393_v15  ;;  %1505 = vmatmul.msk.f32.gmra.mxu0 %vm420_vm0, %v391_v13 }
  0x52   : > { %1537 = vmatmul.msk.f32.gmra.mxu1 %vm420_vm0, %v389_v11 }
  0x59   : > { %1570 = vmatmul.msk.f32.gmra.mxu2 %vm420_vm0, %v394_v16  ;;  %1506 = vmatmul.msk.f32.gmra.mxu0 %vm420_vm0, %v392_v14 }
  0x5a   : > { %1538 = vmatmul.msk.f32.gmra.mxu1 %vm420_vm0, %v390_v12  ;;  %v1906_v12 = vld [vmem:[%s1760_s18 + $0xc8] sm:$0xff] }
  0x61   : > { %1571 = vmatmul.msk.f32.gmra.mxu2 %vm420_vm0, %v395_v17  ;;  %1507 = vmatmul.msk.f32.gmra.mxu0 %vm420_vm0, %v393_v15 }
  0x62   : > { %1539 = vmatmul.msk.f32.gmra.mxu1 %vm420_vm0, %v391_v13 }
  0x69   : > { %1572 = vmatmul.msk.f32.gmra.mxu2 %vm420_vm0, %v396_v18  ;;  %1508 = vmatmul.msk.f32.gmra.mxu0 %vm420_vm0, %v394_v16 }
  0x6a   : > { %1540 = vmatmul.msk.f32.gmra.mxu1 %vm420_vm0, %v392_v14 }
  0x71   : > { %1573 = vmatmul.msk.f32.gmra.mxu2 %vm420_vm0, %v397_v19  ;;  %1509 = vmatmul.msk.f32.gmra.mxu0 %vm420_vm0, %v395_v17 }
  0x72   : > { %1541 = vmatmul.msk.f32.gmra.mxu1 %vm420_vm0, %v393_v15 }
  0x79   : > { %1574 = vmatmul.msk.f32.gmra.mxu2 %vm420_vm0, %v398_v20  ;;  %1510 = vmatmul.msk.f32.gmra.mxu0 %vm420_vm0, %v396_v18 }
  0x7a   : > { %1542 = vmatmul.msk.f32.gmra.mxu1 %vm420_vm0, %v394_v16 }
  0x81   : > { %1575 = vmatmul.msk.f32.gmra.mxu2 %vm420_vm0, %v399_v22  ;;  %1511 = vmatmul.msk.f32.gmra.mxu0 %vm420_vm0, %v397_v19 }
  0x82   : > { %1543 = vmatmul.msk.f32.gmra.mxu1 %vm420_vm0, %v395_v17 }
  0x89   : > { %1576 = vmatmul.msk.f32.gmra.mxu2 %vm420_vm0, %v400_v23  ;;  %1512 = vmatmul.msk.f32.gmra.mxu0 %vm420_vm0, %v398_v20 }
  0x8a   : > { %1544 = vmatmul.msk.f32.gmra.mxu1 %vm420_vm0, %v396_v18  ;;  %v1008_v18 = vld [vmem:[%s1860_s10 + $0x20] sm:$0xff] }
  0x8e   : > { %v534_v25 = vpop.f32.mrf.mxu0 }
  0x8f   : > { %v653_v26 = vpop.f32.mrf.mxu1 }
  0x90   : > { %v654_v27 = vadd.f32 %v653_v26, %v534_v25 }
  0x91   : > { %1577 = vmatmul.msk.f32.gmra.mxu2 %vm420_vm0, %v1834_v24  ;;  %1513 = vmatmul.msk.f32.gmra.mxu0 %vm420_vm0, %v399_v22 }
  0x92   : > { %1545 = vmatmul.msk.f32.gmra.mxu1 %vm420_vm0, %v397_v19 }
  0x94   : > { %v772_v29 = vpop.f32.mrf.mxu2 }
  0x95   : > { %v868_v30 = vadd.f32 %v772_v29, %v654_v27 }
  0x96   : > { %v537_v33 = vpop.f32.mrf.mxu0 }
  0x97   : > { %v904_v34 = vmul.f32 %v1843_v28, %v868_v30  ;;  %v656_v35 = vpop.f32.mrf.mxu1  ;;  %v1009_v30 = vld [vmem:[%s1860_s10 + $0x28] sm:$0xff] }
  0x98   : > { %v657_v37 = vadd.f32 %v656_v35, %v537_v33 }
  0x99   : > { %v940_v36 = vadd.f32 %v1849_v31, %v904_v34  ;;  %1578 = vmatmul.msk.f32.gmra.mxu2 %vm420_vm0, %v1852_v32  ;;  %1514 = vmatmul.msk.f32.gmra.mxu0 %vm420_vm0, %v400_v23 }
  0x9a   : > { %1546 = vmatmul.msk.f32.gmra.mxu1 %vm420_vm0, %v398_v20 }
  0x9b   : > { %v972_v39 = vmax.f32 %v940_v36, 0.0  ;;  %v1932_v36 = vld [vmem:[%s1760_s18 + $0xd8] sm:$0xff] }
  0x9c   : > { %v775_v40 = vpop.f32.mrf.mxu2 }
  0x9d   : > { %v869_v41 = vadd.f32 %v775_v40, %v657_v37  ;;  %v1036_v42 = vadd.f32 %v1004_v38, %v972_v39 }
  0x9e   : > { %v540_v44 = vpop.f32.mrf.mxu0 }
  0x9f   : > { %v905_v45 = vmul.f32 %v1843_v28, %v869_v41  ;;  %1593 = vmatmul.msk.f32.vlgmr.msra.gmra.mxu3 %vm420_vm0, %v1036_v42  ;;  %v659_v46 = vpop.f32.mrf.mxu1  ;;  %v1010_v42 = vld [vmem:[%s1860_s10 + $0x30] sm:$0xff] }
  0xa0   : > { %v660_v48 = vadd.f32 %v659_v46, %v540_v44 }
  0xa1   : > { %v941_v47 = vadd.f32 %v1849_v31, %v905_v45  ;;  %1579 = vmatmul.msk.f32.gmra.mxu2 %vm420_vm0, %v1869_v43  ;;  %1515 = vmatmul.msk.f32.gmra.mxu0 %vm420_vm0, %v1834_v24 }
  0xa2   : > { %1547 = vmatmul.msk.f32.gmra.mxu1 %vm420_vm0, %v399_v22 }
  0xa3   : > { %v973_v50 = vmax.f32 %v941_v47, 0.0  ;;  %v1945_v47 = vld [vmem:[%s1760_s18 + $0xe0] sm:$0xff] }
  0xa4   : > { %v778_v51 = vpop.f32.mrf.mxu2 }
  0xa5   : > { %v870_v52 = vadd.f32 %v778_v51, %v660_v48  ;;  %v1037_v53 = vadd.f32 %v1005_v49, %v973_v50 }
  0xa6   : > { %v543_v55 = vpop.f32.mrf.mxu0 }
  0xa7   : > { %v906_v56 = vmul.f32 %v1843_v28, %v870_v52  ;;  %1594 = vmatmul.msk.f32.gmra.mxu3 %vm420_vm0, %v1037_v53  ;;  %v662_v57 = vpop.f32.mrf.mxu1  ;;  %v1011_v53 = vld [vmem:[%s1860_s10 + $0x38] sm:$0xff] }
  0xa8   : > { %v663_v59 = vadd.f32 %v662_v57, %v543_v55 }
  0xa9   : > { %v942_v58 = vadd.f32 %v1849_v31, %v906_v56  ;;  %1580 = vmatmul.msk.f32.gmra.mxu2 %vm420_vm0, %v1881_v54  ;;  %1516 = vmatmul.msk.f32.gmra.mxu0 %vm420_vm0, %v1852_v32 }
  0xaa   : > { %1548 = vmatmul.msk.f32.gmra.mxu1 %vm420_vm0, %v400_v23  ;;  %v1919_v23 = vld [vmem:[%s1760_s18 + $0xd0] sm:$0xff] }
  0xab   : > { %v974_v61 = vmax.f32 %v942_v58, 0.0  ;;  %v1958_v58 = vld [vmem:[%s1760_s18 + $0xe8] sm:$0xff] }
  0xac   : > { %v781_v62 = vpop.f32.mrf.mxu2 }
  0xad   : > { %v871_v63 = vadd.f32 %v781_v62, %v663_v59  ;;  %v1038_v0 = vadd.f32 %v1006_v60, %v974_v61 }
  0xae   : > { %v546_v2 = vpop.f32.mrf.mxu0 }
  0xaf   : > { %v907_v3 = vmul.f32 %v1843_v28, %v871_v63  ;;  %1595 = vmatmul.msk.f32.gmra.mxu3 %vm420_vm0, %v1038_v0  ;;  %v665_v4 = vpop.f32.mrf.mxu1  ;;  %v1012_v0 = vld [vmem:[%s1860_s10 + $0x40] sm:$0xff] }
  0xb0   : > { %v666_v6 = vadd.f32 %v665_v4, %v546_v2 }
  0xb1   : > { %v943_v5 = vadd.f32 %v1849_v31, %v907_v3  ;;  %1581 = vmatmul.msk.f32.gmra.mxu2 %vm420_vm0, %v1893_v1  ;;  %1517 = vmatmul.msk.f32.gmra.mxu0 %vm420_vm0, %v1869_v43 }
  0xb2   : > { %1549 = vmatmul.msk.f32.gmra.mxu1 %vm420_vm0, %v1834_v24 }
  0xb3   : > { %v975_v8 = vmax.f32 %v943_v5, 0.0  ;;  %v1971_v5 = vld [vmem:[%s1760_s18 + $0xf0] sm:$0xff] }
  0xb4   : > { %v784_v9 = vpop.f32.mrf.mxu2 }
  0xb5   : > { %v872_v10 = vadd.f32 %v784_v9, %v666_v6  ;;  %v1039_v11 = vadd.f32 %v1007_v7, %v975_v8 }
  0xb6   : > { %v549_v13 = vpop.f32.mrf.mxu0 }
  0xb7   : > { %v908_v14 = vmul.f32 %v1843_v28, %v872_v10  ;;  %1596 = vmatmul.msk.f32.gmra.mxu3 %vm420_vm0, %v1039_v11  ;;  %v668_v15 = vpop.f32.mrf.mxu1  ;;  %v1013_v11 = vld [vmem:[%s1860_s10 + $0x48] sm:$0xff] }
  0xb8   : > { %v669_v17 = vadd.f32 %v668_v15, %v549_v13 }
  0xb9   : > { %v944_v16 = vadd.f32 %v1849_v31, %v908_v14  ;;  %1582 = vmatmul.msk.f32.gmra.mxu2 %vm420_vm0, %v1906_v12  ;;  %1518 = vmatmul.msk.f32.gmra.mxu0 %vm420_vm0, %v1881_v54 }
  0xba   : > { %1550 = vmatmul.msk.f32.gmra.mxu1 %vm420_vm0, %v1852_v32 }
  0xbb   : > { %v976_v19 = vmax.f32 %v944_v16, 0.0  ;;  %v1984_v16 = vld [vmem:[%s1760_s18 + $0xf8] sm:$0xff] }
  0xbc   : > { %v787_v20 = vpop.f32.mrf.mxu2 }
  0xbd   : > { %v873_v21 = vadd.f32 %v787_v20, %v669_v17  ;;  %v1040_v22 = vadd.f32 %v1008_v18, %v976_v19 }
  0xbe   : > { %v552_v24 = vpop.f32.mrf.mxu0 }
  0xbf   : > { %v909_v25 = vmul.f32 %v1843_v28, %v873_v21  ;;  %1597 = vmatmul.msk.f32.gmra.mxu3 %vm420_vm0, %v1040_v22  ;;  %v671_v26 = vpop.f32.mrf.mxu1  ;;  %v1014_v22 = vld [vmem:[%s1860_s10 + $0x50] sm:$0xff] }
  0xc0   : > { %v672_v29 = vadd.f32 %v671_v26, %v552_v24 }
  0xc1   : > { %v945_v27 = vadd.f32 %v1849_v31, %v909_v25  ;;  %1583 = vmatmul.msk.f32.gmra.mxu2 %vm420_vm0, %v1919_v23  ;;  %1519 = vmatmul.msk.f32.gmra.mxu0 %vm420_vm0, %v1893_v1 }
  0xc2   : > { %1551 = vmatmul.msk.f32.gmra.mxu1 %vm420_vm0, %v1869_v43 }
  0xc3   : > { %v977_v32 = vmax.f32 %v945_v27, 0.0  ;;  %v413_v27 = vld [vmem:[%s1760_s18 + $0x100] sm:$0xff] }
  0xc4   : > { %v790_v33 = vpop.f32.mrf.mxu2 }
  0xc5   : > { %v874_v34 = vadd.f32 %v790_v33, %v672_v29  ;;  %v1041_v35 = vadd.f32 %v1009_v30, %v977_v32 }
  0xc6   : > { %v555_v37 = vpop.f32.mrf.mxu0 }
  0xc7   : > { %v910_v38 = vmul.f32 %v1843_v28, %v874_v34  ;;  %1598 = vmatmul.msk.f32.gmra.mxu3 %vm420_vm0, %v1041_v35  ;;  %v674_v39 = vpop.f32.mrf.mxu1  ;;  %v1015_v35 = vld [vmem:[%s1860_s10 + $0x58] sm:$0xff] }
  0xc8   : > { %v675_v41 = vadd.f32 %v674_v39, %v555_v37 }
  0xc9   : > { %v946_v40 = vadd.f32 %v1849_v31, %v910_v38  ;;  %1584 = vmatmul.msk.f32.gmra.mxu2 %vm420_vm0, %v1932_v36  ;;  %1520 = vmatmul.msk.f32.gmra.mxu0 %vm420_vm0, %v1906_v12 }
  0xca   : > { %1552 = vmatmul.msk.f32.gmra.mxu1 %vm420_vm0, %v1881_v54 }
  0xcb   : > { %v978_v43 = vmax.f32 %v946_v40, 0.0  ;;  %v414_v40 = vld [vmem:[%s1760_s18 + $0x108] sm:$0xff] }
  0xcc   : > { %v793_v44 = vpop.f32.mrf.mxu2 }
  0xcd   : > { %v875_v45 = vadd.f32 %v793_v44, %v675_v41  ;;  %v1042_v46 = vadd.f32 %v1010_v42, %v978_v43 }
  0xce   : > { %v558_v48 = vpop.f32.mrf.mxu0 }
  0xcf   : > { %v911_v49 = vmul.f32 %v1843_v28, %v875_v45  ;;  %1599 = vmatmul.msk.f32.gmra.mxu3 %vm420_vm0, %v1042_v46  ;;  %v677_v50 = vpop.f32.mrf.mxu1  ;;  %v1016_v46 = vld [vmem:[%s1860_s10 + $0x60] sm:$0xff] }
  0xd0   : > { %v678_v52 = vadd.f32 %v677_v50, %v558_v48 }
  0xd1   : > { %v947_v51 = vadd.f32 %v1849_v31, %v911_v49  ;;  %1585 = vmatmul.msk.f32.gmra.mxu2 %vm420_vm0, %v1945_v47  ;;  %1521 = vmatmul.msk.f32.gmra.mxu0 %vm420_vm0, %v1919_v23 }
  0xd2   : > { %1553 = vmatmul.msk.f32.gmra.mxu1 %vm420_vm0, %v1893_v1 }
  0xd3   : > { %v979_v54 = vmax.f32 %v947_v51, 0.0  ;;  %v415_v51 = vld [vmem:[%s1760_s18 + $0x110] sm:$0xff] }
  0xd4   : > { %v796_v55 = vpop.f32.mrf.mxu2 }
  0xd5   : > { %v876_v56 = vadd.f32 %v796_v55, %v678_v52  ;;  %v1043_v57 = vadd.f32 %v1011_v53, %v979_v54 }
  0xd6   : > { %v561_v59 = vpop.f32.mrf.mxu0 }
  0xd7   : > { %v912_v60 = vmul.f32 %v1843_v28, %v876_v56  ;;  %1600 = vmatmul.msk.f32.gmra.mxu3 %vm420_vm0, %v1043_v57  ;;  %v680_v61 = vpop.f32.mrf.mxu1  ;;  %v1017_v57 = vld [vmem:[%s1860_s10 + $0x68] sm:$0xff] }
  0xd8   : > { %v681_v63 = vadd.f32 %v680_v61, %v561_v59 }
  0xd9   : > { %v948_v62 = vadd.f32 %v1849_v31, %v912_v60  ;;  %1586 = vmatmul.msk.f32.gmra.mxu2 %vm420_vm0, %v1958_v58  ;;  %1522 = vmatmul.msk.f32.gmra.mxu0 %vm420_vm0, %v1932_v36 }
  0xda   : > { %1554 = vmatmul.msk.f32.gmra.mxu1 %vm420_vm0, %v1906_v12 }
  0xdb   : > { %v980_v1 = vmax.f32 %v948_v62, 0.0  ;;  %v416_v62 = vld [vmem:[%s1760_s18 + $0x118] sm:$0xff] }
  0xdc   : > { %v799_v2 = vpop.f32.mrf.mxu2 }
  0xdd   : > { %v877_v3 = vadd.f32 %v799_v2, %v681_v63  ;;  %v1044_v4 = vadd.f32 %v1012_v0, %v980_v1 }
  0xde   : > { %v564_v6 = vpop.f32.mrf.mxu0 }
  0xdf   : > { %v913_v7 = vmul.f32 %v1843_v28, %v877_v3  ;;  %1601 = vmatmul.msk.f32.gmra.mxu3 %vm420_vm0, %v1044_v4  ;;  %v683_v8 = vpop.f32.mrf.mxu1  ;;  %v1018_v4 = vld [vmem:[%s1860_s10 + $0x70] sm:$0xff] }
  0xe0   : > { %v684_v10 = vadd.f32 %v683_v8, %v564_v6 }
  0xe1   : > { %v949_v9 = vadd.f32 %v1849_v31, %v913_v7  ;;  %1587 = vmatmul.msk.f32.gmra.mxu2 %vm420_vm0, %v1971_v5  ;;  %1523 = vmatmul.msk.f32.gmra.mxu0 %vm420_vm0, %v1945_v47 }
  0xe2   : > { %1555 = vmatmul.msk.f32.gmra.mxu1 %vm420_vm0, %v1919_v23 }
  0xe3   : > { %v981_v12 = vmax.f32 %v949_v9, 0.0 }
  0xe4   : > { %v802_v13 = vpop.f32.mrf.mxu2 }
  0xe5   : > { %v878_v14 = vadd.f32 %v802_v13, %v684_v10  ;;  %v1045_v15 = vadd.f32 %v1013_v11, %v981_v12 }
  0xe6   : > { %v567_v17 = vpop.f32.mrf.mxu0 }
  0xe7   : > { %v914_v18 = vmul.f32 %v1843_v28, %v878_v14  ;;  %1602 = vmatmul.msk.f32.gmra.mxu3 %vm420_vm0, %v1045_v15  ;;  %v686_v19 = vpop.f32.mrf.mxu1  ;;  %v1019_v14 = vld [vmem:[%s1860_s10 + $0x78] sm:$0xff] }
  0xe8   : > { %v687_v21 = vadd.f32 %v686_v19, %v567_v17 }
  0xe9   : > { %v950_v20 = vadd.f32 %v1849_v31, %v914_v18  ;;  %1588 = vmatmul.msk.f32.gmra.mxu2 %vm420_vm0, %v1984_v16  ;;  %1524 = vmatmul.msk.f32.gmra.mxu0 %vm420_vm0, %v1958_v58 }
  0xea   : > { %1556 = vmatmul.msk.f32.gmra.mxu1 %vm420_vm0, %v1932_v36 }
  0xeb   : > { %v982_v23 = vmax.f32 %v950_v20, 0.0 }
  0xec   : > { %v805_v24 = vpop.f32.mrf.mxu2 }
  0xed   : > { %v879_v25 = vadd.f32 %v805_v24, %v687_v21  ;;  %v1046_v26 = vadd.f32 %v1014_v22, %v982_v23  ;;  %v1020_v24 = vld [vmem:[%s1860_s10 + $0x80] sm:$0xff] }
  0xee   : > { %v570_v29 = vpop.f32.mrf.mxu0 }
  0xef   : > { %v915_v30 = vmul.f32 %v1843_v28, %v879_v25  ;;  %1603 = vmatmul.msk.f32.gmra.mxu3 %vm420_vm0, %v1046_v26  ;;  %v689_v32 = vpop.f32.mrf.mxu1 }
  0xf0   : > { %v690_v34 = vadd.f32 %v689_v32, %v570_v29 }
  0xf1   : > { %v951_v33 = vadd.f32 %v1849_v31, %v915_v30  ;;  %1589 = vmatmul.msk.f32.gmra.mxu2 %vm420_vm0, %v413_v27  ;;  %1525 = vmatmul.msk.f32.gmra.mxu0 %vm420_vm0, %v1971_v5 }
  0xf2   : > { %1557 = vmatmul.msk.f32.gmra.mxu1 %vm420_vm0, %v1945_v47 }
  0xf3   : > { %v983_v36 = vmax.f32 %v951_v33, 0.0 }
  0xf4   : > { %v808_v37 = vpop.f32.mrf.mxu2 }
  0xf5   : > { %v880_v38 = vadd.f32 %v808_v37, %v690_v34  ;;  %v1047_v39 = vadd.f32 %v1015_v35, %v983_v36  ;;  %v2047_v34 = vld [vmem:[%s2263_s6] ss:$0 sm:$0xff] }
  0xf6   : > { %v573_v41 = vpop.f32.mrf.mxu0  ;;  %v2053_v37 = vld [vmem:[%s2264_s7] ss:$0 sm:$0xff] }
  0xf7   : > { %v916_v42 = vmul.f32 %v1843_v28, %v880_v38  ;;  %1604 = vmatmul.msk.f32.gmra.mxu3 %vm420_vm0, %v1047_v39  ;;  %v692_v43 = vpop.f32.mrf.mxu1  ;;  %v1021_v39 = vld [vmem:[%s1860_s10 + $0x88] sm:$0xff] }
  0xf8   : > { %v693_v45 = vadd.f32 %v692_v43, %v573_v41 }
  0xf9   : > { %v952_v44 = vadd.f32 %v1849_v31, %v916_v42  ;;  %1590 = vmatmul.msk.f32.gmra.mxu2 %vm420_vm0, %v414_v40  ;;  %1526 = vmatmul.msk.f32.gmra.mxu0 %vm420_vm0, %v1984_v16 }
  0xfa   : > { %1558 = vmatmul.msk.f32.gmra.mxu1 %vm420_vm0, %v1958_v58 }
  0xfb   : > { %v984_v47 = vmax.f32 %v952_v44, 0.0 }
  0xfc   : > { %v811_v48 = vpop.f32.mrf.mxu2 }
  0xfd   : > { %v881_v49 = vadd.f32 %v811_v48, %v693_v45  ;;  %v1048_v50 = vadd.f32 %v1016_v46, %v984_v47 }
  0xfe   : > { %v576_v52 = vpop.f32.mrf.mxu0 }
  0xff   : > { %v917_v53 = vmul.f32 %v1843_v28, %v881_v49  ;;  %1605 = vmatmul.msk.f32.gmra.mxu3 %vm420_vm0, %v1048_v50  ;;  %v695_v54 = vpop.f32.mrf.mxu1 }
 0x100   : > { %v696_v56 = vadd.f32 %v695_v54, %v576_v52  ;;  %v1022_v52 = vld [vmem:[%s1860_s10 + $0x90] sm:$0xff] }
 0x101   : > { %v953_v55 = vadd.f32 %v1849_v31, %v917_v53  ;;  %1591 = vmatmul.msk.f32.gmra.mxu2 %vm420_vm0, %v415_v51  ;;  %1527 = vmatmul.msk.f32.gmra.mxu0 %vm420_vm0, %v413_v27 }
 0x102   : > { %1559 = vmatmul.msk.f32.gmra.mxu1 %vm420_vm0, %v1971_v5 }
 0x103   : > { %v985_v58 = vmax.f32 %v953_v55, 0.0 }
 0x104   : > { %v814_v59 = vpop.f32.mrf.mxu2 }
 0x105   : > { %v882_v60 = vadd.f32 %v814_v59, %v696_v56  ;;  %v1049_v61 = vadd.f32 %v1017_v57, %v985_v58 }
 0x106   : > { %v579_v63 = vpop.f32.mrf.mxu0 }
 0x107   : > { %v918_v0 = vmul.f32 %v1843_v28, %v882_v60  ;;  %1606 = vmatmul.msk.f32.gmra.mxu3 %vm420_vm0, %v1049_v61  ;;  %v698_v1 = vpop.f32.mrf.mxu1 }
 0x108   : > { %v699_v3 = vadd.f32 %v698_v1, %v579_v63  ;;  %v1023_v1 = vld [vmem:[%s1860_s10 + $0x98] sm:$0xff] }
 0x109   : > { %v954_v2 = vadd.f32 %v1849_v31, %v918_v0  ;;  %1592 = vmatmul.msk.f32.gmra.mxu2 %vm420_vm0, %v416_v62  ;;  %1528 = vmatmul.msk.f32.gmra.mxu0 %vm420_vm0, %v414_v40 }
 0x10a   : > { %1560 = vmatmul.msk.f32.gmra.mxu1 %vm420_vm0, %v1984_v16 }
 0x10b   : > { %v986_v5 = vmax.f32 %v954_v2, 0.0 }
 0x10c   : > { %v817_v6 = vpop.f32.mrf.mxu2 }
 0x10d   : > { %v883_v7 = vadd.f32 %v817_v6, %v699_v3  ;;  %v1050_v8 = vadd.f32 %v1018_v4, %v986_v5 }
 0x10e   : > { %v582_v9 = vpop.f32.mrf.mxu0 }
 0x10f   : > { %v919_v10 = vmul.f32 %v1843_v28, %v883_v7  ;;  %1607 = vmatmul.msk.f32.gmra.mxu3 %vm420_vm0, %v1050_v8  ;;  %v701_v11 = vpop.f32.mrf.mxu1 }
 0x110   : > { %v702_v13 = vadd.f32 %v701_v11, %v582_v9 }
 0x111   : > { %v955_v12 = vadd.f32 %v1849_v31, %v919_v10 }
 0x113   : > { %v987_v15 = vmax.f32 %v955_v12, 0.0 }
 0x114   : > { %v820_v17 = vpop.f32.mrf.mxu2 }
 0x115   : > { %v884_v18 = vadd.f32 %v820_v17, %v702_v13  ;;  %v1051_v16 = vadd.f32 %v1019_v14, %v987_v15  ;;  %v1024_v14 = vld [vmem:[%s1860_s10 + $0xa0] sm:$0xff] }
 0x116   : > { %v585_v19 = vpop.f32.mrf.mxu0 }
 0x117   : > { %v920_v20 = vmul.f32 %v1843_v28, %v884_v18  ;;  %1608 = vmatmul.msk.f32.gmra.mxu3 %vm420_vm0, %v1051_v16  ;;  %v704_v21 = vpop.f32.mrf.mxu1 }
 0x118   : > { %v705_v23 = vadd.f32 %v704_v21, %v585_v19 }
 0x119   : > { %v956_v22 = vadd.f32 %v1849_v31, %v920_v20 }
 0x11b   : > { %v988_v25 = vmax.f32 %v956_v22, 0.0 }
 0x11c   : > { %v823_v26 = vpop.f32.mrf.mxu2 }
 0x11d   : > { %v885_v27 = vadd.f32 %v823_v26, %v705_v23  ;;  %v1052_v29 = vadd.f32 %v1020_v24, %v988_v25 }
 0x11e   : > { %v588_v30 = vpop.f32.mrf.mxu0 }
 0x11f   : > { %v921_v32 = vmul.f32 %v1843_v28, %v885_v27  ;;  %1609 = vmatmul.msk.f32.gmra.mxu3 %vm420_vm0, %v1052_v29  ;;  %v707_v33 = vpop.f32.mrf.mxu1  ;;  %v1025_v27 = vld [vmem:[%s1860_s10 + $0xa8] sm:$0xff] }
 0x120   : > { %v708_v36 = vadd.f32 %v707_v33, %v588_v30 }
 0x121   : > { %v957_v35 = vadd.f32 %v1849_v31, %v921_v32 }
 0x122   : > { %v1182_v38 = vpop.f32.mrf.mxu3 }
 0x123   : > { %v989_v40 = vmax.f32 %v957_v35, 0.0  ;;  %v1282_v41 = vmul.f32 %v2047_v34, %v1182_v38 }
 0x124   : > { %v826_v42 = vpop.f32.mrf.mxu2 }
 0x125   : > { %v1318_v43 = vadd.f32 %v2053_v37, %v1282_v41  ;;  %v886_v44 = vadd.f32 %v826_v42, %v708_v36  ;;  %v1053_v45 = vadd.f32 %v1021_v39, %v989_v40 }
 0x126   : > { %v591_v46 = vpop.f32.mrf.mxu0 }
 0x127   : > { %1350 = vst.msk [vmem:[%s2062_s17] sm:$0xff] %vm420_vm0, %v1318_v43  ;;  %v922_v47 = vmul.f32 %v1843_v28, %v886_v44  ;;  %1610 = vmatmul.msk.f32.gmra.mxu3 %vm420_vm0, %v1053_v45  ;;  %v710_v48 = vpop.f32.mrf.mxu1  ;;  %v1026_v44 = vld [vmem:[%s1860_s10 + $0xb0] sm:$0xff] }
 0x128   : > { %v711_v50 = vadd.f32 %v710_v48, %v591_v46 }
 0x129   : > { %v958_v49 = vadd.f32 %v1849_v31, %v922_v47 }
 0x12a   : > { %v1185_v51 = vpop.f32.mrf.mxu3 }
 0x12b   : > { %v990_v53 = vmax.f32 %v958_v49, 0.0  ;;  %v1283_v54 = vmul.f32 %v2047_v34, %v1185_v51 }
 0x12c   : > { %v829_v55 = vpop.f32.mrf.mxu2 }
 0x12d   : > { %v1319_v56 = vadd.f32 %v2053_v37, %v1283_v54  ;;  %v887_v57 = vadd.f32 %v829_v55, %v711_v50  ;;  %v1054_v58 = vadd.f32 %v1022_v52, %v990_v53 }
 0x12e   : > { %v594_v59 = vpop.f32.mrf.mxu0 }
 0x12f   : > { %1351 = vst.msk [vmem:[%s2062_s17 + $0x8] sm:$0xff] %vm420_vm0, %v1319_v56  ;;  %v923_v60 = vmul.f32 %v1843_v28, %v887_v57  ;;  %1611 = vmatmul.msk.f32.gmra.mxu3 %vm420_vm0, %v1054_v58  ;;  %v713_v61 = vpop.f32.mrf.mxu1  ;;  %v1027_v57 = vld [vmem:[%s1860_s10 + $0xb8] sm:$0xff] }
 0x130   : > { %v714_v63 = vadd.f32 %v713_v61, %v594_v59 }
 0x131   : > { %v959_v62 = vadd.f32 %v1849_v31, %v923_v60 }
 0x132   : > { %v1188_v0 = vpop.f32.mrf.mxu3 }
 0x133   : > { %v991_v2 = vmax.f32 %v959_v62, 0.0  ;;  %v1284_v3 = vmul.f32 %v2047_v34, %v1188_v0 }
 0x134   : > { %v832_v4 = vpop.f32.mrf.mxu2 }
 0x135   : > { %v1320_v5 = vadd.f32 %v2053_v37, %v1284_v3  ;;  %v888_v6 = vadd.f32 %v832_v4, %v714_v63  ;;  %v1055_v7 = vadd.f32 %v1023_v1, %v991_v2 }
 0x136   : > { %v597_v8 = vpop.f32.mrf.mxu0 }
 0x137   : > { %1352 = vst.msk [vmem:[%s2062_s17 + $0x10] sm:$0xff] %vm420_vm0, %v1320_v5  ;;  %v924_v9 = vmul.f32 %v1843_v28, %v888_v6  ;;  %1612 = vmatmul.msk.f32.gmra.mxu3 %vm420_vm0, %v1055_v7  ;;  %v716_v10 = vpop.f32.mrf.mxu1  ;;  %v1028_v5 = vld [vmem:[%s1860_s10 + $0xc0] sm:$0xff] }
 0x138   : > { %v717_v12 = vadd.f32 %v716_v10, %v597_v8 }
 0x139   : > { %v960_v11 = vadd.f32 %v1849_v31, %v924_v9 }
 0x13a   : > { %v1191_v13 = vpop.f32.mrf.mxu3 }
 0x13b   : > { %v992_v15 = vmax.f32 %v960_v11, 0.0  ;;  %v1285_v17 = vmul.f32 %v2047_v34, %v1191_v13 }
 0x13c   : > { %v835_v18 = vpop.f32.mrf.mxu2 }
 0x13d   : > { %v1321_v16 = vadd.f32 %v2053_v37, %v1285_v17  ;;  %v889_v19 = vadd.f32 %v835_v18, %v717_v12  ;;  %v1056_v20 = vadd.f32 %v1024_v14, %v992_v15 }
 0x13e   : > { %v600_v21 = vpop.f32.mrf.mxu0 }
 0x13f   : > { %1353 = vst.msk [vmem:[%s2062_s17 + $0x18] sm:$0xff] %vm420_vm0, %v1321_v16  ;;  %v925_v22 = vmul.f32 %v1843_v28, %v889_v19  ;;  %1613 = vmatmul.msk.f32.gmra.mxu3 %vm420_vm0, %v1056_v20  ;;  %v719_v23 = vpop.f32.mrf.mxu1  ;;  %v1029_v16 = vld [vmem:[%s1860_s10 + $0xc8] sm:$0xff] }
 0x140   : > { %v720_v25 = vadd.f32 %v719_v23, %v600_v21 }
 0x141   : > { %v961_v24 = vadd.f32 %v1849_v31, %v925_v22 }
 0x142   : > { %v1194_v26 = vpop.f32.mrf.mxu3 }
 0x143   : > { %v993_v29 = vmax.f32 %v961_v24, 0.0  ;;  %v1286_v30 = vmul.f32 %v2047_v34, %v1194_v26 }
 0x144   : > { %v838_v32 = vpop.f32.mrf.mxu2 }
 0x145   : > { %v1322_v33 = vadd.f32 %v2053_v37, %v1286_v30  ;;  %v890_v35 = vadd.f32 %v838_v32, %v720_v25  ;;  %v1057_v36 = vadd.f32 %v1025_v27, %v993_v29 }
 0x146   : > { %v603_v38 = vpop.f32.mrf.mxu0 }
 0x147   : > { %1354 = vst.msk [vmem:[%s2062_s17 + $0x20] sm:$0xff] %vm420_vm0, %v1322_v33  ;;  %v926_v39 = vmul.f32 %v1843_v28, %v890_v35  ;;  %1614 = vmatmul.msk.f32.gmra.mxu3 %vm420_vm0, %v1057_v36  ;;  %v722_v40 = vpop.f32.mrf.mxu1  ;;  %v1030_v33 = vld [vmem:[%s1860_s10 + $0xd0] sm:$0xff] }
 0x148   : > { %v723_v42 = vadd.f32 %v722_v40, %v603_v38 }
 0x149   : > { %v962_v41 = vadd.f32 %v1849_v31, %v926_v39 }
 0x14a   : > { %v1197_v43 = vpop.f32.mrf.mxu3 }
 0x14b   : > { %v994_v45 = vmax.f32 %v962_v41, 0.0  ;;  %v1287_v46 = vmul.f32 %v2047_v34, %v1197_v43 }
 0x14c   : > { %v841_v47 = vpop.f32.mrf.mxu2 }
 0x14d   : > { %v1323_v48 = vadd.f32 %v2053_v37, %v1287_v46  ;;  %v891_v49 = vadd.f32 %v841_v47, %v723_v42  ;;  %v1058_v50 = vadd.f32 %v1026_v44, %v994_v45 }
 0x14e   : > { %v606_v51 = vpop.f32.mrf.mxu0 }
 0x14f   : > { %1355 = vst.msk [vmem:[%s2062_s17 + $0x28] sm:$0xff] %vm420_vm0, %v1323_v48  ;;  %v927_v52 = vmul.f32 %v1843_v28, %v891_v49  ;;  %1615 = vmatmul.msk.f32.gmra.mxu3 %vm420_vm0, %v1058_v50  ;;  %v725_v53 = vpop.f32.mrf.mxu1  ;;  %v1031_v48 = vld [vmem:[%s1860_s10 + $0xd8] sm:$0xff] }
 0x150   : > { %v726_v55 = vadd.f32 %v725_v53, %v606_v51 }
 0x151   : > { %v963_v54 = vadd.f32 %v1849_v31, %v927_v52 }
 0x152   : > { %v1200_v56 = vpop.f32.mrf.mxu3 }
 0x153   : > { %v995_v58 = vmax.f32 %v963_v54, 0.0  ;;  %v1288_v59 = vmul.f32 %v2047_v34, %v1200_v56 }
 0x154   : > { %v844_v60 = vpop.f32.mrf.mxu2 }
 0x155   : > { %v1324_v61 = vadd.f32 %v2053_v37, %v1288_v59  ;;  %v892_v62 = vadd.f32 %v844_v60, %v726_v55  ;;  %v1059_v63 = vadd.f32 %v1027_v57, %v995_v58 }
 0x156   : > { %v609_v0 = vpop.f32.mrf.mxu0 }
 0x157   : > { %1356 = vst.msk [vmem:[%s2062_s17 + $0x30] sm:$0xff] %vm420_vm0, %v1324_v61  ;;  %v928_v1 = vmul.f32 %v1843_v28, %v892_v62  ;;  %1616 = vmatmul.msk.f32.gmra.mxu3 %vm420_vm0, %v1059_v63  ;;  %v728_v2 = vpop.f32.mrf.mxu1  ;;  %v1032_v61 = vld [vmem:[%s1860_s10 + $0xe0] sm:$0xff] }
 0x158   : > { %v729_v4 = vadd.f32 %v728_v2, %v609_v0 }
 0x159   : > { %v964_v3 = vadd.f32 %v1849_v31, %v928_v1 }
 0x15a   : > { %v1203_v6 = vpop.f32.mrf.mxu3 }
 0x15b   : > { %v996_v7 = vmax.f32 %v964_v3, 0.0  ;;  %v1289_v8 = vmul.f32 %v2047_v34, %v1203_v6 }
 0x15c   : > { %v847_v9 = vpop.f32.mrf.mxu2 }
 0x15d   : > { %v1060_v10 = vadd.f32 %v1028_v5, %v996_v7  ;;  %v1325_v11 = vadd.f32 %v2053_v37, %v1289_v8  ;;  %v893_v12 = vadd.f32 %v847_v9, %v729_v4 }
 0x15e   : > { %v612_v13 = vpop.f32.mrf.mxu0 }
 0x15f   : > { %1357 = vst.msk [vmem:[%s2062_s17 + $0x38] sm:$0xff] %vm420_vm0, %v1325_v11  ;;  %v929_v14 = vmul.f32 %v1843_v28, %v893_v12  ;;  %1617 = vmatmul.msk.f32.gmra.mxu3 %vm420_vm0, %v1060_v10  ;;  %v731_v15 = vpop.f32.mrf.mxu1  ;;  %v1033_v10 = vld [vmem:[%s1860_s10 + $0xe8] sm:$0xff] }
 0x160   : > { %v732_v18 = vadd.f32 %v731_v15, %v612_v13 }
 0x161   : > { %v965_v17 = vadd.f32 %v1849_v31, %v929_v14 }
 0x162   : > { %v1206_v19 = vpop.f32.mrf.mxu3 }
 0x163   : > { %v997_v20 = vmax.f32 %v965_v17, 0.0  ;;  %v1290_v21 = vmul.f32 %v2047_v34, %v1206_v19 }
 0x164   : > { %v850_v22 = vpop.f32.mrf.mxu2 }
 0x165   : > { %v1061_v23 = vadd.f32 %v1029_v16, %v997_v20  ;;  %v1326_v24 = vadd.f32 %v2053_v37, %v1290_v21  ;;  %v894_v25 = vadd.f32 %v850_v22, %v732_v18 }
 0x166   : > { %v615_v26 = vpop.f32.mrf.mxu0 }
 0x167   : > { %1358 = vst.msk [vmem:[%s2062_s17 + $0x40] sm:$0xff] %vm420_vm0, %v1326_v24  ;;  %v930_v27 = vmul.f32 %v1843_v28, %v894_v25  ;;  %1618 = vmatmul.msk.f32.gmra.mxu3 %vm420_vm0, %v1061_v23  ;;  %v734_v29 = vpop.f32.mrf.mxu1  ;;  %v1034_v23 = vld [vmem:[%s1860_s10 + $0xf0] sm:$0xff] }
 0x168   : > { %v735_v32 = vadd.f32 %v734_v29, %v615_v26 }
 0x169   : > { %v966_v30 = vadd.f32 %v1849_v31, %v930_v27 }
 0x16a   : > { %v1209_v35 = vpop.f32.mrf.mxu3 }
 0x16b   : > { %v998_v36 = vmax.f32 %v966_v30, 0.0  ;;  %v1291_v38 = vmul.f32 %v2047_v34, %v1209_v35 }
 0x16c   : > { %v853_v39 = vpop.f32.mrf.mxu2 }
 0x16d   : > { %v1062_v40 = vadd.f32 %v1030_v33, %v998_v36  ;;  %v1327_v41 = vadd.f32 %v2053_v37, %v1291_v38  ;;  %v895_v42 = vadd.f32 %v853_v39, %v735_v32  ;;  %v1035_v36 = vld [vmem:[%s1860_s10 + $0xf8] sm:$0xff] }
 0x16e   : > { %v618_v43 = vpop.f32.mrf.mxu0 }
 0x16f   : > { %1359 = vst.msk [vmem:[%s2062_s17 + $0x48] sm:$0xff] %vm420_vm0, %v1327_v41  ;;  %v931_v44 = vmul.f32 %v1843_v28, %v895_v42  ;;  %1619 = vmatmul.msk.f32.gmra.mxu3 %vm420_vm0, %v1062_v40  ;;  %v737_v45 = vpop.f32.mrf.mxu1 }
 0x170   : > { %v738_v47 = vadd.f32 %v737_v45, %v618_v43 }
 0x171   : > { %v967_v46 = vadd.f32 %v1849_v31, %v931_v44 }
 0x172   : > { %v1212_v49 = vpop.f32.mrf.mxu3 }
 0x173   : > { %v999_v50 = vmax.f32 %v967_v46, 0.0  ;;  %v1292_v51 = vmul.f32 %v2047_v34, %v1212_v49 }
 0x174   : > { %v856_v52 = vpop.f32.mrf.mxu2 }
 0x175   : > { %v1063_v53 = vadd.f32 %v1031_v48, %v999_v50  ;;  %v1328_v54 = vadd.f32 %v2053_v37, %v1292_v51  ;;  %v896_v55 = vadd.f32 %v856_v52, %v738_v47 }
 0x176   : > { %v621_v56 = vpop.f32.mrf.mxu0 }
 0x177   : > { %1360 = vst.msk [vmem:[%s2062_s17 + $0x50] sm:$0xff] %vm420_vm0, %v1328_v54  ;;  %v932_v57 = vmul.f32 %v1843_v28, %v896_v55  ;;  %1620 = vmatmul.msk.f32.gmra.mxu3 %vm420_vm0, %v1063_v53  ;;  %v740_v58 = vpop.f32.mrf.mxu1 }
 0x178   : > { %v741_v60 = vadd.f32 %v740_v58, %v621_v56 }
 0x179   : > { %v968_v59 = vadd.f32 %v1849_v31, %v932_v57 }
 0x17a   : > { %v1215_v62 = vpop.f32.mrf.mxu3 }
 0x17b   : > { %v1000_v63 = vmax.f32 %v968_v59, 0.0  ;;  %v1293_v0 = vmul.f32 %v2047_v34, %v1215_v62 }
 0x17c   : > { %v859_v1 = vpop.f32.mrf.mxu2 }
 0x17d   : > { %v1064_v2 = vadd.f32 %v1032_v61, %v1000_v63  ;;  %v1329_v3 = vadd.f32 %v2053_v37, %v1293_v0  ;;  %v897_v4 = vadd.f32 %v859_v1, %v741_v60 }
 0x17e   : > { %v624_v5 = vpop.f32.mrf.mxu0 }
 0x17f   : > { %1361 = vst.msk [vmem:[%s2062_s17 + $0x58] sm:$0xff] %vm420_vm0, %v1329_v3  ;;  %v933_v6 = vmul.f32 %v1843_v28, %v897_v4  ;;  %1621 = vmatmul.msk.f32.gmra.mxu3 %vm420_vm0, %v1064_v2  ;;  %v743_v7 = vpop.f32.mrf.mxu1 }
 0x180   : > { %v744_v9 = vadd.f32 %v743_v7, %v624_v5 }
 0x181   : > { %v969_v8 = vadd.f32 %v1849_v31, %v933_v6 }
 0x182   : > { %v1218_v11 = vpop.f32.mrf.mxu3 }
 0x183   : > { %v1001_v12 = vmax.f32 %v969_v8, 0.0  ;;  %v1294_v13 = vmul.f32 %v2047_v34, %v1218_v11 }
 0x184   : > { %v862_v14 = vpop.f32.mrf.mxu2 }
 0x185   : > { %v1065_v15 = vadd.f32 %v1033_v10, %v1001_v12  ;;  %v1330_v17 = vadd.f32 %v2053_v37, %v1294_v13  ;;  %v898_v18 = vadd.f32 %v862_v14, %v744_v9 }
 0x186   : > { %v627_v16 = vpop.f32.mrf.mxu0 }
 0x187   : > { %1362 = vst.msk [vmem:[%s2062_s17 + $0x60] sm:$0xff] %vm420_vm0, %v1330_v17  ;;  %v934_v19 = vmul.f32 %v1843_v28, %v898_v18  ;;  %1622 = vmatmul.msk.f32.gmra.mxu3 %vm420_vm0, %v1065_v15  ;;  %v746_v20 = vpop.f32.mrf.mxu1 }
 0x188   : > { %v747_v22 = vadd.f32 %v746_v20, %v627_v16 }
 0x189   : > { %v970_v21 = vadd.f32 %v1849_v31, %v934_v19 }
 0x18a   : > { %v1221_v24 = vpop.f32.mrf.mxu3 }
 0x18b   : > { %v1002_v25 = vmax.f32 %v970_v21, 0.0  ;;  %v1295_v26 = vmul.f32 %v2047_v34, %v1221_v24 }
 0x18c   : > { %v865_v27 = vpop.f32.mrf.mxu2 }
 0x18d   : > { %v1066_v29 = vadd.f32 %v1034_v23, %v1002_v25  ;;  %v1331_v30 = vadd.f32 %v2053_v37, %v1295_v26  ;;  %v899_v32 = vadd.f32 %v865_v27, %v747_v22 }
 0x18f   : > { %1363 = vst.msk [vmem:[%s2062_s17 + $0x68] sm:$0xff] %vm420_vm0, %v1331_v30  ;;  %v935_v33 = vmul.f32 %v1843_v28, %v899_v32  ;;  %1623 = vmatmul.msk.f32.gmra.mxu3 %vm420_vm0, %v1066_v29 }
 0x191   : > { %v971_v35 = vadd.f32 %v1849_v31, %v935_v33 }
 0x192   : > { %v1224_v38 = vpop.f32.mrf.mxu3 }
 0x193   : > { %v1003_v39 = vmax.f32 %v971_v35, 0.0  ;;  %v1296_v40 = vmul.f32 %v2047_v34, %v1224_v38 }
 0x195   : > { %v1067_v41 = vadd.f32 %v1035_v36, %v1003_v39  ;;  %v1332_v42 = vadd.f32 %v2053_v37, %v1296_v40 }
 0x197   : > { %1364 = vst.msk [vmem:[%s2062_s17 + $0x70] sm:$0xff] %vm420_vm0, %v1332_v42  ;;  %1624 = vmatmul.msk.f32.gmra.mxu3 %vm420_vm0, %v1067_v41 }
 0x19a   : > { %v1227_v28 = vpop.f32.mrf.mxu3 }
 0x19b   : > { %v1297_v43 = vmul.f32 %v2047_v34, %v1227_v28 }
 0x19d   : > { %v1333_v31 = vadd.f32 %v2053_v37, %v1297_v43 }
 0x19f   : > { %1365 = vst.msk [vmem:[%s2062_s17 + $0x78] sm:$0xff] %vm420_vm0, %v1333_v31 }
 0x1a2   : > { %v1230_v44 = vpop.f32.mrf.mxu3 }
 0x1a3   : > { %v1298_v45 = vmul.f32 %v2047_v34, %v1230_v44 }
 0x1a5   : > { %v1334_v46 = vadd.f32 %v2053_v37, %v1298_v45 }
 0x1a7   : > { %1366 = vst.msk [vmem:[%s2062_s17 + $0x80] sm:$0xff] %vm420_vm0, %v1334_v46 }
 0x1aa   : > { %v1233_v47 = vpop.f32.mrf.mxu3 }
 0x1ab   : > { %v1299_v48 = vmul.f32 %v2047_v34, %v1233_v47 }
 0x1ad   : > { %v1335_v49 = vadd.f32 %v2053_v37, %v1299_v48 }
 0x1af   : > { %1367 = vst.msk [vmem:[%s2062_s17 + $0x88] sm:$0xff] %vm420_vm0, %v1335_v49 }
 0x1b2   : > { %v1236_v50 = vpop.f32.mrf.mxu3 }
 0x1b3   : > { %v1300_v51 = vmul.f32 %v2047_v34, %v1236_v50 }
 0x1b5   : > { %v1336_v52 = vadd.f32 %v2053_v37, %v1300_v51 }
 0x1b7   : > { %1368 = vst.msk [vmem:[%s2062_s17 + $0x90] sm:$0xff] %vm420_vm0, %v1336_v52 }
 0x1ba   : > { %v1239_v53 = vpop.f32.mrf.mxu3 }
 0x1bb   : > { %v1301_v54 = vmul.f32 %v2047_v34, %v1239_v53 }
 0x1bd   : > { %v1337_v55 = vadd.f32 %v2053_v37, %v1301_v54 }
 0x1bf   : > { %1369 = vst.msk [vmem:[%s2062_s17 + $0x98] sm:$0xff] %vm420_vm0, %v1337_v55 }
 0x1c2   : > { %v1242_v56 = vpop.f32.mrf.mxu3 }
 0x1c3   : > { %v1302_v57 = vmul.f32 %v2047_v34, %v1242_v56 }
 0x1c5   : > { %v1338_v58 = vadd.f32 %v2053_v37, %v1302_v57 }
 0x1c7   : > { %1370 = vst.msk [vmem:[%s2062_s17 + $0xa0] sm:$0xff] %vm420_vm0, %v1338_v58 }
 0x1ca   : > { %v1245_v59 = vpop.f32.mrf.mxu3 }
 0x1cb   : > { %v1303_v60 = vmul.f32 %v2047_v34, %v1245_v59 }
 0x1cd   : > { %v1339_v61 = vadd.f32 %v2053_v37, %v1303_v60 }
 0x1cf   : > { %1371 = vst.msk [vmem:[%s2062_s17 + $0xa8] sm:$0xff] %vm420_vm0, %v1339_v61 }
 0x1d2   : > { %v1248_v62 = vpop.f32.mrf.mxu3 }
 0x1d3   : > { %v1304_v63 = vmul.f32 %v2047_v34, %v1248_v62 }
 0x1d5   : > { %v1340_v0 = vadd.f32 %v2053_v37, %v1304_v63 }
 0x1d7   : > { %1372 = vst.msk [vmem:[%s2062_s17 + $0xb0] sm:$0xff] %vm420_vm0, %v1340_v0 }
 0x1da   : > { %v1251_v1 = vpop.f32.mrf.mxu3 }
 0x1db   : > { %v1305_v2 = vmul.f32 %v2047_v34, %v1251_v1 }
 0x1dd   : > { %v1341_v3 = vadd.f32 %v2053_v37, %v1305_v2 }
 0x1df   : > { %1373 = vst.msk [vmem:[%s2062_s17 + $0xb8] sm:$0xff] %vm420_vm0, %v1341_v3 }
 0x1e2   : > { %v1254_v4 = vpop.f32.mrf.mxu3 }
 0x1e3   : > { %v1306_v5 = vmul.f32 %v2047_v34, %v1254_v4 }
 0x1e5   : > { %v1342_v6 = vadd.f32 %v2053_v37, %v1306_v5 }
 0x1e7   : > { %1374 = vst.msk [vmem:[%s2062_s17 + $0xc0] sm:$0xff] %vm420_vm0, %v1342_v6 }
 0x1ea   : > { %v1257_v7 = vpop.f32.mrf.mxu3 }
 0x1eb   : > { %v1307_v8 = vmul.f32 %v2047_v34, %v1257_v7 }
 0x1ed   : > { %v1343_v9 = vadd.f32 %v2053_v37, %v1307_v8 }
 0x1ef   : > { %1375 = vst.msk [vmem:[%s2062_s17 + $0xc8] sm:$0xff] %vm420_vm0, %v1343_v9 }
 0x1f2   : > { %v1260_v10 = vpop.f32.mrf.mxu3 }
 0x1f3   : > { %v1308_v11 = vmul.f32 %v2047_v34, %v1260_v10 }
 0x1f5   : > { %v1344_v12 = vadd.f32 %v2053_v37, %v1308_v11 }
 0x1f7   : > { %1376 = vst.msk [vmem:[%s2062_s17 + $0xd0] sm:$0xff] %vm420_vm0, %v1344_v12 }
 0x1fa   : > { %v1263_v13 = vpop.f32.mrf.mxu3 }
 0x1fb   : > { %v1309_v14 = vmul.f32 %v2047_v34, %v1263_v13 }
 0x1fd   : > { %v1345_v15 = vadd.f32 %v2053_v37, %v1309_v14 }
 0x1ff   : > { %1377 = vst.msk [vmem:[%s2062_s17 + $0xd8] sm:$0xff] %vm420_vm0, %v1345_v15 }
 0x202   : > { %v1266_v17 = vpop.f32.mrf.mxu3 }
 0x203   : > { %v1310_v18 = vmul.f32 %v2047_v34, %v1266_v17 }
 0x205   : > { %v1346_v16 = vadd.f32 %v2053_v37, %v1310_v18 }
 0x207   : > { %1378 = vst.msk [vmem:[%s2062_s17 + $0xe0] sm:$0xff] %vm420_vm0, %v1346_v16 }
 0x20a   : > { %v1269_v19 = vpop.f32.mrf.mxu3 }
 0x20b   : > { %v1311_v20 = vmul.f32 %v2047_v34, %v1269_v19 }
 0x20d   : > { %v1347_v21 = vadd.f32 %v2053_v37, %v1311_v20 }
 0x20f   : > { %1379 = vst.msk [vmem:[%s2062_s17 + $0xe8] sm:$0xff] %vm420_vm0, %v1347_v21 }
 0x212   : > { %v1272_v22 = vpop.f32.mrf.mxu3 }
 0x213   : > { %v1312_v23 = vmul.f32 %v2047_v34, %v1272_v22 }
 0x215   : > { %v1348_v24 = vadd.f32 %v2053_v37, %v1312_v23 }
 0x217   : > { %1380 = vst.msk [vmem:[%s2062_s17 + $0xf0] sm:$0xff] %vm420_vm0, %v1348_v24 }
 0x21a   : > { %v1275_v25 = vpop.f32.mrf.mxu3 }
 0x21b   : > { %v1313_v26 = vmul.f32 %v2047_v34, %v1275_v25 }
 0x21d   : > { %v1349_v27 = vadd.f32 %v2053_v37, %v1313_v26 }
 0x21f   : > { %1381 = vst.msk [vmem:[%s2062_s17 + $0xf8] sm:$0xff] %vm420_vm0, %v1349_v27 }
 0x220 PF: > { %s18_s29 = sadd.s32 1, %s1680_s29   ;;  %s2266_s27 = smov %s1676_s28 }
 0x221   : > { %p15_p5 = scmp.ge.s32.totalorder %s18_s29, 4   ;;  %s2267_s28 = smov %s2269_s30 }
 0x223   :  { %17 = sbr.rel (!%p15_p5) target bundleno = 2 (0x2), region = 85 }

</bundles_post_ra>
